<compile_context>
chip_gen: v5e
topology: v5e:2x2
jax: 0.10.0
libtpu: 0.0.40
codegen_flags: <defaults>
</compile_context>

<pallas_src>
import functools

import jax
import jax.numpy as jnp
from jax import lax
from jax.experimental import pallas as pl
from jax.experimental.pallas import tpu as pltpu

LANE = 128


def _round_up(x, m):
    return (x + m - 1) // m * m


# ------------------------------ Pallas kernel --------------------------------

def _conv_block_kernel(x_ref, w_ref, b_ref, o_ref, acc_ref, *,
                       k, stride, Ho, Wo, HoE, norm, leaky):
    """Fused Conv2d (+ bias [+ InstanceNorm] [+ LeakyReLU]) for one image.

    x_ref  : (1, s*s*HoE, WoE, Cin)  bf16  phase-decomposed padded input
    w_ref  : (k*k, Cin, Coutp)       bf16  per-tap weight matrices
    b_ref  : (1, Coutp)              f32
    o_ref  : (1, Ho, Wo, Coutp)      bf16 / f32
    acc_ref: (Ho, Wo, Coutp)         f32 VMEM scratch (conv accumulator)
    """
    s = stride
    coutp = w_ref.shape[2]

    def row_body(ho, carry):
        # One output row: accumulate the k*k taps as (Wo, Cin) @ (Cin, Coutp).
        row = jnp.zeros((Wo, coutp), jnp.float32)
        for di in range(k):
            ai, pi = di // s, di % s
            for dj in range(k):
                aj, pj = dj // s, dj % s
                xt = x_ref[0, (pi * s + pj) * HoE + ai + ho, pl.ds(aj, Wo), :]
                row = row + jnp.dot(xt, w_ref[di * k + dj],
                                    preferred_element_type=jnp.float32)
        acc_ref[ho] = row
        return carry

    lax.fori_loop(0, Ho, row_body, 0)

    y = acc_ref[...] + b_ref[...]                       # (Ho, Wo, Coutp) f32
    if norm:
        # InstanceNorm2d(affine=False): per-channel stats over the Ho*Wo pixels.
        inv_n = 1.0 / (Ho * Wo)
        mean = jnp.sum(jnp.sum(y, axis=1, keepdims=True),
                       axis=0, keepdims=True) * inv_n
        d = y - mean
        var = jnp.sum(jnp.sum(d * d, axis=1, keepdims=True),
                      axis=0, keepdims=True) * inv_n    # biased, like PyTorch
        y = d * lax.rsqrt(var + 1e-5)
    if leaky:
        y = jnp.where(y >= 0, y, 0.2 * y)
    o_ref[0] = y.astype(o_ref.dtype)


# -------------------------------- JAX glue -----------------------------------

def _phase_slab(x, k, stride, pad):
    """(N, H, W, C) -> bf16 slab (N, s*s*HoE, WoE, C) of stride-phase sub-grids.

    slab[n, (pi*s + pj)*HoE + i, j, :] == x_padded[n, s*i + pi, s*j + pj, :]
    so conv tap (di, dj) for output (ho, wo) reads
    slab[n, ((di%s)*s + dj%s)*HoE + ho + di//s, wo + dj//s, :].
    Total size ~= padded input (no k*k im2col amplification).
    """
    N, H, W, C = x.shape
    s = stride
    Ho = (H + 2 * pad - k) // s + 1
    Wo = (W + 2 * pad - k) // s + 1
    A = (k - 1) // s
    HoE, WoE = Ho + A, Wo + A
    pad_b = max(pad, s * HoE - H - pad)
    pad_r = max(pad, s * WoE - W - pad)
    xp = jnp.pad(x.astype(jnp.bfloat16),
                 ((0, 0), (pad, pad_b), (pad, pad_r), (0, 0)))
    phases = []
    for pi in range(s):
        for pj in range(s):
            phases.append(xp[:, pi::s, pj::s, :][:, :HoE, :WoE, :])
    slab = phases[0] if len(phases) == 1 else jnp.concatenate(phases, axis=1)
    return slab, Ho, Wo, HoE, WoE


def conv_block_pallas(x, weight, bias, *, stride, pad, norm, leaky, out_dtype):
    """x: (N, H, W, Cin) NHWC; weight: (Cout, Cin, k, k); bias: (Cout,).

    Returns ((N, Ho, Wo, Coutp) out_dtype, Cout) with Coutp = round_up(Cout, 128);
    lanes [Cout:Coutp] are exact zeros.
    """
    N = x.shape[0]
    Cout, Cin, k, _ = weight.shape
    assert x.shape[-1] == Cin, (x.shape, weight.shape)

    slab, Ho, Wo, HoE, WoE = _phase_slab(x, k, stride, pad)
    Coutp = _round_up(Cout, LANE)

    # (Cout, Cin, kh, kw) -> (kh*kw, Cin, Coutp), lane-dense zero-padded Cout.
    w = jnp.transpose(weight, (2, 3, 1, 0)).reshape(k * k, Cin, Cout)
    w = jnp.pad(w, ((0, 0), (0, 0), (0, Coutp - Cout))).astype(jnp.bfloat16)
    b = jnp.pad(bias, (0, Coutp - Cout)).reshape(1, Coutp).astype(jnp.float32)

    kernel = functools.partial(_conv_block_kernel, k=k, stride=stride,
                               Ho=Ho, Wo=Wo, HoE=HoE, norm=norm, leaky=leaky)

    # VMEM budget: double-buffered activation slab + resident weights/bias
    # (constant index_map -> DMA'd once; pl.Buffered(1) would additionally drop
    # their idle second buffer) + double-buffered output + f32 scratch.
    out_itemsize = jnp.dtype(out_dtype).itemsize
    slab_bytes = stride * stride * HoE * WoE * Cin * 2
    w_bytes = k * k * Cin * Coutp * 2
    out_bytes = Ho * Wo * Coutp * out_itemsize
    acc_bytes = Ho * Wo * Coutp * 4
    need = 2 * slab_bytes + 2 * w_bytes + 2 * out_bytes + acc_bytes + Coutp * 8
    vmem_limit = int(min(max(2 * need, 32 * 1024 * 1024), 56 * 1024 * 1024))

    cost = pl.CostEstimate(
        flops=2 * N * Ho * Wo * k * k * Cin * Coutp,
        transcendentals=N * Coutp if norm else 0,
        bytes_accessed=slab.size * 2 + w.size * 2 + b.size * 4
                       + N * Ho * Wo * Coutp * out_itemsize,
    )

    out = pl.pallas_call(
        kernel,
        out_shape=jax.ShapeDtypeStruct((N, Ho, Wo, Coutp), out_dtype),
        grid=(N,),
        in_specs=[
            pl.BlockSpec((1, stride * stride * HoE, WoE, Cin),
                         lambda n: (n, 0, 0, 0)),
            pl.BlockSpec((k * k, Cin, Coutp), lambda n: (0, 0, 0)),
            pl.BlockSpec((1, Coutp), lambda n: (0, 0)),
        ],
        out_specs=pl.BlockSpec((1, Ho, Wo, Coutp), lambda n: (n, 0, 0, 0)),
        scratch_shapes=[pltpu.VMEM((Ho, Wo, Coutp), jnp.float32)],
        compiler_params=pltpu.CompilerParams(
            dimension_semantics=("parallel",),
            vmem_limit_bytes=vmem_limit),
        cost_estimate=cost,
    )(slab, w, b)
    return out, Cout


# ---------------------------- Discriminator model ----------------------------

def build_discriminator(key, n_layers=4, input_c=3, n_filter=64, kernel_size=4):
    """Deterministic init mimicking PyTorch Conv2d default (uniform +-1/sqrt(fan_in)).

    Returns (params, static_cfg): params = [(w, b), ...] (jit-able pytree),
    static_cfg = [(stride, normalize), ...] with normalize in {False, True, None}.
    """
    cfg = []
    oc = n_filter
    for i in range(n_layers):
        if i == 0:
            ic, oc = input_c, n_filter
            cfg.append((ic, oc, 2, False))                 # conv -> LeakyReLU
        else:
            ic = oc
            oc = 2 * ic
            stride = 1 if i == n_layers - 1 else 2
            cfg.append((ic, oc, stride, True))             # conv -> IN -> LeakyReLU
    cfg.append((oc, 1, 1, None))                           # final conv, no act

    params, static_cfg = [], []
    for (ic, oc_, stride, normalize) in cfg:
        key, kw, kb = jax.random.split(key, 3)
        fan_in = ic * kernel_size * kernel_size
        bound = 1.0 / (fan_in ** 0.5)
        w = jax.random.uniform(kw, (oc_, ic, kernel_size, kernel_size),
                               jnp.float32, -bound, bound)
        b = jax.random.uniform(kb, (oc_,), jnp.float32, -bound, bound)
        params.append((w, b))
        static_cfg.append((stride, normalize))
    return params, static_cfg


def make_discriminator_forward(static_cfg):
    def forward(params, x_nchw):
        h = jnp.transpose(x_nchw, (0, 2, 3, 1))            # NCHW -> NHWC, once
        for (w, b), (stride, normalize) in zip(params, static_cfg):
            is_final = normalize is None
            hp, cout = conv_block_pallas(
                h, w, b, stride=stride, pad=1,
                norm=(normalize is True),
                leaky=(normalize is not None),
                out_dtype=jnp.float32 if is_final else jnp.bfloat16)
            h = hp[..., :cout]                             # drop lane padding
        return jnp.transpose(h, (0, 3, 1, 2))              # NHWC -> NCHW, once
    return forward


# ------------------------------ pure-JAX reference ---------------------------

def reference_forward(params, static_cfg, x_nchw):
    """Pure-JAX mirror with the same bf16 quantization points as the Pallas path."""
    h = jnp.transpose(x_nchw, (0, 2, 3, 1)).astype(jnp.float32)
    for (w, b), (stride, normalize) in zip(params, static_cfg):
        hq = h.astype(jnp.bfloat16).astype(jnp.float32)
        wq = jnp.transpose(w, (2, 3, 1, 0)).astype(jnp.bfloat16).astype(jnp.float32)
        y = lax.conv_general_dilated(
            hq, wq, window_strides=(stride, stride), padding=[(1, 1), (1, 1)],
            dimension_numbers=("NHWC", "HWIO", "NHWC"),
            precision=lax.Precision.HIGHEST)
        y = y + b.reshape(1, 1, 1, -1)
        if normalize:
            mean = jnp.mean(y, axis=(1, 2), keepdims=True)
            var = jnp.mean((y - mean) ** 2, axis=(1, 2), keepdims=True)
            y = (y - mean) * lax.rsqrt(var + 1e-5)
        if normalize is not None:
            y = jnp.where(y >= 0, y, 0.2 * y)
        h = y
    return jnp.transpose(h, (0, 3, 1, 2))


if __name__ == "__main__":
    key = jax.random.PRNGKey(0)
    pkey, xkey = jax.random.split(key)

    # Small but architecture-faithful config: 4 conv blocks + final 1-channel conv.
    n_layers, input_c, n_filter, kernel_size = 4, 3, 8, 4
    params, static_cfg = build_discriminator(pkey, n_layers, input_c,
                                             n_filter, kernel_size)
    forward = jax.jit(make_discriminator_forward(static_cfg))

    x = jax.random.normal(xkey, (2, input_c, 32, 32), jnp.float32)
    out = jax.block_until_ready(forward(params, x))

    # 32 -(s2)-> 16 -(s2)-> 8 -(s2)-> 4 -(s1)-> 3 -(final s1)-> 2
    assert out.shape == (2, 1, 2, 2), out.shape
    assert out.dtype == jnp.float32
    assert bool(jnp.all(jnp.isfinite(out)))

    # Pure-JAX reference (same bf16 quantization points) -> only accumulation
    # order / rsqrt ulp differences remain, so a loose bound is very safe.
    ref = jax.jit(lambda p, xx: reference_forward(p, static_cfg, xx))(params, x)
    err = float(jnp.max(jnp.abs(out - ref)))
    assert err < 5e-2, f"max abs err vs reference: {err}"

    print("KERNEL_OK")
</pallas_src>

<mosaic_0001>
module attributes {stable_mosaic.version = 11 : i64} {
  func.func @_conv_block_kernel(%arg0: i32, %arg1: memref<1x68x17x3xbf16, #tpu.memory_space<vmem>>, %arg2: memref<16x3x128xbf16, #tpu.memory_space<vmem>>, %arg3: memref<1x128xf32, #tpu.memory_space<vmem>>, %arg4: memref<1x16x16x128xbf16, #tpu.memory_space<vmem>>, %arg5: memref<16x16x128xf32, #tpu.memory_space<vmem>>) attributes {dimension_semantics = [#tpu.dimension_semantics<parallel>], iteration_bounds = array<i64: 2>, scalar_prefetch = 0 : i64, scratch_operands = 1 : i64, tpu.core_type = #tpu.core_type<tc>, window_params = [{transform_indices = @transform_0, window_bounds = array<i64: 1, 68, 17, 3>}, {pipeline_mode = #tpu.pipeline_mode<synchronous>, transform_indices = @transform_1, window_bounds = array<i64: 16, 3, 128>}, {pipeline_mode = #tpu.pipeline_mode<synchronous>, transform_indices = @transform_2, window_bounds = array<i64: 1, 128>}, {transform_indices = @transform_3, window_bounds = array<i64: 1, 16, 16, 128>}]} {
    %c0_i32 = arith.constant 0 : i32
    %c16_i32 = arith.constant 16 : i32
    %0 = arith.addi %c0_i32, %c16_i32 : i32
    %c1_i32 = arith.constant 1 : i32
    scf.for %arg6 = %c0_i32 to %0 step %c1_i32  : i32 {
      %cst_10 = arith.constant 0.000000e+00 : f32
      %15 = vector.broadcast %cst_10 : f32 to vector<16x128xf32>
      %c0_i32_11 = arith.constant 0 : i32
      %16 = arith.addi %c0_i32_11, %arg6 : i32
      %c0_12 = arith.constant 0 : index
      %17 = arith.index_cast %16 : i32 to index
      %c0_13 = arith.constant 0 : index
      %c0_14 = arith.constant 0 : index
      %18 = vector.load %arg1[%c0_12, %17, %c0_13, %c0_14] : memref<1x68x17x3xbf16, #tpu.memory_space<vmem>>, vector<1x1x16x3xbf16>
      %19 = vector.shape_cast %18 : vector<1x1x16x3xbf16> to vector<16x3xbf16>
      %c0_15 = arith.constant 0 : index
      %c0_16 = arith.constant 0 : index
      %c0_17 = arith.constant 0 : index
      %20 = vector.load %arg2[%c0_15, %c0_16, %c0_17] : memref<16x3x128xbf16, #tpu.memory_space<vmem>>, vector<1x3x128xbf16>
      %21 = vector.shape_cast %20 : vector<1x3x128xbf16> to vector<3x128xbf16>
      %cst_18 = arith.constant dense<0.000000e+00> : vector<16x128xf32>
      %22 = tpu.matmul %19, %21, %cst_18 {dimension_numbers = #tpu.dot_dimension_numbers<[1], [0], [0], [1], [0, 0, 1, 1], [], []>} : vector<16x3xbf16>, vector<3x128xbf16>, vector<16x128xf32> -> vector<16x128xf32>
      %23 = arith.addf %15, %22 : vector<16x128xf32>
      %c17_i32 = arith.constant 17 : i32
      %24 = arith.addi %c17_i32, %arg6 : i32
      %c0_19 = arith.constant 0 : index
      %25 = arith.index_cast %24 : i32 to index
      %c0_20 = arith.constant 0 : index
      %c0_21 = arith.constant 0 : index
      %26 = vector.load %arg1[%c0_19, %25, %c0_20, %c0_21] : memref<1x68x17x3xbf16, #tpu.memory_space<vmem>>, vector<1x1x16x3xbf16>
      %27 = vector.shape_cast %26 : vector<1x1x16x3xbf16> to vector<16x3xbf16>
      %c1 = arith.constant 1 : index
      %c0_22 = arith.constant 0 : index
      %c0_23 = arith.constant 0 : index
      %28 = vector.load %arg2[%c1, %c0_22, %c0_23] : memref<16x3x128xbf16, #tpu.memory_space<vmem>>, vector<1x3x128xbf16>
      %29 = vector.shape_cast %28 : vector<1x3x128xbf16> to vector<3x128xbf16>
      %cst_24 = arith.constant dense<0.000000e+00> : vector<16x128xf32>
      %30 = tpu.matmul %27, %29, %cst_24 {dimension_numbers = #tpu.dot_dimension_numbers<[1], [0], [0], [1], [0, 0, 1, 1], [], []>} : vector<16x3xbf16>, vector<3x128xbf16>, vector<16x128xf32> -> vector<16x128xf32>
      %31 = arith.addf %23, %30 : vector<16x128xf32>
      %c0_i32_25 = arith.constant 0 : i32
      %32 = arith.addi %c0_i32_25, %arg6 : i32
      %c0_26 = arith.constant 0 : index
      %33 = arith.index_cast %32 : i32 to index
      %c1_27 = arith.constant 1 : index
      %c0_28 = arith.constant 0 : index
      %34 = vector.load %arg1[%c0_26, %33, %c1_27, %c0_28] : memref<1x68x17x3xbf16, #tpu.memory_space<vmem>>, vector<1x1x16x3xbf16>
      %35 = vector.shape_cast %34 : vector<1x1x16x3xbf16> to vector<16x3xbf16>
      %c2 = arith.constant 2 : index
      %c0_29 = arith.constant 0 : index
      %c0_30 = arith.constant 0 : index
      %36 = vector.load %arg2[%c2, %c0_29, %c0_30] : memref<16x3x128xbf16, #tpu.memory_space<vmem>>, vector<1x3x128xbf16>
      %37 = vector.shape_cast %36 : vector<1x3x128xbf16> to vector<3x128xbf16>
      %cst_31 = arith.constant dense<0.000000e+00> : vector<16x128xf32>
      %38 = tpu.matmul %35, %37, %cst_31 {dimension_numbers = #tpu.dot_dimension_numbers<[1], [0], [0], [1], [0, 0, 1, 1], [], []>} : vector<16x3xbf16>, vector<3x128xbf16>, vector<16x128xf32> -> vector<16x128xf32>
      %39 = arith.addf %31, %38 : vector<16x128xf32>
      %c17_i32_32 = arith.constant 17 : i32
      %40 = arith.addi %c17_i32_32, %arg6 : i32
      %c0_33 = arith.constant 0 : index
      %41 = arith.index_cast %40 : i32 to index
      %c1_34 = arith.constant 1 : index
      %c0_35 = arith.constant 0 : index
      %42 = vector.load %arg1[%c0_33, %41, %c1_34, %c0_35] : memref<1x68x17x3xbf16, #tpu.memory_space<vmem>>, vector<1x1x16x3xbf16>
      %43 = vector.shape_cast %42 : vector<1x1x16x3xbf16> to vector<16x3xbf16>
      %c3 = arith.constant 3 : index
      %c0_36 = arith.constant 0 : index
      %c0_37 = arith.constant 0 : index
      %44 = vector.load %arg2[%c3, %c0_36, %c0_37] : memref<16x3x128xbf16, #tpu.memory_space<vmem>>, vector<1x3x128xbf16>
      %45 = vector.shape_cast %44 : vector<1x3x128xbf16> to vector<3x128xbf16>
      %cst_38 = arith.constant dense<0.000000e+00> : vector<16x128xf32>
      %46 = tpu.matmul %43, %45, %cst_38 {dimension_numbers = #tpu.dot_dimension_numbers<[1], [0], [0], [1], [0, 0, 1, 1], [], []>} : vector<16x3xbf16>, vector<3x128xbf16>, vector<16x128xf32> -> vector<16x128xf32>
      %47 = arith.addf %39, %46 : vector<16x128xf32>
      %c34_i32 = arith.constant 34 : i32
      %48 = arith.addi %c34_i32, %arg6 : i32
      %c0_39 = arith.constant 0 : index
      %49 = arith.index_cast %48 : i32 to index
      %c0_40 = arith.constant 0 : index
      %c0_41 = arith.constant 0 : index
      %50 = vector.load %arg1[%c0_39, %49, %c0_40, %c0_41] : memref<1x68x17x3xbf16, #tpu.memory_space<vmem>>, vector<1x1x16x3xbf16>
      %51 = vector.shape_cast %50 : vector<1x1x16x3xbf16> to vector<16x3xbf16>
      %c4 = arith.constant 4 : index
      %c0_42 = arith.constant 0 : index
      %c0_43 = arith.constant 0 : index
      %52 = vector.load %arg2[%c4, %c0_42, %c0_43] : memref<16x3x128xbf16, #tpu.memory_space<vmem>>, vector<1x3x128xbf16>
      %53 = vector.shape_cast %52 : vector<1x3x128xbf16> to vector<3x128xbf16>
      %cst_44 = arith.constant dense<0.000000e+00> : vector<16x128xf32>
      %54 = tpu.matmul %51, %53, %cst_44 {dimension_numbers = #tpu.dot_dimension_numbers<[1], [0], [0], [1], [0, 0, 1, 1], [], []>} : vector<16x3xbf16>, vector<3x128xbf16>, vector<16x128xf32> -> vector<16x128xf32>
      %55 = arith.addf %47, %54 : vector<16x128xf32>
      %c51_i32 = arith.constant 51 : i32
      %56 = arith.addi %c51_i32, %arg6 : i32
      %c0_45 = arith.constant 0 : index
      %57 = arith.index_cast %56 : i32 to index
      %c0_46 = arith.constant 0 : index
      %c0_47 = arith.constant 0 : index
      %58 = vector.load %arg1[%c0_45, %57, %c0_46, %c0_47] : memref<1x68x17x3xbf16, #tpu.memory_space<vmem>>, vector<1x1x16x3xbf16>
      %59 = vector.shape_cast %58 : vector<1x1x16x3xbf16> to vector<16x3xbf16>
      %c5 = arith.constant 5 : index
      %c0_48 = arith.constant 0 : index
      %c0_49 = arith.constant 0 : index
      %60 = vector.load %arg2[%c5, %c0_48, %c0_49] : memref<16x3x128xbf16, #tpu.memory_space<vmem>>, vector<1x3x128xbf16>
      %61 = vector.shape_cast %60 : vector<1x3x128xbf16> to vector<3x128xbf16>
      %cst_50 = arith.constant dense<0.000000e+00> : vector<16x128xf32>
      %62 = tpu.matmul %59, %61, %cst_50 {dimension_numbers = #tpu.dot_dimension_numbers<[1], [0], [0], [1], [0, 0, 1, 1], [], []>} : vector<16x3xbf16>, vector<3x128xbf16>, vector<16x128xf32> -> vector<16x128xf32>
      %63 = arith.addf %55, %62 : vector<16x128xf32>
      %c34_i32_51 = arith.constant 34 : i32
      %64 = arith.addi %c34_i32_51, %arg6 : i32
      %c0_52 = arith.constant 0 : index
      %65 = arith.index_cast %64 : i32 to index
      %c1_53 = arith.constant 1 : index
      %c0_54 = arith.constant 0 : index
      %66 = vector.load %arg1[%c0_52, %65, %c1_53, %c0_54] : memref<1x68x17x3xbf16, #tpu.memory_space<vmem>>, vector<1x1x16x3xbf16>
      %67 = vector.shape_cast %66 : vector<1x1x16x3xbf16> to vector<16x3xbf16>
      %c6 = arith.constant 6 : index
      %c0_55 = arith.constant 0 : index
      %c0_56 = arith.constant 0 : index
      %68 = vector.load %arg2[%c6, %c0_55, %c0_56] : memref<16x3x128xbf16, #tpu.memory_space<vmem>>, vector<1x3x128xbf16>
      %69 = vector.shape_cast %68 : vector<1x3x128xbf16> to vector<3x128xbf16>
      %cst_57 = arith.constant dense<0.000000e+00> : vector<16x128xf32>
      %70 = tpu.matmul %67, %69, %cst_57 {dimension_numbers = #tpu.dot_dimension_numbers<[1], [0], [0], [1], [0, 0, 1, 1], [], []>} : vector<16x3xbf16>, vector<3x128xbf16>, vector<16x128xf32> -> vector<16x128xf32>
      %71 = arith.addf %63, %70 : vector<16x128xf32>
      %c51_i32_58 = arith.constant 51 : i32
      %72 = arith.addi %c51_i32_58, %arg6 : i32
      %c0_59 = arith.constant 0 : index
      %73 = arith.index_cast %72 : i32 to index
      %c1_60 = arith.constant 1 : index
      %c0_61 = arith.constant 0 : index
      %74 = vector.load %arg1[%c0_59, %73, %c1_60, %c0_61] : memref<1x68x17x3xbf16, #tpu.memory_space<vmem>>, vector<1x1x16x3xbf16>
      %75 = vector.shape_cast %74 : vector<1x1x16x3xbf16> to vector<16x3xbf16>
      %c7 = arith.constant 7 : index
      %c0_62 = arith.constant 0 : index
      %c0_63 = arith.constant 0 : index
      %76 = vector.load %arg2[%c7, %c0_62, %c0_63] : memref<16x3x128xbf16, #tpu.memory_space<vmem>>, vector<1x3x128xbf16>
      %77 = vector.shape_cast %76 : vector<1x3x128xbf16> to vector<3x128xbf16>
      %cst_64 = arith.constant dense<0.000000e+00> : vector<16x128xf32>
      %78 = tpu.matmul %75, %77, %cst_64 {dimension_numbers = #tpu.dot_dimension_numbers<[1], [0], [0], [1], [0, 0, 1, 1], [], []>} : vector<16x3xbf16>, vector<3x128xbf16>, vector<16x128xf32> -> vector<16x128xf32>
      %79 = arith.addf %71, %78 : vector<16x128xf32>
      %c1_i32_65 = arith.constant 1 : i32
      %80 = arith.addi %c1_i32_65, %arg6 : i32
      %c0_66 = arith.constant 0 : index
      %81 = arith.index_cast %80 : i32 to index
      %c0_67 = arith.constant 0 : index
      %c0_68 = arith.constant 0 : index
      %82 = vector.load %arg1[%c0_66, %81, %c0_67, %c0_68] : memref<1x68x17x3xbf16, #tpu.memory_space<vmem>>, vector<1x1x16x3xbf16>
      %83 = vector.shape_cast %82 : vector<1x1x16x3xbf16> to vector<16x3xbf16>
      %c8 = arith.constant 8 : index
      %c0_69 = arith.constant 0 : index
      %c0_70 = arith.constant 0 : index
      %84 = vector.load %arg2[%c8, %c0_69, %c0_70] : memref<16x3x128xbf16, #tpu.memory_space<vmem>>, vector<1x3x128xbf16>
      %85 = vector.shape_cast %84 : vector<1x3x128xbf16> to vector<3x128xbf16>
      %cst_71 = arith.constant dense<0.000000e+00> : vector<16x128xf32>
      %86 = tpu.matmul %83, %85, %cst_71 {dimension_numbers = #tpu.dot_dimension_numbers<[1], [0], [0], [1], [0, 0, 1, 1], [], []>} : vector<16x3xbf16>, vector<3x128xbf16>, vector<16x128xf32> -> vector<16x128xf32>
      %87 = arith.addf %79, %86 : vector<16x128xf32>
      %c18_i32 = arith.constant 18 : i32
      %88 = arith.addi %c18_i32, %arg6 : i32
      %c0_72 = arith.constant 0 : index
      %89 = arith.index_cast %88 : i32 to index
      %c0_73 = arith.constant 0 : index
      %c0_74 = arith.constant 0 : index
      %90 = vector.load %arg1[%c0_72, %89, %c0_73, %c0_74] : memref<1x68x17x3xbf16, #tpu.memory_space<vmem>>, vector<1x1x16x3xbf16>
      %91 = vector.shape_cast %90 : vector<1x1x16x3xbf16> to vector<16x3xbf16>
      %c9 = arith.constant 9 : index
      %c0_75 = arith.constant 0 : index
      %c0_76 = arith.constant 0 : index
      %92 = vector.load %arg2[%c9, %c0_75, %c0_76] : memref<16x3x128xbf16, #tpu.memory_space<vmem>>, vector<1x3x128xbf16>
      %93 = vector.shape_cast %92 : vector<1x3x128xbf16> to vector<3x128xbf16>
      %cst_77 = arith.constant dense<0.000000e+00> : vector<16x128xf32>
      %94 = tpu.matmul %91, %93, %cst_77 {dimension_numbers = #tpu.dot_dimension_numbers<[1], [0], [0], [1], [0, 0, 1, 1], [], []>} : vector<16x3xbf16>, vector<3x128xbf16>, vector<16x128xf32> -> vector<16x128xf32>
      %95 = arith.addf %87, %94 : vector<16x128xf32>
      %c1_i32_78 = arith.constant 1 : i32
      %96 = arith.addi %c1_i32_78, %arg6 : i32
      %c0_79 = arith.constant 0 : index
      %97 = arith.index_cast %96 : i32 to index
      %c1_80 = arith.constant 1 : index
      %c0_81 = arith.constant 0 : index
      %98 = vector.load %arg1[%c0_79, %97, %c1_80, %c0_81] : memref<1x68x17x3xbf16, #tpu.memory_space<vmem>>, vector<1x1x16x3xbf16>
      %99 = vector.shape_cast %98 : vector<1x1x16x3xbf16> to vector<16x3xbf16>
      %c10 = arith.constant 10 : index
      %c0_82 = arith.constant 0 : index
      %c0_83 = arith.constant 0 : index
      %100 = vector.load %arg2[%c10, %c0_82, %c0_83] : memref<16x3x128xbf16, #tpu.memory_space<vmem>>, vector<1x3x128xbf16>
      %101 = vector.shape_cast %100 : vector<1x3x128xbf16> to vector<3x128xbf16>
      %cst_84 = arith.constant dense<0.000000e+00> : vector<16x128xf32>
      %102 = tpu.matmul %99, %101, %cst_84 {dimension_numbers = #tpu.dot_dimension_numbers<[1], [0], [0], [1], [0, 0, 1, 1], [], []>} : vector<16x3xbf16>, vector<3x128xbf16>, vector<16x128xf32> -> vector<16x128xf32>
      %103 = arith.addf %95, %102 : vector<16x128xf32>
      %c18_i32_85 = arith.constant 18 : i32
      %104 = arith.addi %c18_i32_85, %arg6 : i32
      %c0_86 = arith.constant 0 : index
      %105 = arith.index_cast %104 : i32 to index
      %c1_87 = arith.constant 1 : index
      %c0_88 = arith.constant 0 : index
      %106 = vector.load %arg1[%c0_86, %105, %c1_87, %c0_88] : memref<1x68x17x3xbf16, #tpu.memory_space<vmem>>, vector<1x1x16x3xbf16>
      %107 = vector.shape_cast %106 : vector<1x1x16x3xbf16> to vector<16x3xbf16>
      %c11 = arith.constant 11 : index
      %c0_89 = arith.constant 0 : index
      %c0_90 = arith.constant 0 : index
      %108 = vector.load %arg2[%c11, %c0_89, %c0_90] : memref<16x3x128xbf16, #tpu.memory_space<vmem>>, vector<1x3x128xbf16>
      %109 = vector.shape_cast %108 : vector<1x3x128xbf16> to vector<3x128xbf16>
      %cst_91 = arith.constant dense<0.000000e+00> : vector<16x128xf32>
      %110 = tpu.matmul %107, %109, %cst_91 {dimension_numbers = #tpu.dot_dimension_numbers<[1], [0], [0], [1], [0, 0, 1, 1], [], []>} : vector<16x3xbf16>, vector<3x128xbf16>, vector<16x128xf32> -> vector<16x128xf32>
      %111 = arith.addf %103, %110 : vector<16x128xf32>
      %c35_i32 = arith.constant 35 : i32
      %112 = arith.addi %c35_i32, %arg6 : i32
      %c0_92 = arith.constant 0 : index
      %113 = arith.index_cast %112 : i32 to index
      %c0_93 = arith.constant 0 : index
      %c0_94 = arith.constant 0 : index
      %114 = vector.load %arg1[%c0_92, %113, %c0_93, %c0_94] : memref<1x68x17x3xbf16, #tpu.memory_space<vmem>>, vector<1x1x16x3xbf16>
      %115 = vector.shape_cast %114 : vector<1x1x16x3xbf16> to vector<16x3xbf16>
      %c12 = arith.constant 12 : index
      %c0_95 = arith.constant 0 : index
      %c0_96 = arith.constant 0 : index
      %116 = vector.load %arg2[%c12, %c0_95, %c0_96] : memref<16x3x128xbf16, #tpu.memory_space<vmem>>, vector<1x3x128xbf16>
      %117 = vector.shape_cast %116 : vector<1x3x128xbf16> to vector<3x128xbf16>
      %cst_97 = arith.constant dense<0.000000e+00> : vector<16x128xf32>
      %118 = tpu.matmul %115, %117, %cst_97 {dimension_numbers = #tpu.dot_dimension_numbers<[1], [0], [0], [1], [0, 0, 1, 1], [], []>} : vector<16x3xbf16>, vector<3x128xbf16>, vector<16x128xf32> -> vector<16x128xf32>
      %119 = arith.addf %111, %118 : vector<16x128xf32>
      %c52_i32 = arith.constant 52 : i32
      %120 = arith.addi %c52_i32, %arg6 : i32
      %c0_98 = arith.constant 0 : index
      %121 = arith.index_cast %120 : i32 to index
      %c0_99 = arith.constant 0 : index
      %c0_100 = arith.constant 0 : index
      %122 = vector.load %arg1[%c0_98, %121, %c0_99, %c0_100] : memref<1x68x17x3xbf16, #tpu.memory_space<vmem>>, vector<1x1x16x3xbf16>
      %123 = vector.shape_cast %122 : vector<1x1x16x3xbf16> to vector<16x3xbf16>
      %c13 = arith.constant 13 : index
      %c0_101 = arith.constant 0 : index
      %c0_102 = arith.constant 0 : index
      %124 = vector.load %arg2[%c13, %c0_101, %c0_102] : memref<16x3x128xbf16, #tpu.memory_space<vmem>>, vector<1x3x128xbf16>
      %125 = vector.shape_cast %124 : vector<1x3x128xbf16> to vector<3x128xbf16>
      %cst_103 = arith.constant dense<0.000000e+00> : vector<16x128xf32>
      %126 = tpu.matmul %123, %125, %cst_103 {dimension_numbers = #tpu.dot_dimension_numbers<[1], [0], [0], [1], [0, 0, 1, 1], [], []>} : vector<16x3xbf16>, vector<3x128xbf16>, vector<16x128xf32> -> vector<16x128xf32>
      %127 = arith.addf %119, %126 : vector<16x128xf32>
      %c35_i32_104 = arith.constant 35 : i32
      %128 = arith.addi %c35_i32_104, %arg6 : i32
      %c0_105 = arith.constant 0 : index
      %129 = arith.index_cast %128 : i32 to index
      %c1_106 = arith.constant 1 : index
      %c0_107 = arith.constant 0 : index
      %130 = vector.load %arg1[%c0_105, %129, %c1_106, %c0_107] : memref<1x68x17x3xbf16, #tpu.memory_space<vmem>>, vector<1x1x16x3xbf16>
      %131 = vector.shape_cast %130 : vector<1x1x16x3xbf16> to vector<16x3xbf16>
      %c14 = arith.constant 14 : index
      %c0_108 = arith.constant 0 : index
      %c0_109 = arith.constant 0 : index
      %132 = vector.load %arg2[%c14, %c0_108, %c0_109] : memref<16x3x128xbf16, #tpu.memory_space<vmem>>, vector<1x3x128xbf16>
      %133 = vector.shape_cast %132 : vector<1x3x128xbf16> to vector<3x128xbf16>
      %cst_110 = arith.constant dense<0.000000e+00> : vector<16x128xf32>
      %134 = tpu.matmul %131, %133, %cst_110 {dimension_numbers = #tpu.dot_dimension_numbers<[1], [0], [0], [1], [0, 0, 1, 1], [], []>} : vector<16x3xbf16>, vector<3x128xbf16>, vector<16x128xf32> -> vector<16x128xf32>
      %135 = arith.addf %127, %134 : vector<16x128xf32>
      %c52_i32_111 = arith.constant 52 : i32
      %136 = arith.addi %c52_i32_111, %arg6 : i32
      %c0_112 = arith.constant 0 : index
      %137 = arith.index_cast %136 : i32 to index
      %c1_113 = arith.constant 1 : index
      %c0_114 = arith.constant 0 : index
      %138 = vector.load %arg1[%c0_112, %137, %c1_113, %c0_114] : memref<1x68x17x3xbf16, #tpu.memory_space<vmem>>, vector<1x1x16x3xbf16>
      %139 = vector.shape_cast %138 : vector<1x1x16x3xbf16> to vector<16x3xbf16>
      %c15 = arith.constant 15 : index
      %c0_115 = arith.constant 0 : index
      %c0_116 = arith.constant 0 : index
      %140 = vector.load %arg2[%c15, %c0_115, %c0_116] : memref<16x3x128xbf16, #tpu.memory_space<vmem>>, vector<1x3x128xbf16>
      %141 = vector.shape_cast %140 : vector<1x3x128xbf16> to vector<3x128xbf16>
      %cst_117 = arith.constant dense<0.000000e+00> : vector<16x128xf32>
      %142 = tpu.matmul %139, %141, %cst_117 {dimension_numbers = #tpu.dot_dimension_numbers<[1], [0], [0], [1], [0, 0, 1, 1], [], []>} : vector<16x3xbf16>, vector<3x128xbf16>, vector<16x128xf32> -> vector<16x128xf32>
      %143 = arith.addf %135, %142 : vector<16x128xf32>
      %144 = arith.index_cast %arg6 : i32 to index
      %c0_118 = arith.constant 0 : index
      %c0_119 = arith.constant 0 : index
      %145 = vector.load %arg5[%144, %c0_118, %c0_119] : memref<16x16x128xf32, #tpu.memory_space<vmem>>, vector<1x16x128xf32>
      %146 = vector.shape_cast %145 : vector<1x16x128xf32> to vector<16x128xf32>
      %147 = vector.shape_cast %143 : vector<16x128xf32> to vector<1x16x128xf32>
      tpu.vector_store %arg5[%144, %c0_118, %c0_119], %147 {strides = array<i32>} : memref<16x16x128xf32, #tpu.memory_space<vmem>>, vector<1x16x128xf32>,
    }
    %c16_i32_0 = arith.constant 16 : i32
    %c0 = arith.constant 0 : index
    %c0_1 = arith.constant 0 : index
    %c0_2 = arith.constant 0 : index
    %1 = vector.load %arg5[%c0, %c0_1, %c0_2] : memref<16x16x128xf32, #tpu.memory_space<vmem>>, vector<16x16x128xf32>
    %c0_3 = arith.constant 0 : index
    %c0_4 = arith.constant 0 : index
    %2 = vector.load %arg3[%c0_3, %c0_4] : memref<1x128xf32, #tpu.memory_space<vmem>>, vector<1x128xf32>
    %3 = vector.shape_cast %2 : vector<1x128xf32> to vector<1x1x128xf32>
    %4 = vector.broadcast %3 : vector<1x1x128xf32> to vector<16x16x128xf32>
    %5 = arith.addf %1, %4 : vector<16x16x128xf32>
    %cst = arith.constant 0.000000e+00 : f32
    %6 = vector.broadcast %cst : f32 to vector<16x16x128xf32>
    %7 = arith.cmpf oge, %5, %6 : vector<16x16x128xf32>
    %cst_5 = arith.constant 2.000000e-01 : f32
    %8 = vector.broadcast %cst_5 : f32 to vector<16x16x128xf32>
    %9 = arith.mulf %8, %5 : vector<16x16x128xf32>
    %10 = arith.select %7, %5, %9 : vector<16x16x128xi1>, vector<16x16x128xf32>
    %11 = arith.truncf %10 : vector<16x16x128xf32> to vector<16x16x128xbf16>
    %c0_6 = arith.constant 0 : index
    %c0_7 = arith.constant 0 : index
    %c0_8 = arith.constant 0 : index
    %c0_9 = arith.constant 0 : index
    %12 = vector.load %arg4[%c0_6, %c0_7, %c0_8, %c0_9] : memref<1x16x16x128xbf16, #tpu.memory_space<vmem>>, vector<1x16x16x128xbf16>
    %13 = vector.shape_cast %12 : vector<1x16x16x128xbf16> to vector<16x16x128xbf16>
    %14 = vector.shape_cast %11 : vector<16x16x128xbf16> to vector<1x16x16x128xbf16>
    tpu.vector_store %arg4[%c0_6, %c0_7, %c0_8, %c0_9], %14 {strides = array<i32>} : memref<1x16x16x128xbf16, #tpu.memory_space<vmem>>, vector<1x16x16x128xbf16>,
    return
  }
  func.func @transform_0(%arg0: i32) -> (i32, i32, i32, i32) {
    %c0_i32 = arith.constant 0 : i32
    %c0_i32_0 = arith.constant 0 : i32
    %c0_i32_1 = arith.constant 0 : i32
    %c0_i32_2 = arith.constant 0 : i32
    return %arg0, %c0_i32, %c0_i32_0, %c0_i32_1 : i32, i32, i32, i32
  }
  func.func @transform_1(%arg0: i32) -> (i32, i32, i32) {
    %c0_i32 = arith.constant 0 : i32
    %c0_i32_0 = arith.constant 0 : i32
    %c0_i32_1 = arith.constant 0 : i32
    %c0_i32_2 = arith.constant 0 : i32
    return %c0_i32, %c0_i32_0, %c0_i32_1 : i32, i32, i32
  }
  func.func @transform_2(%arg0: i32) -> (i32, i32) {
    %c0_i32 = arith.constant 0 : i32
    %c0_i32_0 = arith.constant 0 : i32
    %c0_i32_1 = arith.constant 0 : i32
    return %c0_i32, %c0_i32_0 : i32, i32
  }
  func.func @transform_3(%arg0: i32) -> (i32, i32, i32, i32) {
    %c0_i32 = arith.constant 0 : i32
    %c0_i32_0 = arith.constant 0 : i32
    %c0_i32_1 = arith.constant 0 : i32
    %c0_i32_2 = arith.constant 0 : i32
    return %arg0, %c0_i32, %c0_i32_0, %c0_i32_1 : i32, i32, i32, i32
  }
}

module attributes {stable_mosaic.version = 11 : i64} {
  func.func @_conv_block_kernel(%arg0: i32, %arg1: memref<1x36x9x8xbf16, #tpu.memory_space<vmem>>, %arg2: memref<16x8x128xbf16, #tpu.memory_space<vmem>>, %arg3: memref<1x128xf32, #tpu.memory_space<vmem>>, %arg4: memref<1x8x8x128xbf16, #tpu.memory_space<vmem>>, %arg5: memref<8x8x128xf32, #tpu.memory_space<vmem>>) attributes {dimension_semantics = [#tpu.dimension_semantics<parallel>], iteration_bounds = array<i64: 2>, scalar_prefetch = 0 : i64, scratch_operands = 1 : i64, tpu.core_type = #tpu.core_type<tc>, window_params = [{transform_indices = @transform_0, window_bounds = array<i64: 1, 36, 9, 8>}, {pipeline_mode = #tpu.pipeline_mode<synchronous>, transform_indices = @transform_1, window_bounds = array<i64: 16, 8, 128>}, {pipeline_mode = #tpu.pipeline_mode<synchronous>, transform_indices = @transform_2, window_bounds = array<i64: 1, 128>}, {transform_indices = @transform_3, window_bounds = array<i64: 1, 8, 8, 128>}]} {
    %c0_i32 = arith.constant 0 : i32
    %c8_i32 = arith.constant 8 : i32
    %0 = arith.addi %c0_i32, %c8_i32 : i32
    %c1_i32 = arith.constant 1 : i32
    scf.for %arg6 = %c0_i32 to %0 step %c1_i32  : i32 {
      %cst_17 = arith.constant 0.000000e+00 : f32
      %35 = vector.broadcast %cst_17 : f32 to vector<8x128xf32>
      %c0_i32_18 = arith.constant 0 : i32
      %36 = arith.addi %c0_i32_18, %arg6 : i32
      %c0_19 = arith.constant 0 : index
      %37 = arith.index_cast %36 : i32 to index
      %c0_20 = arith.constant 0 : index
      %c0_21 = arith.constant 0 : index
      %38 = vector.load %arg1[%c0_19, %37, %c0_20, %c0_21] : memref<1x36x9x8xbf16, #tpu.memory_space<vmem>>, vector<1x1x8x8xbf16>
      %39 = vector.shape_cast %38 : vector<1x1x8x8xbf16> to vector<8x8xbf16>
      %c0_22 = arith.constant 0 : index
      %c0_23 = arith.constant 0 : index
      %c0_24 = arith.constant 0 : index
      %40 = vector.load %arg2[%c0_22, %c0_23, %c0_24] : memref<16x8x128xbf16, #tpu.memory_space<vmem>>, vector<1x8x128xbf16>
      %41 = vector.shape_cast %40 : vector<1x8x128xbf16> to vector<8x128xbf16>
      %cst_25 = arith.constant dense<0.000000e+00> : vector<8x128xf32>
      %42 = tpu.matmul %39, %41, %cst_25 {dimension_numbers = #tpu.dot_dimension_numbers<[1], [0], [0], [1], [0, 0, 1, 1], [], []>} : vector<8x8xbf16>, vector<8x128xbf16>, vector<8x128xf32> -> vector<8x128xf32>
      %43 = arith.addf %35, %42 : vector<8x128xf32>
      %c9_i32 = arith.constant 9 : i32
      %44 = arith.addi %c9_i32, %arg6 : i32
      %c0_26 = arith.constant 0 : index
      %45 = arith.index_cast %44 : i32 to index
      %c0_27 = arith.constant 0 : index
      %c0_28 = arith.constant 0 : index
      %46 = vector.load %arg1[%c0_26, %45, %c0_27, %c0_28] : memref<1x36x9x8xbf16, #tpu.memory_space<vmem>>, vector<1x1x8x8xbf16>
      %47 = vector.shape_cast %46 : vector<1x1x8x8xbf16> to vector<8x8xbf16>
      %c1 = arith.constant 1 : index
      %c0_29 = arith.constant 0 : index
      %c0_30 = arith.constant 0 : index
      %48 = vector.load %arg2[%c1, %c0_29, %c0_30] : memref<16x8x128xbf16, #tpu.memory_space<vmem>>, vector<1x8x128xbf16>
      %49 = vector.shape_cast %48 : vector<1x8x128xbf16> to vector<8x128xbf16>
      %cst_31 = arith.constant dense<0.000000e+00> : vector<8x128xf32>
      %50 = tpu.matmul %47, %49, %cst_31 {dimension_numbers = #tpu.dot_dimension_numbers<[1], [0], [0], [1], [0, 0, 1, 1], [], []>} : vector<8x8xbf16>, vector<8x128xbf16>, vector<8x128xf32> -> vector<8x128xf32>
      %51 = arith.addf %43, %50 : vector<8x128xf32>
      %c0_i32_32 = arith.constant 0 : i32
      %52 = arith.addi %c0_i32_32, %arg6 : i32
      %c0_33 = arith.constant 0 : index
      %53 = arith.index_cast %52 : i32 to index
      %c1_34 = arith.constant 1 : index
      %c0_35 = arith.constant 0 : index
      %54 = vector.load %arg1[%c0_33, %53, %c1_34, %c0_35] : memref<1x36x9x8xbf16, #tpu.memory_space<vmem>>, vector<1x1x8x8xbf16>
      %55 = vector.shape_cast %54 : vector<1x1x8x8xbf16> to vector<8x8xbf16>
      %c2 = arith.constant 2 : index
      %c0_36 = arith.constant 0 : index
      %c0_37 = arith.constant 0 : index
      %56 = vector.load %arg2[%c2, %c0_36, %c0_37] : memref<16x8x128xbf16, #tpu.memory_space<vmem>>, vector<1x8x128xbf16>
      %57 = vector.shape_cast %56 : vector<1x8x128xbf16> to vector<8x128xbf16>
      %cst_38 = arith.constant dense<0.000000e+00> : vector<8x128xf32>
      %58 = tpu.matmul %55, %57, %cst_38 {dimension_numbers = #tpu.dot_dimension_numbers<[1], [0], [0], [1], [0, 0, 1, 1], [], []>} : vector<8x8xbf16>, vector<8x128xbf16>, vector<8x128xf32> -> vector<8x128xf32>
      %59 = arith.addf %51, %58 : vector<8x128xf32>
      %c9_i32_39 = arith.constant 9 : i32
      %60 = arith.addi %c9_i32_39, %arg6 : i32
      %c0_40 = arith.constant 0 : index
      %61 = arith.index_cast %60 : i32 to index
      %c1_41 = arith.constant 1 : index
      %c0_42 = arith.constant 0 : index
      %62 = vector.load %arg1[%c0_40, %61, %c1_41, %c0_42] : memref<1x36x9x8xbf16, #tpu.memory_space<vmem>>, vector<1x1x8x8xbf16>
      %63 = vector.shape_cast %62 : vector<1x1x8x8xbf16> to vector<8x8xbf16>
      %c3 = arith.constant 3 : index
      %c0_43 = arith.constant 0 : index
      %c0_44 = arith.constant 0 : index
      %64 = vector.load %arg2[%c3, %c0_43, %c0_44] : memref<16x8x128xbf16, #tpu.memory_space<vmem>>, vector<1x8x128xbf16>
      %65 = vector.shape_cast %64 : vector<1x8x128xbf16> to vector<8x128xbf16>
      %cst_45 = arith.constant dense<0.000000e+00> : vector<8x128xf32>
      %66 = tpu.matmul %63, %65, %cst_45 {dimension_numbers = #tpu.dot_dimension_numbers<[1], [0], [0], [1], [0, 0, 1, 1], [], []>} : vector<8x8xbf16>, vector<8x128xbf16>, vector<8x128xf32> -> vector<8x128xf32>
      %67 = arith.addf %59, %66 : vector<8x128xf32>
      %c18_i32 = arith.constant 18 : i32
      %68 = arith.addi %c18_i32, %arg6 : i32
      %c0_46 = arith.constant 0 : index
      %69 = arith.index_cast %68 : i32 to index
      %c0_47 = arith.constant 0 : index
      %c0_48 = arith.constant 0 : index
      %70 = vector.load %arg1[%c0_46, %69, %c0_47, %c0_48] : memref<1x36x9x8xbf16, #tpu.memory_space<vmem>>, vector<1x1x8x8xbf16>
      %71 = vector.shape_cast %70 : vector<1x1x8x8xbf16> to vector<8x8xbf16>
      %c4 = arith.constant 4 : index
      %c0_49 = arith.constant 0 : index
      %c0_50 = arith.constant 0 : index
      %72 = vector.load %arg2[%c4, %c0_49, %c0_50] : memref<16x8x128xbf16, #tpu.memory_space<vmem>>, vector<1x8x128xbf16>
      %73 = vector.shape_cast %72 : vector<1x8x128xbf16> to vector<8x128xbf16>
      %cst_51 = arith.constant dense<0.000000e+00> : vector<8x128xf32>
      %74 = tpu.matmul %71, %73, %cst_51 {dimension_numbers = #tpu.dot_dimension_numbers<[1], [0], [0], [1], [0, 0, 1, 1], [], []>} : vector<8x8xbf16>, vector<8x128xbf16>, vector<8x128xf32> -> vector<8x128xf32>
      %75 = arith.addf %67, %74 : vector<8x128xf32>
      %c27_i32 = arith.constant 27 : i32
      %76 = arith.addi %c27_i32, %arg6 : i32
      %c0_52 = arith.constant 0 : index
      %77 = arith.index_cast %76 : i32 to index
      %c0_53 = arith.constant 0 : index
      %c0_54 = arith.constant 0 : index
      %78 = vector.load %arg1[%c0_52, %77, %c0_53, %c0_54] : memref<1x36x9x8xbf16, #tpu.memory_space<vmem>>, vector<1x1x8x8xbf16>
      %79 = vector.shape_cast %78 : vector<1x1x8x8xbf16> to vector<8x8xbf16>
      %c5 = arith.constant 5 : index
      %c0_55 = arith.constant 0 : index
      %c0_56 = arith.constant 0 : index
      %80 = vector.load %arg2[%c5, %c0_55, %c0_56] : memref<16x8x128xbf16, #tpu.memory_space<vmem>>, vector<1x8x128xbf16>
      %81 = vector.shape_cast %80 : vector<1x8x128xbf16> to vector<8x128xbf16>
      %cst_57 = arith.constant dense<0.000000e+00> : vector<8x128xf32>
      %82 = tpu.matmul %79, %81, %cst_57 {dimension_numbers = #tpu.dot_dimension_numbers<[1], [0], [0], [1], [0, 0, 1, 1], [], []>} : vector<8x8xbf16>, vector<8x128xbf16>, vector<8x128xf32> -> vector<8x128xf32>
      %83 = arith.addf %75, %82 : vector<8x128xf32>
      %c18_i32_58 = arith.constant 18 : i32
      %84 = arith.addi %c18_i32_58, %arg6 : i32
      %c0_59 = arith.constant 0 : index
      %85 = arith.index_cast %84 : i32 to index
      %c1_60 = arith.constant 1 : index
      %c0_61 = arith.constant 0 : index
      %86 = vector.load %arg1[%c0_59, %85, %c1_60, %c0_61] : memref<1x36x9x8xbf16, #tpu.memory_space<vmem>>, vector<1x1x8x8xbf16>
      %87 = vector.shape_cast %86 : vector<1x1x8x8xbf16> to vector<8x8xbf16>
      %c6 = arith.constant 6 : index
      %c0_62 = arith.constant 0 : index
      %c0_63 = arith.constant 0 : index
      %88 = vector.load %arg2[%c6, %c0_62, %c0_63] : memref<16x8x128xbf16, #tpu.memory_space<vmem>>, vector<1x8x128xbf16>
      %89 = vector.shape_cast %88 : vector<1x8x128xbf16> to vector<8x128xbf16>
      %cst_64 = arith.constant dense<0.000000e+00> : vector<8x128xf32>
      %90 = tpu.matmul %87, %89, %cst_64 {dimension_numbers = #tpu.dot_dimension_numbers<[1], [0], [0], [1], [0, 0, 1, 1], [], []>} : vector<8x8xbf16>, vector<8x128xbf16>, vector<8x128xf32> -> vector<8x128xf32>
      %91 = arith.addf %83, %90 : vector<8x128xf32>
      %c27_i32_65 = arith.constant 27 : i32
      %92 = arith.addi %c27_i32_65, %arg6 : i32
      %c0_66 = arith.constant 0 : index
      %93 = arith.index_cast %92 : i32 to index
      %c1_67 = arith.constant 1 : index
      %c0_68 = arith.constant 0 : index
      %94 = vector.load %arg1[%c0_66, %93, %c1_67, %c0_68] : memref<1x36x9x8xbf16, #tpu.memory_space<vmem>>, vector<1x1x8x8xbf16>
      %95 = vector.shape_cast %94 : vector<1x1x8x8xbf16> to vector<8x8xbf16>
      %c7 = arith.constant 7 : index
      %c0_69 = arith.constant 0 : index
      %c0_70 = arith.constant 0 : index
      %96 = vector.load %arg2[%c7, %c0_69, %c0_70] : memref<16x8x128xbf16, #tpu.memory_space<vmem>>, vector<1x8x128xbf16>
      %97 = vector.shape_cast %96 : vector<1x8x128xbf16> to vector<8x128xbf16>
      %cst_71 = arith.constant dense<0.000000e+00> : vector<8x128xf32>
      %98 = tpu.matmul %95, %97, %cst_71 {dimension_numbers = #tpu.dot_dimension_numbers<[1], [0], [0], [1], [0, 0, 1, 1], [], []>} : vector<8x8xbf16>, vector<8x128xbf16>, vector<8x128xf32> -> vector<8x128xf32>
      %99 = arith.addf %91, %98 : vector<8x128xf32>
      %c1_i32_72 = arith.constant 1 : i32
      %100 = arith.addi %c1_i32_72, %arg6 : i32
      %c0_73 = arith.constant 0 : index
      %101 = arith.index_cast %100 : i32 to index
      %c0_74 = arith.constant 0 : index
      %c0_75 = arith.constant 0 : index
      %102 = vector.load %arg1[%c0_73, %101, %c0_74, %c0_75] : memref<1x36x9x8xbf16, #tpu.memory_space<vmem>>, vector<1x1x8x8xbf16>
      %103 = vector.shape_cast %102 : vector<1x1x8x8xbf16> to vector<8x8xbf16>
      %c8 = arith.constant 8 : index
      %c0_76 = arith.constant 0 : index
      %c0_77 = arith.constant 0 : index
      %104 = vector.load %arg2[%c8, %c0_76, %c0_77] : memref<16x8x128xbf16, #tpu.memory_space<vmem>>, vector<1x8x128xbf16>
      %105 = vector.shape_cast %104 : vector<1x8x128xbf16> to vector<8x128xbf16>
      %cst_78 = arith.constant dense<0.000000e+00> : vector<8x128xf32>
      %106 = tpu.matmul %103, %105, %cst_78 {dimension_numbers = #tpu.dot_dimension_numbers<[1], [0], [0], [1], [0, 0, 1, 1], [], []>} : vector<8x8xbf16>, vector<8x128xbf16>, vector<8x128xf32> -> vector<8x128xf32>
      %107 = arith.addf %99, %106 : vector<8x128xf32>
      %c10_i32 = arith.constant 10 : i32
      %108 = arith.addi %c10_i32, %arg6 : i32
      %c0_79 = arith.constant 0 : index
      %109 = arith.index_cast %108 : i32 to index
      %c0_80 = arith.constant 0 : index
      %c0_81 = arith.constant 0 : index
      %110 = vector.load %arg1[%c0_79, %109, %c0_80, %c0_81] : memref<1x36x9x8xbf16, #tpu.memory_space<vmem>>, vector<1x1x8x8xbf16>
      %111 = vector.shape_cast %110 : vector<1x1x8x8xbf16> to vector<8x8xbf16>
      %c9 = arith.constant 9 : index
      %c0_82 = arith.constant 0 : index
      %c0_83 = arith.constant 0 : index
      %112 = vector.load %arg2[%c9, %c0_82, %c0_83] : memref<16x8x128xbf16, #tpu.memory_space<vmem>>, vector<1x8x128xbf16>
      %113 = vector.shape_cast %112 : vector<1x8x128xbf16> to vector<8x128xbf16>
      %cst_84 = arith.constant dense<0.000000e+00> : vector<8x128xf32>
      %114 = tpu.matmul %111, %113, %cst_84 {dimension_numbers = #tpu.dot_dimension_numbers<[1], [0], [0], [1], [0, 0, 1, 1], [], []>} : vector<8x8xbf16>, vector<8x128xbf16>, vector<8x128xf32> -> vector<8x128xf32>
      %115 = arith.addf %107, %114 : vector<8x128xf32>
      %c1_i32_85 = arith.constant 1 : i32
      %116 = arith.addi %c1_i32_85, %arg6 : i32
      %c0_86 = arith.constant 0 : index
      %117 = arith.index_cast %116 : i32 to index
      %c1_87 = arith.constant 1 : index
      %c0_88 = arith.constant 0 : index
      %118 = vector.load %arg1[%c0_86, %117, %c1_87, %c0_88] : memref<1x36x9x8xbf16, #tpu.memory_space<vmem>>, vector<1x1x8x8xbf16>
      %119 = vector.shape_cast %118 : vector<1x1x8x8xbf16> to vector<8x8xbf16>
      %c10 = arith.constant 10 : index
      %c0_89 = arith.constant 0 : index
      %c0_90 = arith.constant 0 : index
      %120 = vector.load %arg2[%c10, %c0_89, %c0_90] : memref<16x8x128xbf16, #tpu.memory_space<vmem>>, vector<1x8x128xbf16>
      %121 = vector.shape_cast %120 : vector<1x8x128xbf16> to vector<8x128xbf16>
      %cst_91 = arith.constant dense<0.000000e+00> : vector<8x128xf32>
      %122 = tpu.matmul %119, %121, %cst_91 {dimension_numbers = #tpu.dot_dimension_numbers<[1], [0], [0], [1], [0, 0, 1, 1], [], []>} : vector<8x8xbf16>, vector<8x128xbf16>, vector<8x128xf32> -> vector<8x128xf32>
      %123 = arith.addf %115, %122 : vector<8x128xf32>
      %c10_i32_92 = arith.constant 10 : i32
      %124 = arith.addi %c10_i32_92, %arg6 : i32
      %c0_93 = arith.constant 0 : index
      %125 = arith.index_cast %124 : i32 to index
      %c1_94 = arith.constant 1 : index
      %c0_95 = arith.constant 0 : index
      %126 = vector.load %arg1[%c0_93, %125, %c1_94, %c0_95] : memref<1x36x9x8xbf16, #tpu.memory_space<vmem>>, vector<1x1x8x8xbf16>
      %127 = vector.shape_cast %126 : vector<1x1x8x8xbf16> to vector<8x8xbf16>
      %c11 = arith.constant 11 : index
      %c0_96 = arith.constant 0 : index
      %c0_97 = arith.constant 0 : index
      %128 = vector.load %arg2[%c11, %c0_96, %c0_97] : memref<16x8x128xbf16, #tpu.memory_space<vmem>>, vector<1x8x128xbf16>
      %129 = vector.shape_cast %128 : vector<1x8x128xbf16> to vector<8x128xbf16>
      %cst_98 = arith.constant dense<0.000000e+00> : vector<8x128xf32>
      %130 = tpu.matmul %127, %129, %cst_98 {dimension_numbers = #tpu.dot_dimension_numbers<[1], [0], [0], [1], [0, 0, 1, 1], [], []>} : vector<8x8xbf16>, vector<8x128xbf16>, vector<8x128xf32> -> vector<8x128xf32>
      %131 = arith.addf %123, %130 : vector<8x128xf32>
      %c19_i32 = arith.constant 19 : i32
      %132 = arith.addi %c19_i32, %arg6 : i32
      %c0_99 = arith.constant 0 : index
      %133 = arith.index_cast %132 : i32 to index
      %c0_100 = arith.constant 0 : index
      %c0_101 = arith.constant 0 : index
      %134 = vector.load %arg1[%c0_99, %133, %c0_100, %c0_101] : memref<1x36x9x8xbf16, #tpu.memory_space<vmem>>, vector<1x1x8x8xbf16>
      %135 = vector.shape_cast %134 : vector<1x1x8x8xbf16> to vector<8x8xbf16>
      %c12 = arith.constant 12 : index
      %c0_102 = arith.constant 0 : index
      %c0_103 = arith.constant 0 : index
      %136 = vector.load %arg2[%c12, %c0_102, %c0_103] : memref<16x8x128xbf16, #tpu.memory_space<vmem>>, vector<1x8x128xbf16>
      %137 = vector.shape_cast %136 : vector<1x8x128xbf16> to vector<8x128xbf16>
      %cst_104 = arith.constant dense<0.000000e+00> : vector<8x128xf32>
      %138 = tpu.matmul %135, %137, %cst_104 {dimension_numbers = #tpu.dot_dimension_numbers<[1], [0], [0], [1], [0, 0, 1, 1], [], []>} : vector<8x8xbf16>, vector<8x128xbf16>, vector<8x128xf32> -> vector<8x128xf32>
      %139 = arith.addf %131, %138 : vector<8x128xf32>
      %c28_i32 = arith.constant 28 : i32
      %140 = arith.addi %c28_i32, %arg6 : i32
      %c0_105 = arith.constant 0 : index
      %141 = arith.index_cast %140 : i32 to index
      %c0_106 = arith.constant 0 : index
      %c0_107 = arith.constant 0 : index
      %142 = vector.load %arg1[%c0_105, %141, %c0_106, %c0_107] : memref<1x36x9x8xbf16, #tpu.memory_space<vmem>>, vector<1x1x8x8xbf16>
      %143 = vector.shape_cast %142 : vector<1x1x8x8xbf16> to vector<8x8xbf16>
      %c13 = arith.constant 13 : index
      %c0_108 = arith.constant 0 : index
      %c0_109 = arith.constant 0 : index
      %144 = vector.load %arg2[%c13, %c0_108, %c0_109] : memref<16x8x128xbf16, #tpu.memory_space<vmem>>, vector<1x8x128xbf16>
      %145 = vector.shape_cast %144 : vector<1x8x128xbf16> to vector<8x128xbf16>
      %cst_110 = arith.constant dense<0.000000e+00> : vector<8x128xf32>
      %146 = tpu.matmul %143, %145, %cst_110 {dimension_numbers = #tpu.dot_dimension_numbers<[1], [0], [0], [1], [0, 0, 1, 1], [], []>} : vector<8x8xbf16>, vector<8x128xbf16>, vector<8x128xf32> -> vector<8x128xf32>
      %147 = arith.addf %139, %146 : vector<8x128xf32>
      %c19_i32_111 = arith.constant 19 : i32
      %148 = arith.addi %c19_i32_111, %arg6 : i32
      %c0_112 = arith.constant 0 : index
      %149 = arith.index_cast %148 : i32 to index
      %c1_113 = arith.constant 1 : index
      %c0_114 = arith.constant 0 : index
      %150 = vector.load %arg1[%c0_112, %149, %c1_113, %c0_114] : memref<1x36x9x8xbf16, #tpu.memory_space<vmem>>, vector<1x1x8x8xbf16>
      %151 = vector.shape_cast %150 : vector<1x1x8x8xbf16> to vector<8x8xbf16>
      %c14 = arith.constant 14 : index
      %c0_115 = arith.constant 0 : index
      %c0_116 = arith.constant 0 : index
      %152 = vector.load %arg2[%c14, %c0_115, %c0_116] : memref<16x8x128xbf16, #tpu.memory_space<vmem>>, vector<1x8x128xbf16>
      %153 = vector.shape_cast %152 : vector<1x8x128xbf16> to vector<8x128xbf16>
      %cst_117 = arith.constant dense<0.000000e+00> : vector<8x128xf32>
      %154 = tpu.matmul %151, %153, %cst_117 {dimension_numbers = #tpu.dot_dimension_numbers<[1], [0], [0], [1], [0, 0, 1, 1], [], []>} : vector<8x8xbf16>, vector<8x128xbf16>, vector<8x128xf32> -> vector<8x128xf32>
      %155 = arith.addf %147, %154 : vector<8x128xf32>
      %c28_i32_118 = arith.constant 28 : i32
      %156 = arith.addi %c28_i32_118, %arg6 : i32
      %c0_119 = arith.constant 0 : index
      %157 = arith.index_cast %156 : i32 to index
      %c1_120 = arith.constant 1 : index
      %c0_121 = arith.constant 0 : index
      %158 = vector.load %arg1[%c0_119, %157, %c1_120, %c0_121] : memref<1x36x9x8xbf16, #tpu.memory_space<vmem>>, vector<1x1x8x8xbf16>
      %159 = vector.shape_cast %158 : vector<1x1x8x8xbf16> to vector<8x8xbf16>
      %c15 = arith.constant 15 : index
      %c0_122 = arith.constant 0 : index
      %c0_123 = arith.constant 0 : index
      %160 = vector.load %arg2[%c15, %c0_122, %c0_123] : memref<16x8x128xbf16, #tpu.memory_space<vmem>>, vector<1x8x128xbf16>
      %161 = vector.shape_cast %160 : vector<1x8x128xbf16> to vector<8x128xbf16>
      %cst_124 = arith.constant dense<0.000000e+00> : vector<8x128xf32>
      %162 = tpu.matmul %159, %161, %cst_124 {dimension_numbers = #tpu.dot_dimension_numbers<[1], [0], [0], [1], [0, 0, 1, 1], [], []>} : vector<8x8xbf16>, vector<8x128xbf16>, vector<8x128xf32> -> vector<8x128xf32>
      %163 = arith.addf %155, %162 : vector<8x128xf32>
      %164 = arith.index_cast %arg6 : i32 to index
      %c0_125 = arith.constant 0 : index
      %c0_126 = arith.constant 0 : index
      %165 = vector.load %arg5[%164, %c0_125, %c0_126] : memref<8x8x128xf32, #tpu.memory_space<vmem>>, vector<1x8x128xf32>
      %166 = vector.shape_cast %165 : vector<1x8x128xf32> to vector<8x128xf32>
      %167 = vector.shape_cast %163 : vector<8x128xf32> to vector<1x8x128xf32>
      tpu.vector_store %arg5[%164, %c0_125, %c0_126], %167 {strides = array<i32>} : memref<8x8x128xf32, #tpu.memory_space<vmem>>, vector<1x8x128xf32>,
    }
    %c8_i32_0 = arith.constant 8 : i32
    %c0 = arith.constant 0 : index
    %c0_1 = arith.constant 0 : index
    %c0_2 = arith.constant 0 : index
    %1 = vector.load %arg5[%c0, %c0_1, %c0_2] : memref<8x8x128xf32, #tpu.memory_space<vmem>>, vector<8x8x128xf32>
    %c0_3 = arith.constant 0 : index
    %c0_4 = arith.constant 0 : index
    %2 = vector.load %arg3[%c0_3, %c0_4] : memref<1x128xf32, #tpu.memory_space<vmem>>, vector<1x128xf32>
    %3 = vector.shape_cast %2 : vector<1x128xf32> to vector<1x1x128xf32>
    %4 = vector.broadcast %3 : vector<1x1x128xf32> to vector<8x8x128xf32>
    %5 = arith.addf %1, %4 : vector<8x8x128xf32>
    %cst = arith.constant dense<0.000000e+00> : vector<8x128xf32>
    %6 = vector.multi_reduction <add>, %5, %cst [1] : vector<8x8x128xf32> to vector<8x128xf32>
    %7 = vector.shape_cast %6 : vector<8x128xf32> to vector<8x1x128xf32>
    %cst_5 = arith.constant dense<0.000000e+00> : vector<1x128xf32>
    %8 = vector.multi_reduction <add>, %7, %cst_5 [0] : vector<8x1x128xf32> to vector<1x128xf32>
    %9 = vector.shape_cast %8 : vector<1x128xf32> to vector<1x1x128xf32>
    %cst_6 = arith.constant 1.562500e-02 : f32
    %10 = vector.broadcast %cst_6 : f32 to vector<1x1x128xf32>
    %11 = arith.mulf %9, %10 : vector<1x1x128xf32>
    %12 = vector.broadcast %11 : vector<1x1x128xf32> to vector<8x8x128xf32>
    %13 = arith.subf %5, %12 : vector<8x8x128xf32>
    %14 = arith.mulf %13, %13 : vector<8x8x128xf32>
    %cst_7 = arith.constant dense<0.000000e+00> : vector<8x128xf32>
    %15 = vector.multi_reduction <add>, %14, %cst_7 [1] : vector<8x8x128xf32> to vector<8x128xf32>
    %16 = vector.shape_cast %15 : vector<8x128xf32> to vector<8x1x128xf32>
    %cst_8 = arith.constant dense<0.000000e+00> : vector<1x128xf32>
    %17 = vector.multi_reduction <add>, %16, %cst_8 [0] : vector<8x1x128xf32> to vector<1x128xf32>
    %18 = vector.shape_cast %17 : vector<1x128xf32> to vector<1x1x128xf32>
    %cst_9 = arith.constant 1.562500e-02 : f32
    %19 = vector.broadcast %cst_9 : f32 to vector<1x1x128xf32>
    %20 = arith.mulf %18, %19 : vector<1x1x128xf32>
    %cst_10 = arith.constant 9.99999974E-6 : f32
    %21 = vector.broadcast %cst_10 : f32 to vector<1x1x128xf32>
    %22 = arith.addf %20, %21 : vector<1x1x128xf32>
    %23 = math.rsqrt %22 : vector<1x1x128xf32>
    %24 = vector.broadcast %23 : vector<1x1x128xf32> to vector<8x8x128xf32>
    %25 = arith.mulf %13, %24 : vector<8x8x128xf32>
    %cst_11 = arith.constant 0.000000e+00 : f32
    %26 = vector.broadcast %cst_11 : f32 to vector<8x8x128xf32>
    %27 = arith.cmpf oge, %25, %26 : vector<8x8x128xf32>
    %cst_12 = arith.constant 2.000000e-01 : f32
    %28 = vector.broadcast %cst_12 : f32 to vector<8x8x128xf32>
    %29 = arith.mulf %28, %25 : vector<8x8x128xf32>
    %30 = arith.select %27, %25, %29 : vector<8x8x128xi1>, vector<8x8x128xf32>
    %31 = arith.truncf %30 : vector<8x8x128xf32> to vector<8x8x128xbf16>
    %c0_13 = arith.constant 0 : index
    %c0_14 = arith.constant 0 : index
    %c0_15 = arith.constant 0 : index
    %c0_16 = arith.constant 0 : index
    %32 = vector.load %arg4[%c0_13, %c0_14, %c0_15, %c0_16] : memref<1x8x8x128xbf16, #tpu.memory_space<vmem>>, vector<1x8x8x128xbf16>
    %33 = vector.shape_cast %32 : vector<1x8x8x128xbf16> to vector<8x8x128xbf16>
    %34 = vector.shape_cast %31 : vector<8x8x128xbf16> to vector<1x8x8x128xbf16>
    tpu.vector_store %arg4[%c0_13, %c0_14, %c0_15, %c0_16], %34 {strides = array<i32>} : memref<1x8x8x128xbf16, #tpu.memory_space<vmem>>, vector<1x8x8x128xbf16>,
    return
  }
  func.func @transform_0(%arg0: i32) -> (i32, i32, i32, i32) {
    %c0_i32 = arith.constant 0 : i32
    %c0_i32_0 = arith.constant 0 : i32
    %c0_i32_1 = arith.constant 0 : i32
    %c0_i32_2 = arith.constant 0 : i32
    return %arg0, %c0_i32, %c0_i32_0, %c0_i32_1 : i32, i32, i32, i32
  }
  func.func @transform_1(%arg0: i32) -> (i32, i32, i32) {
    %c0_i32 = arith.constant 0 : i32
    %c0_i32_0 = arith.constant 0 : i32
    %c0_i32_1 = arith.constant 0 : i32
    %c0_i32_2 = arith.constant 0 : i32
    return %c0_i32, %c0_i32_0, %c0_i32_1 : i32, i32, i32
  }
  func.func @transform_2(%arg0: i32) -> (i32, i32) {
    %c0_i32 = arith.constant 0 : i32
    %c0_i32_0 = arith.constant 0 : i32
    %c0_i32_1 = arith.constant 0 : i32
    return %c0_i32, %c0_i32_0 : i32, i32
  }
  func.func @transform_3(%arg0: i32) -> (i32, i32, i32, i32) {
    %c0_i32 = arith.constant 0 : i32
    %c0_i32_0 = arith.constant 0 : i32
    %c0_i32_1 = arith.constant 0 : i32
    %c0_i32_2 = arith.constant 0 : i32
    return %arg0, %c0_i32, %c0_i32_0, %c0_i32_1 : i32, i32, i32, i32
  }
}

module attributes {stable_mosaic.version = 11 : i64} {
  func.func @_conv_block_kernel(%arg0: i32, %arg1: memref<1x20x5x16xbf16, #tpu.memory_space<vmem>>, %arg2: memref<16x16x128xbf16, #tpu.memory_space<vmem>>, %arg3: memref<1x128xf32, #tpu.memory_space<vmem>>, %arg4: memref<1x4x4x128xbf16, #tpu.memory_space<vmem>>, %arg5: memref<4x4x128xf32, #tpu.memory_space<vmem>>) attributes {dimension_semantics = [#tpu.dimension_semantics<parallel>], iteration_bounds = array<i64: 2>, scalar_prefetch = 0 : i64, scratch_operands = 1 : i64, tpu.core_type = #tpu.core_type<tc>, window_params = [{transform_indices = @transform_0, window_bounds = array<i64: 1, 20, 5, 16>}, {pipeline_mode = #tpu.pipeline_mode<synchronous>, transform_indices = @transform_1, window_bounds = array<i64: 16, 16, 128>}, {pipeline_mode = #tpu.pipeline_mode<synchronous>, transform_indices = @transform_2, window_bounds = array<i64: 1, 128>}, {transform_indices = @transform_3, window_bounds = array<i64: 1, 4, 4, 128>}]} {
    %c0_i32 = arith.constant 0 : i32
    %c4_i32 = arith.constant 4 : i32
    %0 = arith.addi %c0_i32, %c4_i32 : i32
    %c1_i32 = arith.constant 1 : i32
    scf.for %arg6 = %c0_i32 to %0 step %c1_i32  : i32 {
      %cst_17 = arith.constant 0.000000e+00 : f32
      %35 = vector.broadcast %cst_17 : f32 to vector<4x128xf32>
      %c0_i32_18 = arith.constant 0 : i32
      %36 = arith.addi %c0_i32_18, %arg6 : i32
      %c0_19 = arith.constant 0 : index
      %37 = arith.index_cast %36 : i32 to index
      %c0_20 = arith.constant 0 : index
      %c0_21 = arith.constant 0 : index
      %38 = vector.load %arg1[%c0_19, %37, %c0_20, %c0_21] : memref<1x20x5x16xbf16, #tpu.memory_space<vmem>>, vector<1x1x4x16xbf16>
      %39 = vector.shape_cast %38 : vector<1x1x4x16xbf16> to vector<4x16xbf16>
      %c0_22 = arith.constant 0 : index
      %c0_23 = arith.constant 0 : index
      %c0_24 = arith.constant 0 : index
      %40 = vector.load %arg2[%c0_22, %c0_23, %c0_24] : memref<16x16x128xbf16, #tpu.memory_space<vmem>>, vector<1x16x128xbf16>
      %41 = vector.shape_cast %40 : vector<1x16x128xbf16> to vector<16x128xbf16>
      %cst_25 = arith.constant dense<0.000000e+00> : vector<4x128xf32>
      %42 = tpu.matmul %39, %41, %cst_25 {dimension_numbers = #tpu.dot_dimension_numbers<[1], [0], [0], [1], [0, 0, 1, 1], [], []>} : vector<4x16xbf16>, vector<16x128xbf16>, vector<4x128xf32> -> vector<4x128xf32>
      %43 = arith.addf %35, %42 : vector<4x128xf32>
      %c5_i32 = arith.constant 5 : i32
      %44 = arith.addi %c5_i32, %arg6 : i32
      %c0_26 = arith.constant 0 : index
      %45 = arith.index_cast %44 : i32 to index
      %c0_27 = arith.constant 0 : index
      %c0_28 = arith.constant 0 : index
      %46 = vector.load %arg1[%c0_26, %45, %c0_27, %c0_28] : memref<1x20x5x16xbf16, #tpu.memory_space<vmem>>, vector<1x1x4x16xbf16>
      %47 = vector.shape_cast %46 : vector<1x1x4x16xbf16> to vector<4x16xbf16>
      %c1 = arith.constant 1 : index
      %c0_29 = arith.constant 0 : index
      %c0_30 = arith.constant 0 : index
      %48 = vector.load %arg2[%c1, %c0_29, %c0_30] : memref<16x16x128xbf16, #tpu.memory_space<vmem>>, vector<1x16x128xbf16>
      %49 = vector.shape_cast %48 : vector<1x16x128xbf16> to vector<16x128xbf16>
      %cst_31 = arith.constant dense<0.000000e+00> : vector<4x128xf32>
      %50 = tpu.matmul %47, %49, %cst_31 {dimension_numbers = #tpu.dot_dimension_numbers<[1], [0], [0], [1], [0, 0, 1, 1], [], []>} : vector<4x16xbf16>, vector<16x128xbf16>, vector<4x128xf32> -> vector<4x128xf32>
      %51 = arith.addf %43, %50 : vector<4x128xf32>
      %c0_i32_32 = arith.constant 0 : i32
      %52 = arith.addi %c0_i32_32, %arg6 : i32
      %c0_33 = arith.constant 0 : index
      %53 = arith.index_cast %52 : i32 to index
      %c1_34 = arith.constant 1 : index
      %c0_35 = arith.constant 0 : index
      %54 = vector.load %arg1[%c0_33, %53, %c1_34, %c0_35] : memref<1x20x5x16xbf16, #tpu.memory_space<vmem>>, vector<1x1x4x16xbf16>
      %55 = vector.shape_cast %54 : vector<1x1x4x16xbf16> to vector<4x16xbf16>
      %c2 = arith.constant 2 : index
      %c0_36 = arith.constant 0 : index
      %c0_37 = arith.constant 0 : index
      %56 = vector.load %arg2[%c2, %c0_36, %c0_37] : memref<16x16x128xbf16, #tpu.memory_space<vmem>>, vector<1x16x128xbf16>
      %57 = vector.shape_cast %56 : vector<1x16x128xbf16> to vector<16x128xbf16>
      %cst_38 = arith.constant dense<0.000000e+00> : vector<4x128xf32>
      %58 = tpu.matmul %55, %57, %cst_38 {dimension_numbers = #tpu.dot_dimension_numbers<[1], [0], [0], [1], [0, 0, 1, 1], [], []>} : vector<4x16xbf16>, vector<16x128xbf16>, vector<4x128xf32> -> vector<4x128xf32>
      %59 = arith.addf %51, %58 : vector<4x128xf32>
      %c5_i32_39 = arith.constant 5 : i32
      %60 = arith.addi %c5_i32_39, %arg6 : i32
      %c0_40 = arith.constant 0 : index
      %61 = arith.index_cast %60 : i32 to index
      %c1_41 = arith.constant 1 : index
      %c0_42 = arith.constant 0 : index
      %62 = vector.load %arg1[%c0_40, %61, %c1_41, %c0_42] : memref<1x20x5x16xbf16, #tpu.memory_space<vmem>>, vector<1x1x4x16xbf16>
      %63 = vector.shape_cast %62 : vector<1x1x4x16xbf16> to vector<4x16xbf16>
      %c3 = arith.constant 3 : index
      %c0_43 = arith.constant 0 : index
      %c0_44 = arith.constant 0 : index
      %64 = vector.load %arg2[%c3, %c0_43, %c0_44] : memref<16x16x128xbf16, #tpu.memory_space<vmem>>, vector<1x16x128xbf16>
      %65 = vector.shape_cast %64 : vector<1x16x128xbf16> to vector<16x128xbf16>
      %cst_45 = arith.constant dense<0.000000e+00> : vector<4x128xf32>
      %66 = tpu.matmul %63, %65, %cst_45 {dimension_numbers = #tpu.dot_dimension_numbers<[1], [0], [0], [1], [0, 0, 1, 1], [], []>} : vector<4x16xbf16>, vector<16x128xbf16>, vector<4x128xf32> -> vector<4x128xf32>
      %67 = arith.addf %59, %66 : vector<4x128xf32>
      %c10_i32 = arith.constant 10 : i32
      %68 = arith.addi %c10_i32, %arg6 : i32
      %c0_46 = arith.constant 0 : index
      %69 = arith.index_cast %68 : i32 to index
      %c0_47 = arith.constant 0 : index
      %c0_48 = arith.constant 0 : index
      %70 = vector.load %arg1[%c0_46, %69, %c0_47, %c0_48] : memref<1x20x5x16xbf16, #tpu.memory_space<vmem>>, vector<1x1x4x16xbf16>
      %71 = vector.shape_cast %70 : vector<1x1x4x16xbf16> to vector<4x16xbf16>
      %c4 = arith.constant 4 : index
      %c0_49 = arith.constant 0 : index
      %c0_50 = arith.constant 0 : index
      %72 = vector.load %arg2[%c4, %c0_49, %c0_50] : memref<16x16x128xbf16, #tpu.memory_space<vmem>>, vector<1x16x128xbf16>
      %73 = vector.shape_cast %72 : vector<1x16x128xbf16> to vector<16x128xbf16>
      %cst_51 = arith.constant dense<0.000000e+00> : vector<4x128xf32>
      %74 = tpu.matmul %71, %73, %cst_51 {dimension_numbers = #tpu.dot_dimension_numbers<[1], [0], [0], [1], [0, 0, 1, 1], [], []>} : vector<4x16xbf16>, vector<16x128xbf16>, vector<4x128xf32> -> vector<4x128xf32>
      %75 = arith.addf %67, %74 : vector<4x128xf32>
      %c15_i32 = arith.constant 15 : i32
      %76 = arith.addi %c15_i32, %arg6 : i32
      %c0_52 = arith.constant 0 : index
      %77 = arith.index_cast %76 : i32 to index
      %c0_53 = arith.constant 0 : index
      %c0_54 = arith.constant 0 : index
      %78 = vector.load %arg1[%c0_52, %77, %c0_53, %c0_54] : memref<1x20x5x16xbf16, #tpu.memory_space<vmem>>, vector<1x1x4x16xbf16>
      %79 = vector.shape_cast %78 : vector<1x1x4x16xbf16> to vector<4x16xbf16>
      %c5 = arith.constant 5 : index
      %c0_55 = arith.constant 0 : index
      %c0_56 = arith.constant 0 : index
      %80 = vector.load %arg2[%c5, %c0_55, %c0_56] : memref<16x16x128xbf16, #tpu.memory_space<vmem>>, vector<1x16x128xbf16>
      %81 = vector.shape_cast %80 : vector<1x16x128xbf16> to vector<16x128xbf16>
      %cst_57 = arith.constant dense<0.000000e+00> : vector<4x128xf32>
      %82 = tpu.matmul %79, %81, %cst_57 {dimension_numbers = #tpu.dot_dimension_numbers<[1], [0], [0], [1], [0, 0, 1, 1], [], []>} : vector<4x16xbf16>, vector<16x128xbf16>, vector<4x128xf32> -> vector<4x128xf32>
      %83 = arith.addf %75, %82 : vector<4x128xf32>
      %c10_i32_58 = arith.constant 10 : i32
      %84 = arith.addi %c10_i32_58, %arg6 : i32
      %c0_59 = arith.constant 0 : index
      %85 = arith.index_cast %84 : i32 to index
      %c1_60 = arith.constant 1 : index
      %c0_61 = arith.constant 0 : index
      %86 = vector.load %arg1[%c0_59, %85, %c1_60, %c0_61] : memref<1x20x5x16xbf16, #tpu.memory_space<vmem>>, vector<1x1x4x16xbf16>
      %87 = vector.shape_cast %86 : vector<1x1x4x16xbf16> to vector<4x16xbf16>
      %c6 = arith.constant 6 : index
      %c0_62 = arith.constant 0 : index
      %c0_63 = arith.constant 0 : index
      %88 = vector.load %arg2[%c6, %c0_62, %c0_63] : memref<16x16x128xbf16, #tpu.memory_space<vmem>>, vector<1x16x128xbf16>
      %89 = vector.shape_cast %88 : vector<1x16x128xbf16> to vector<16x128xbf16>
      %cst_64 = arith.constant dense<0.000000e+00> : vector<4x128xf32>
      %90 = tpu.matmul %87, %89, %cst_64 {dimension_numbers = #tpu.dot_dimension_numbers<[1], [0], [0], [1], [0, 0, 1, 1], [], []>} : vector<4x16xbf16>, vector<16x128xbf16>, vector<4x128xf32> -> vector<4x128xf32>
      %91 = arith.addf %83, %90 : vector<4x128xf32>
      %c15_i32_65 = arith.constant 15 : i32
      %92 = arith.addi %c15_i32_65, %arg6 : i32
      %c0_66 = arith.constant 0 : index
      %93 = arith.index_cast %92 : i32 to index
      %c1_67 = arith.constant 1 : index
      %c0_68 = arith.constant 0 : index
      %94 = vector.load %arg1[%c0_66, %93, %c1_67, %c0_68] : memref<1x20x5x16xbf16, #tpu.memory_space<vmem>>, vector<1x1x4x16xbf16>
      %95 = vector.shape_cast %94 : vector<1x1x4x16xbf16> to vector<4x16xbf16>
      %c7 = arith.constant 7 : index
      %c0_69 = arith.constant 0 : index
      %c0_70 = arith.constant 0 : index
      %96 = vector.load %arg2[%c7, %c0_69, %c0_70] : memref<16x16x128xbf16, #tpu.memory_space<vmem>>, vector<1x16x128xbf16>
      %97 = vector.shape_cast %96 : vector<1x16x128xbf16> to vector<16x128xbf16>
      %cst_71 = arith.constant dense<0.000000e+00> : vector<4x128xf32>
      %98 = tpu.matmul %95, %97, %cst_71 {dimension_numbers = #tpu.dot_dimension_numbers<[1], [0], [0], [1], [0, 0, 1, 1], [], []>} : vector<4x16xbf16>, vector<16x128xbf16>, vector<4x128xf32> -> vector<4x128xf32>
      %99 = arith.addf %91, %98 : vector<4x128xf32>
      %c1_i32_72 = arith.constant 1 : i32
      %100 = arith.addi %c1_i32_72, %arg6 : i32
      %c0_73 = arith.constant 0 : index
      %101 = arith.index_cast %100 : i32 to index
      %c0_74 = arith.constant 0 : index
      %c0_75 = arith.constant 0 : index
      %102 = vector.load %arg1[%c0_73, %101, %c0_74, %c0_75] : memref<1x20x5x16xbf16, #tpu.memory_space<vmem>>, vector<1x1x4x16xbf16>
      %103 = vector.shape_cast %102 : vector<1x1x4x16xbf16> to vector<4x16xbf16>
      %c8 = arith.constant 8 : index
      %c0_76 = arith.constant 0 : index
      %c0_77 = arith.constant 0 : index
      %104 = vector.load %arg2[%c8, %c0_76, %c0_77] : memref<16x16x128xbf16, #tpu.memory_space<vmem>>, vector<1x16x128xbf16>
      %105 = vector.shape_cast %104 : vector<1x16x128xbf16> to vector<16x128xbf16>
      %cst_78 = arith.constant dense<0.000000e+00> : vector<4x128xf32>
      %106 = tpu.matmul %103, %105, %cst_78 {dimension_numbers = #tpu.dot_dimension_numbers<[1], [0], [0], [1], [0, 0, 1, 1], [], []>} : vector<4x16xbf16>, vector<16x128xbf16>, vector<4x128xf32> -> vector<4x128xf32>
      %107 = arith.addf %99, %106 : vector<4x128xf32>
      %c6_i32 = arith.constant 6 : i32
      %108 = arith.addi %c6_i32, %arg6 : i32
      %c0_79 = arith.constant 0 : index
      %109 = arith.index_cast %108 : i32 to index
      %c0_80 = arith.constant 0 : index
      %c0_81 = arith.constant 0 : index
      %110 = vector.load %arg1[%c0_79, %109, %c0_80, %c0_81] : memref<1x20x5x16xbf16, #tpu.memory_space<vmem>>, vector<1x1x4x16xbf16>
      %111 = vector.shape_cast %110 : vector<1x1x4x16xbf16> to vector<4x16xbf16>
      %c9 = arith.constant 9 : index
      %c0_82 = arith.constant 0 : index
      %c0_83 = arith.constant 0 : index
      %112 = vector.load %arg2[%c9, %c0_82, %c0_83] : memref<16x16x128xbf16, #tpu.memory_space<vmem>>, vector<1x16x128xbf16>
      %113 = vector.shape_cast %112 : vector<1x16x128xbf16> to vector<16x128xbf16>
      %cst_84 = arith.constant dense<0.000000e+00> : vector<4x128xf32>
      %114 = tpu.matmul %111, %113, %cst_84 {dimension_numbers = #tpu.dot_dimension_numbers<[1], [0], [0], [1], [0, 0, 1, 1], [], []>} : vector<4x16xbf16>, vector<16x128xbf16>, vector<4x128xf32> -> vector<4x128xf32>
      %115 = arith.addf %107, %114 : vector<4x128xf32>
      %c1_i32_85 = arith.constant 1 : i32
      %116 = arith.addi %c1_i32_85, %arg6 : i32
      %c0_86 = arith.constant 0 : index
      %117 = arith.index_cast %116 : i32 to index
      %c1_87 = arith.constant 1 : index
      %c0_88 = arith.constant 0 : index
      %118 = vector.load %arg1[%c0_86, %117, %c1_87, %c0_88] : memref<1x20x5x16xbf16, #tpu.memory_space<vmem>>, vector<1x1x4x16xbf16>
      %119 = vector.shape_cast %118 : vector<1x1x4x16xbf16> to vector<4x16xbf16>
      %c10 = arith.constant 10 : index
      %c0_89 = arith.constant 0 : index
      %c0_90 = arith.constant 0 : index
      %120 = vector.load %arg2[%c10, %c0_89, %c0_90] : memref<16x16x128xbf16, #tpu.memory_space<vmem>>, vector<1x16x128xbf16>
      %121 = vector.shape_cast %120 : vector<1x16x128xbf16> to vector<16x128xbf16>
      %cst_91 = arith.constant dense<0.000000e+00> : vector<4x128xf32>
      %122 = tpu.matmul %119, %121, %cst_91 {dimension_numbers = #tpu.dot_dimension_numbers<[1], [0], [0], [1], [0, 0, 1, 1], [], []>} : vector<4x16xbf16>, vector<16x128xbf16>, vector<4x128xf32> -> vector<4x128xf32>
      %123 = arith.addf %115, %122 : vector<4x128xf32>
      %c6_i32_92 = arith.constant 6 : i32
      %124 = arith.addi %c6_i32_92, %arg6 : i32
      %c0_93 = arith.constant 0 : index
      %125 = arith.index_cast %124 : i32 to index
      %c1_94 = arith.constant 1 : index
      %c0_95 = arith.constant 0 : index
      %126 = vector.load %arg1[%c0_93, %125, %c1_94, %c0_95] : memref<1x20x5x16xbf16, #tpu.memory_space<vmem>>, vector<1x1x4x16xbf16>
      %127 = vector.shape_cast %126 : vector<1x1x4x16xbf16> to vector<4x16xbf16>
      %c11 = arith.constant 11 : index
      %c0_96 = arith.constant 0 : index
      %c0_97 = arith.constant 0 : index
      %128 = vector.load %arg2[%c11, %c0_96, %c0_97] : memref<16x16x128xbf16, #tpu.memory_space<vmem>>, vector<1x16x128xbf16>
      %129 = vector.shape_cast %128 : vector<1x16x128xbf16> to vector<16x128xbf16>
      %cst_98 = arith.constant dense<0.000000e+00> : vector<4x128xf32>
      %130 = tpu.matmul %127, %129, %cst_98 {dimension_numbers = #tpu.dot_dimension_numbers<[1], [0], [0], [1], [0, 0, 1, 1], [], []>} : vector<4x16xbf16>, vector<16x128xbf16>, vector<4x128xf32> -> vector<4x128xf32>
      %131 = arith.addf %123, %130 : vector<4x128xf32>
      %c11_i32 = arith.constant 11 : i32
      %132 = arith.addi %c11_i32, %arg6 : i32
      %c0_99 = arith.constant 0 : index
      %133 = arith.index_cast %132 : i32 to index
      %c0_100 = arith.constant 0 : index
      %c0_101 = arith.constant 0 : index
      %134 = vector.load %arg1[%c0_99, %133, %c0_100, %c0_101] : memref<1x20x5x16xbf16, #tpu.memory_space<vmem>>, vector<1x1x4x16xbf16>
      %135 = vector.shape_cast %134 : vector<1x1x4x16xbf16> to vector<4x16xbf16>
      %c12 = arith.constant 12 : index
      %c0_102 = arith.constant 0 : index
      %c0_103 = arith.constant 0 : index
      %136 = vector.load %arg2[%c12, %c0_102, %c0_103] : memref<16x16x128xbf16, #tpu.memory_space<vmem>>, vector<1x16x128xbf16>
      %137 = vector.shape_cast %136 : vector<1x16x128xbf16> to vector<16x128xbf16>
      %cst_104 = arith.constant dense<0.000000e+00> : vector<4x128xf32>
      %138 = tpu.matmul %135, %137, %cst_104 {dimension_numbers = #tpu.dot_dimension_numbers<[1], [0], [0], [1], [0, 0, 1, 1], [], []>} : vector<4x16xbf16>, vector<16x128xbf16>, vector<4x128xf32> -> vector<4x128xf32>
      %139 = arith.addf %131, %138 : vector<4x128xf32>
      %c16_i32 = arith.constant 16 : i32
      %140 = arith.addi %c16_i32, %arg6 : i32
      %c0_105 = arith.constant 0 : index
      %141 = arith.index_cast %140 : i32 to index
      %c0_106 = arith.constant 0 : index
      %c0_107 = arith.constant 0 : index
      %142 = vector.load %arg1[%c0_105, %141, %c0_106, %c0_107] : memref<1x20x5x16xbf16, #tpu.memory_space<vmem>>, vector<1x1x4x16xbf16>
      %143 = vector.shape_cast %142 : vector<1x1x4x16xbf16> to vector<4x16xbf16>
      %c13 = arith.constant 13 : index
      %c0_108 = arith.constant 0 : index
      %c0_109 = arith.constant 0 : index
      %144 = vector.load %arg2[%c13, %c0_108, %c0_109] : memref<16x16x128xbf16, #tpu.memory_space<vmem>>, vector<1x16x128xbf16>
      %145 = vector.shape_cast %144 : vector<1x16x128xbf16> to vector<16x128xbf16>
      %cst_110 = arith.constant dense<0.000000e+00> : vector<4x128xf32>
      %146 = tpu.matmul %143, %145, %cst_110 {dimension_numbers = #tpu.dot_dimension_numbers<[1], [0], [0], [1], [0, 0, 1, 1], [], []>} : vector<4x16xbf16>, vector<16x128xbf16>, vector<4x128xf32> -> vector<4x128xf32>
      %147 = arith.addf %139, %146 : vector<4x128xf32>
      %c11_i32_111 = arith.constant 11 : i32
      %148 = arith.addi %c11_i32_111, %arg6 : i32
      %c0_112 = arith.constant 0 : index
      %149 = arith.index_cast %148 : i32 to index
      %c1_113 = arith.constant 1 : index
      %c0_114 = arith.constant 0 : index
      %150 = vector.load %arg1[%c0_112, %149, %c1_113, %c0_114] : memref<1x20x5x16xbf16, #tpu.memory_space<vmem>>, vector<1x1x4x16xbf16>
      %151 = vector.shape_cast %150 : vector<1x1x4x16xbf16> to vector<4x16xbf16>
      %c14 = arith.constant 14 : index
      %c0_115 = arith.constant 0 : index
      %c0_116 = arith.constant 0 : index
      %152 = vector.load %arg2[%c14, %c0_115, %c0_116] : memref<16x16x128xbf16, #tpu.memory_space<vmem>>, vector<1x16x128xbf16>
      %153 = vector.shape_cast %152 : vector<1x16x128xbf16> to vector<16x128xbf16>
      %cst_117 = arith.constant dense<0.000000e+00> : vector<4x128xf32>
      %154 = tpu.matmul %151, %153, %cst_117 {dimension_numbers = #tpu.dot_dimension_numbers<[1], [0], [0], [1], [0, 0, 1, 1], [], []>} : vector<4x16xbf16>, vector<16x128xbf16>, vector<4x128xf32> -> vector<4x128xf32>
      %155 = arith.addf %147, %154 : vector<4x128xf32>
      %c16_i32_118 = arith.constant 16 : i32
      %156 = arith.addi %c16_i32_118, %arg6 : i32
      %c0_119 = arith.constant 0 : index
      %157 = arith.index_cast %156 : i32 to index
      %c1_120 = arith.constant 1 : index
      %c0_121 = arith.constant 0 : index
      %158 = vector.load %arg1[%c0_119, %157, %c1_120, %c0_121] : memref<1x20x5x16xbf16, #tpu.memory_space<vmem>>, vector<1x1x4x16xbf16>
      %159 = vector.shape_cast %158 : vector<1x1x4x16xbf16> to vector<4x16xbf16>
      %c15 = arith.constant 15 : index
      %c0_122 = arith.constant 0 : index
      %c0_123 = arith.constant 0 : index
      %160 = vector.load %arg2[%c15, %c0_122, %c0_123] : memref<16x16x128xbf16, #tpu.memory_space<vmem>>, vector<1x16x128xbf16>
      %161 = vector.shape_cast %160 : vector<1x16x128xbf16> to vector<16x128xbf16>
      %cst_124 = arith.constant dense<0.000000e+00> : vector<4x128xf32>
      %162 = tpu.matmul %159, %161, %cst_124 {dimension_numbers = #tpu.dot_dimension_numbers<[1], [0], [0], [1], [0, 0, 1, 1], [], []>} : vector<4x16xbf16>, vector<16x128xbf16>, vector<4x128xf32> -> vector<4x128xf32>
      %163 = arith.addf %155, %162 : vector<4x128xf32>
      %164 = arith.index_cast %arg6 : i32 to index
      %c0_125 = arith.constant 0 : index
      %c0_126 = arith.constant 0 : index
      %165 = vector.load %arg5[%164, %c0_125, %c0_126] : memref<4x4x128xf32, #tpu.memory_space<vmem>>, vector<1x4x128xf32>
      %166 = vector.shape_cast %165 : vector<1x4x128xf32> to vector<4x128xf32>
      %167 = vector.shape_cast %163 : vector<4x128xf32> to vector<1x4x128xf32>
      tpu.vector_store %arg5[%164, %c0_125, %c0_126], %167 {strides = array<i32>} : memref<4x4x128xf32, #tpu.memory_space<vmem>>, vector<1x4x128xf32>,
    }
    %c4_i32_0 = arith.constant 4 : i32
    %c0 = arith.constant 0 : index
    %c0_1 = arith.constant 0 : index
    %c0_2 = arith.constant 0 : index
    %1 = vector.load %arg5[%c0, %c0_1, %c0_2] : memref<4x4x128xf32, #tpu.memory_space<vmem>>, vector<4x4x128xf32>
    %c0_3 = arith.constant 0 : index
    %c0_4 = arith.constant 0 : index
    %2 = vector.load %arg3[%c0_3, %c0_4] : memref<1x128xf32, #tpu.memory_space<vmem>>, vector<1x128xf32>
    %3 = vector.shape_cast %2 : vector<1x128xf32> to vector<1x1x128xf32>
    %4 = vector.broadcast %3 : vector<1x1x128xf32> to vector<4x4x128xf32>
    %5 = arith.addf %1, %4 : vector<4x4x128xf32>
    %cst = arith.constant dense<0.000000e+00> : vector<4x128xf32>
    %6 = vector.multi_reduction <add>, %5, %cst [1] : vector<4x4x128xf32> to vector<4x128xf32>
    %7 = vector.shape_cast %6 : vector<4x128xf32> to vector<4x1x128xf32>
    %cst_5 = arith.constant dense<0.000000e+00> : vector<1x128xf32>
    %8 = vector.multi_reduction <add>, %7, %cst_5 [0] : vector<4x1x128xf32> to vector<1x128xf32>
    %9 = vector.shape_cast %8 : vector<1x128xf32> to vector<1x1x128xf32>
    %cst_6 = arith.constant 6.250000e-02 : f32
    %10 = vector.broadcast %cst_6 : f32 to vector<1x1x128xf32>
    %11 = arith.mulf %9, %10 : vector<1x1x128xf32>
    %12 = vector.broadcast %11 : vector<1x1x128xf32> to vector<4x4x128xf32>
    %13 = arith.subf %5, %12 : vector<4x4x128xf32>
    %14 = arith.mulf %13, %13 : vector<4x4x128xf32>
    %cst_7 = arith.constant dense<0.000000e+00> : vector<4x128xf32>
    %15 = vector.multi_reduction <add>, %14, %cst_7 [1] : vector<4x4x128xf32> to vector<4x128xf32>
    %16 = vector.shape_cast %15 : vector<4x128xf32> to vector<4x1x128xf32>
    %cst_8 = arith.constant dense<0.000000e+00> : vector<1x128xf32>
    %17 = vector.multi_reduction <add>, %16, %cst_8 [0] : vector<4x1x128xf32> to vector<1x128xf32>
    %18 = vector.shape_cast %17 : vector<1x128xf32> to vector<1x1x128xf32>
    %cst_9 = arith.constant 6.250000e-02 : f32
    %19 = vector.broadcast %cst_9 : f32 to vector<1x1x128xf32>
    %20 = arith.mulf %18, %19 : vector<1x1x128xf32>
    %cst_10 = arith.constant 9.99999974E-6 : f32
    %21 = vector.broadcast %cst_10 : f32 to vector<1x1x128xf32>
    %22 = arith.addf %20, %21 : vector<1x1x128xf32>
    %23 = math.rsqrt %22 : vector<1x1x128xf32>
    %24 = vector.broadcast %23 : vector<1x1x128xf32> to vector<4x4x128xf32>
    %25 = arith.mulf %13, %24 : vector<4x4x128xf32>
    %cst_11 = arith.constant 0.000000e+00 : f32
    %26 = vector.broadcast %cst_11 : f32 to vector<4x4x128xf32>
    %27 = arith.cmpf oge, %25, %26 : vector<4x4x128xf32>
    %cst_12 = arith.constant 2.000000e-01 : f32
    %28 = vector.broadcast %cst_12 : f32 to vector<4x4x128xf32>
    %29 = arith.mulf %28, %25 : vector<4x4x128xf32>
    %30 = arith.select %27, %25, %29 : vector<4x4x128xi1>, vector<4x4x128xf32>
    %31 = arith.truncf %30 : vector<4x4x128xf32> to vector<4x4x128xbf16>
    %c0_13 = arith.constant 0 : index
    %c0_14 = arith.constant 0 : index
    %c0_15 = arith.constant 0 : index
    %c0_16 = arith.constant 0 : index
    %32 = vector.load %arg4[%c0_13, %c0_14, %c0_15, %c0_16] : memref<1x4x4x128xbf16, #tpu.memory_space<vmem>>, vector<1x4x4x128xbf16>
    %33 = vector.shape_cast %32 : vector<1x4x4x128xbf16> to vector<4x4x128xbf16>
    %34 = vector.shape_cast %31 : vector<4x4x128xbf16> to vector<1x4x4x128xbf16>
    tpu.vector_store %arg4[%c0_13, %c0_14, %c0_15, %c0_16], %34 {strides = array<i32>} : memref<1x4x4x128xbf16, #tpu.memory_space<vmem>>, vector<1x4x4x128xbf16>,
    return
  }
  func.func @transform_0(%arg0: i32) -> (i32, i32, i32, i32) {
    %c0_i32 = arith.constant 0 : i32
    %c0_i32_0 = arith.constant 0 : i32
    %c0_i32_1 = arith.constant 0 : i32
    %c0_i32_2 = arith.constant 0 : i32
    return %arg0, %c0_i32, %c0_i32_0, %c0_i32_1 : i32, i32, i32, i32
  }
  func.func @transform_1(%arg0: i32) -> (i32, i32, i32) {
    %c0_i32 = arith.constant 0 : i32
    %c0_i32_0 = arith.constant 0 : i32
    %c0_i32_1 = arith.constant 0 : i32
    %c0_i32_2 = arith.constant 0 : i32
    return %c0_i32, %c0_i32_0, %c0_i32_1 : i32, i32, i32
  }
  func.func @transform_2(%arg0: i32) -> (i32, i32) {
    %c0_i32 = arith.constant 0 : i32
    %c0_i32_0 = arith.constant 0 : i32
    %c0_i32_1 = arith.constant 0 : i32
    return %c0_i32, %c0_i32_0 : i32, i32
  }
  func.func @transform_3(%arg0: i32) -> (i32, i32, i32, i32) {
    %c0_i32 = arith.constant 0 : i32
    %c0_i32_0 = arith.constant 0 : i32
    %c0_i32_1 = arith.constant 0 : i32
    %c0_i32_2 = arith.constant 0 : i32
    return %arg0, %c0_i32, %c0_i32_0, %c0_i32_1 : i32, i32, i32, i32
  }
}

module attributes {stable_mosaic.version = 11 : i64} {
  func.func @_conv_block_kernel(%arg0: i32, %arg1: memref<1x6x6x32xbf16, #tpu.memory_space<vmem>>, %arg2: memref<16x32x128xbf16, #tpu.memory_space<vmem>>, %arg3: memref<1x128xf32, #tpu.memory_space<vmem>>, %arg4: memref<1x3x3x128xbf16, #tpu.memory_space<vmem>>, %arg5: memref<3x3x128xf32, #tpu.memory_space<vmem>>) attributes {dimension_semantics = [#tpu.dimension_semantics<parallel>], iteration_bounds = array<i64: 2>, scalar_prefetch = 0 : i64, scratch_operands = 1 : i64, tpu.core_type = #tpu.core_type<tc>, window_params = [{transform_indices = @transform_0, window_bounds = array<i64: 1, 6, 6, 32>}, {pipeline_mode = #tpu.pipeline_mode<synchronous>, transform_indices = @transform_1, window_bounds = array<i64: 16, 32, 128>}, {pipeline_mode = #tpu.pipeline_mode<synchronous>, transform_indices = @transform_2, window_bounds = array<i64: 1, 128>}, {transform_indices = @transform_3, window_bounds = array<i64: 1, 3, 3, 128>}]} {
    %c0_i32 = arith.constant 0 : i32
    %c3_i32 = arith.constant 3 : i32
    %0 = arith.addi %c0_i32, %c3_i32 : i32
    %c1_i32 = arith.constant 1 : i32
    scf.for %arg6 = %c0_i32 to %0 step %c1_i32  : i32 {
      %cst_17 = arith.constant 0.000000e+00 : f32
      %35 = vector.broadcast %cst_17 : f32 to vector<3x128xf32>
      %c0_i32_18 = arith.constant 0 : i32
      %36 = arith.addi %c0_i32_18, %arg6 : i32
      %c0_19 = arith.constant 0 : index
      %37 = arith.index_cast %36 : i32 to index
      %c0_20 = arith.constant 0 : index
      %c0_21 = arith.constant 0 : index
      %38 = vector.load %arg1[%c0_19, %37, %c0_20, %c0_21] : memref<1x6x6x32xbf16, #tpu.memory_space<vmem>>, vector<1x1x3x32xbf16>
      %39 = vector.shape_cast %38 : vector<1x1x3x32xbf16> to vector<3x32xbf16>
      %c0_22 = arith.constant 0 : index
      %c0_23 = arith.constant 0 : index
      %c0_24 = arith.constant 0 : index
      %40 = vector.load %arg2[%c0_22, %c0_23, %c0_24] : memref<16x32x128xbf16, #tpu.memory_space<vmem>>, vector<1x32x128xbf16>
      %41 = vector.shape_cast %40 : vector<1x32x128xbf16> to vector<32x128xbf16>
      %cst_25 = arith.constant dense<0.000000e+00> : vector<3x128xf32>
      %42 = tpu.matmul %39, %41, %cst_25 {dimension_numbers = #tpu.dot_dimension_numbers<[1], [0], [0], [1], [0, 0, 1, 1], [], []>} : vector<3x32xbf16>, vector<32x128xbf16>, vector<3x128xf32> -> vector<3x128xf32>
      %43 = arith.addf %35, %42 : vector<3x128xf32>
      %c0_i32_26 = arith.constant 0 : i32
      %44 = arith.addi %c0_i32_26, %arg6 : i32
      %c0_27 = arith.constant 0 : index
      %45 = arith.index_cast %44 : i32 to index
      %c1 = arith.constant 1 : index
      %c0_28 = arith.constant 0 : index
      %46 = vector.load %arg1[%c0_27, %45, %c1, %c0_28] : memref<1x6x6x32xbf16, #tpu.memory_space<vmem>>, vector<1x1x3x32xbf16>
      %47 = vector.shape_cast %46 : vector<1x1x3x32xbf16> to vector<3x32xbf16>
      %c1_29 = arith.constant 1 : index
      %c0_30 = arith.constant 0 : index
      %c0_31 = arith.constant 0 : index
      %48 = vector.load %arg2[%c1_29, %c0_30, %c0_31] : memref<16x32x128xbf16, #tpu.memory_space<vmem>>, vector<1x32x128xbf16>
      %49 = vector.shape_cast %48 : vector<1x32x128xbf16> to vector<32x128xbf16>
      %cst_32 = arith.constant dense<0.000000e+00> : vector<3x128xf32>
      %50 = tpu.matmul %47, %49, %cst_32 {dimension_numbers = #tpu.dot_dimension_numbers<[1], [0], [0], [1], [0, 0, 1, 1], [], []>} : vector<3x32xbf16>, vector<32x128xbf16>, vector<3x128xf32> -> vector<3x128xf32>
      %51 = arith.addf %43, %50 : vector<3x128xf32>
      %c0_i32_33 = arith.constant 0 : i32
      %52 = arith.addi %c0_i32_33, %arg6 : i32
      %c0_34 = arith.constant 0 : index
      %53 = arith.index_cast %52 : i32 to index
      %c2 = arith.constant 2 : index
      %c0_35 = arith.constant 0 : index
      %54 = vector.load %arg1[%c0_34, %53, %c2, %c0_35] : memref<1x6x6x32xbf16, #tpu.memory_space<vmem>>, vector<1x1x3x32xbf16>
      %55 = vector.shape_cast %54 : vector<1x1x3x32xbf16> to vector<3x32xbf16>
      %c2_36 = arith.constant 2 : index
      %c0_37 = arith.constant 0 : index
      %c0_38 = arith.constant 0 : index
      %56 = vector.load %arg2[%c2_36, %c0_37, %c0_38] : memref<16x32x128xbf16, #tpu.memory_space<vmem>>, vector<1x32x128xbf16>
      %57 = vector.shape_cast %56 : vector<1x32x128xbf16> to vector<32x128xbf16>
      %cst_39 = arith.constant dense<0.000000e+00> : vector<3x128xf32>
      %58 = tpu.matmul %55, %57, %cst_39 {dimension_numbers = #tpu.dot_dimension_numbers<[1], [0], [0], [1], [0, 0, 1, 1], [], []>} : vector<3x32xbf16>, vector<32x128xbf16>, vector<3x128xf32> -> vector<3x128xf32>
      %59 = arith.addf %51, %58 : vector<3x128xf32>
      %c0_i32_40 = arith.constant 0 : i32
      %60 = arith.addi %c0_i32_40, %arg6 : i32
      %c0_41 = arith.constant 0 : index
      %61 = arith.index_cast %60 : i32 to index
      %c3 = arith.constant 3 : index
      %c0_42 = arith.constant 0 : index
      %62 = vector.load %arg1[%c0_41, %61, %c3, %c0_42] : memref<1x6x6x32xbf16, #tpu.memory_space<vmem>>, vector<1x1x3x32xbf16>
      %63 = vector.shape_cast %62 : vector<1x1x3x32xbf16> to vector<3x32xbf16>
      %c3_43 = arith.constant 3 : index
      %c0_44 = arith.constant 0 : index
      %c0_45 = arith.constant 0 : index
      %64 = vector.load %arg2[%c3_43, %c0_44, %c0_45] : memref<16x32x128xbf16, #tpu.memory_space<vmem>>, vector<1x32x128xbf16>
      %65 = vector.shape_cast %64 : vector<1x32x128xbf16> to vector<32x128xbf16>
      %cst_46 = arith.constant dense<0.000000e+00> : vector<3x128xf32>
      %66 = tpu.matmul %63, %65, %cst_46 {dimension_numbers = #tpu.dot_dimension_numbers<[1], [0], [0], [1], [0, 0, 1, 1], [], []>} : vector<3x32xbf16>, vector<32x128xbf16>, vector<3x128xf32> -> vector<3x128xf32>
      %67 = arith.addf %59, %66 : vector<3x128xf32>
      %c1_i32_47 = arith.constant 1 : i32
      %68 = arith.addi %c1_i32_47, %arg6 : i32
      %c0_48 = arith.constant 0 : index
      %69 = arith.index_cast %68 : i32 to index
      %c0_49 = arith.constant 0 : index
      %c0_50 = arith.constant 0 : index
      %70 = vector.load %arg1[%c0_48, %69, %c0_49, %c0_50] : memref<1x6x6x32xbf16, #tpu.memory_space<vmem>>, vector<1x1x3x32xbf16>
      %71 = vector.shape_cast %70 : vector<1x1x3x32xbf16> to vector<3x32xbf16>
      %c4 = arith.constant 4 : index
      %c0_51 = arith.constant 0 : index
      %c0_52 = arith.constant 0 : index
      %72 = vector.load %arg2[%c4, %c0_51, %c0_52] : memref<16x32x128xbf16, #tpu.memory_space<vmem>>, vector<1x32x128xbf16>
      %73 = vector.shape_cast %72 : vector<1x32x128xbf16> to vector<32x128xbf16>
      %cst_53 = arith.constant dense<0.000000e+00> : vector<3x128xf32>
      %74 = tpu.matmul %71, %73, %cst_53 {dimension_numbers = #tpu.dot_dimension_numbers<[1], [0], [0], [1], [0, 0, 1, 1], [], []>} : vector<3x32xbf16>, vector<32x128xbf16>, vector<3x128xf32> -> vector<3x128xf32>
      %75 = arith.addf %67, %74 : vector<3x128xf32>
      %c1_i32_54 = arith.constant 1 : i32
      %76 = arith.addi %c1_i32_54, %arg6 : i32
      %c0_55 = arith.constant 0 : index
      %77 = arith.index_cast %76 : i32 to index
      %c1_56 = arith.constant 1 : index
      %c0_57 = arith.constant 0 : index
      %78 = vector.load %arg1[%c0_55, %77, %c1_56, %c0_57] : memref<1x6x6x32xbf16, #tpu.memory_space<vmem>>, vector<1x1x3x32xbf16>
      %79 = vector.shape_cast %78 : vector<1x1x3x32xbf16> to vector<3x32xbf16>
      %c5 = arith.constant 5 : index
      %c0_58 = arith.constant 0 : index
      %c0_59 = arith.constant 0 : index
      %80 = vector.load %arg2[%c5, %c0_58, %c0_59] : memref<16x32x128xbf16, #tpu.memory_space<vmem>>, vector<1x32x128xbf16>
      %81 = vector.shape_cast %80 : vector<1x32x128xbf16> to vector<32x128xbf16>
      %cst_60 = arith.constant dense<0.000000e+00> : vector<3x128xf32>
      %82 = tpu.matmul %79, %81, %cst_60 {dimension_numbers = #tpu.dot_dimension_numbers<[1], [0], [0], [1], [0, 0, 1, 1], [], []>} : vector<3x32xbf16>, vector<32x128xbf16>, vector<3x128xf32> -> vector<3x128xf32>
      %83 = arith.addf %75, %82 : vector<3x128xf32>
      %c1_i32_61 = arith.constant 1 : i32
      %84 = arith.addi %c1_i32_61, %arg6 : i32
      %c0_62 = arith.constant 0 : index
      %85 = arith.index_cast %84 : i32 to index
      %c2_63 = arith.constant 2 : index
      %c0_64 = arith.constant 0 : index
      %86 = vector.load %arg1[%c0_62, %85, %c2_63, %c0_64] : memref<1x6x6x32xbf16, #tpu.memory_space<vmem>>, vector<1x1x3x32xbf16>
      %87 = vector.shape_cast %86 : vector<1x1x3x32xbf16> to vector<3x32xbf16>
      %c6 = arith.constant 6 : index
      %c0_65 = arith.constant 0 : index
      %c0_66 = arith.constant 0 : index
      %88 = vector.load %arg2[%c6, %c0_65, %c0_66] : memref<16x32x128xbf16, #tpu.memory_space<vmem>>, vector<1x32x128xbf16>
      %89 = vector.shape_cast %88 : vector<1x32x128xbf16> to vector<32x128xbf16>
      %cst_67 = arith.constant dense<0.000000e+00> : vector<3x128xf32>
      %90 = tpu.matmul %87, %89, %cst_67 {dimension_numbers = #tpu.dot_dimension_numbers<[1], [0], [0], [1], [0, 0, 1, 1], [], []>} : vector<3x32xbf16>, vector<32x128xbf16>, vector<3x128xf32> -> vector<3x128xf32>
      %91 = arith.addf %83, %90 : vector<3x128xf32>
      %c1_i32_68 = arith.constant 1 : i32
      %92 = arith.addi %c1_i32_68, %arg6 : i32
      %c0_69 = arith.constant 0 : index
      %93 = arith.index_cast %92 : i32 to index
      %c3_70 = arith.constant 3 : index
      %c0_71 = arith.constant 0 : index
      %94 = vector.load %arg1[%c0_69, %93, %c3_70, %c0_71] : memref<1x6x6x32xbf16, #tpu.memory_space<vmem>>, vector<1x1x3x32xbf16>
      %95 = vector.shape_cast %94 : vector<1x1x3x32xbf16> to vector<3x32xbf16>
      %c7 = arith.constant 7 : index
      %c0_72 = arith.constant 0 : index
      %c0_73 = arith.constant 0 : index
      %96 = vector.load %arg2[%c7, %c0_72, %c0_73] : memref<16x32x128xbf16, #tpu.memory_space<vmem>>, vector<1x32x128xbf16>
      %97 = vector.shape_cast %96 : vector<1x32x128xbf16> to vector<32x128xbf16>
      %cst_74 = arith.constant dense<0.000000e+00> : vector<3x128xf32>
      %98 = tpu.matmul %95, %97, %cst_74 {dimension_numbers = #tpu.dot_dimension_numbers<[1], [0], [0], [1], [0, 0, 1, 1], [], []>} : vector<3x32xbf16>, vector<32x128xbf16>, vector<3x128xf32> -> vector<3x128xf32>
      %99 = arith.addf %91, %98 : vector<3x128xf32>
      %c2_i32 = arith.constant 2 : i32
      %100 = arith.addi %c2_i32, %arg6 : i32
      %c0_75 = arith.constant 0 : index
      %101 = arith.index_cast %100 : i32 to index
      %c0_76 = arith.constant 0 : index
      %c0_77 = arith.constant 0 : index
      %102 = vector.load %arg1[%c0_75, %101, %c0_76, %c0_77] : memref<1x6x6x32xbf16, #tpu.memory_space<vmem>>, vector<1x1x3x32xbf16>
      %103 = vector.shape_cast %102 : vector<1x1x3x32xbf16> to vector<3x32xbf16>
      %c8 = arith.constant 8 : index
      %c0_78 = arith.constant 0 : index
      %c0_79 = arith.constant 0 : index
      %104 = vector.load %arg2[%c8, %c0_78, %c0_79] : memref<16x32x128xbf16, #tpu.memory_space<vmem>>, vector<1x32x128xbf16>
      %105 = vector.shape_cast %104 : vector<1x32x128xbf16> to vector<32x128xbf16>
      %cst_80 = arith.constant dense<0.000000e+00> : vector<3x128xf32>
      %106 = tpu.matmul %103, %105, %cst_80 {dimension_numbers = #tpu.dot_dimension_numbers<[1], [0], [0], [1], [0, 0, 1, 1], [], []>} : vector<3x32xbf16>, vector<32x128xbf16>, vector<3x128xf32> -> vector<3x128xf32>
      %107 = arith.addf %99, %106 : vector<3x128xf32>
      %c2_i32_81 = arith.constant 2 : i32
      %108 = arith.addi %c2_i32_81, %arg6 : i32
      %c0_82 = arith.constant 0 : index
      %109 = arith.index_cast %108 : i32 to index
      %c1_83 = arith.constant 1 : index
      %c0_84 = arith.constant 0 : index
      %110 = vector.load %arg1[%c0_82, %109, %c1_83, %c0_84] : memref<1x6x6x32xbf16, #tpu.memory_space<vmem>>, vector<1x1x3x32xbf16>
      %111 = vector.shape_cast %110 : vector<1x1x3x32xbf16> to vector<3x32xbf16>
      %c9 = arith.constant 9 : index
      %c0_85 = arith.constant 0 : index
      %c0_86 = arith.constant 0 : index
      %112 = vector.load %arg2[%c9, %c0_85, %c0_86] : memref<16x32x128xbf16, #tpu.memory_space<vmem>>, vector<1x32x128xbf16>
      %113 = vector.shape_cast %112 : vector<1x32x128xbf16> to vector<32x128xbf16>
      %cst_87 = arith.constant dense<0.000000e+00> : vector<3x128xf32>
      %114 = tpu.matmul %111, %113, %cst_87 {dimension_numbers = #tpu.dot_dimension_numbers<[1], [0], [0], [1], [0, 0, 1, 1], [], []>} : vector<3x32xbf16>, vector<32x128xbf16>, vector<3x128xf32> -> vector<3x128xf32>
      %115 = arith.addf %107, %114 : vector<3x128xf32>
      %c2_i32_88 = arith.constant 2 : i32
      %116 = arith.addi %c2_i32_88, %arg6 : i32
      %c0_89 = arith.constant 0 : index
      %117 = arith.index_cast %116 : i32 to index
      %c2_90 = arith.constant 2 : index
      %c0_91 = arith.constant 0 : index
      %118 = vector.load %arg1[%c0_89, %117, %c2_90, %c0_91] : memref<1x6x6x32xbf16, #tpu.memory_space<vmem>>, vector<1x1x3x32xbf16>
      %119 = vector.shape_cast %118 : vector<1x1x3x32xbf16> to vector<3x32xbf16>
      %c10 = arith.constant 10 : index
      %c0_92 = arith.constant 0 : index
      %c0_93 = arith.constant 0 : index
      %120 = vector.load %arg2[%c10, %c0_92, %c0_93] : memref<16x32x128xbf16, #tpu.memory_space<vmem>>, vector<1x32x128xbf16>
      %121 = vector.shape_cast %120 : vector<1x32x128xbf16> to vector<32x128xbf16>
      %cst_94 = arith.constant dense<0.000000e+00> : vector<3x128xf32>
      %122 = tpu.matmul %119, %121, %cst_94 {dimension_numbers = #tpu.dot_dimension_numbers<[1], [0], [0], [1], [0, 0, 1, 1], [], []>} : vector<3x32xbf16>, vector<32x128xbf16>, vector<3x128xf32> -> vector<3x128xf32>
      %123 = arith.addf %115, %122 : vector<3x128xf32>
      %c2_i32_95 = arith.constant 2 : i32
      %124 = arith.addi %c2_i32_95, %arg6 : i32
      %c0_96 = arith.constant 0 : index
      %125 = arith.index_cast %124 : i32 to index
      %c3_97 = arith.constant 3 : index
      %c0_98 = arith.constant 0 : index
      %126 = vector.load %arg1[%c0_96, %125, %c3_97, %c0_98] : memref<1x6x6x32xbf16, #tpu.memory_space<vmem>>, vector<1x1x3x32xbf16>
      %127 = vector.shape_cast %126 : vector<1x1x3x32xbf16> to vector<3x32xbf16>
      %c11 = arith.constant 11 : index
      %c0_99 = arith.constant 0 : index
      %c0_100 = arith.constant 0 : index
      %128 = vector.load %arg2[%c11, %c0_99, %c0_100] : memref<16x32x128xbf16, #tpu.memory_space<vmem>>, vector<1x32x128xbf16>
      %129 = vector.shape_cast %128 : vector<1x32x128xbf16> to vector<32x128xbf16>
      %cst_101 = arith.constant dense<0.000000e+00> : vector<3x128xf32>
      %130 = tpu.matmul %127, %129, %cst_101 {dimension_numbers = #tpu.dot_dimension_numbers<[1], [0], [0], [1], [0, 0, 1, 1], [], []>} : vector<3x32xbf16>, vector<32x128xbf16>, vector<3x128xf32> -> vector<3x128xf32>
      %131 = arith.addf %123, %130 : vector<3x128xf32>
      %c3_i32_102 = arith.constant 3 : i32
      %132 = arith.addi %c3_i32_102, %arg6 : i32
      %c0_103 = arith.constant 0 : index
      %133 = arith.index_cast %132 : i32 to index
      %c0_104 = arith.constant 0 : index
      %c0_105 = arith.constant 0 : index
      %134 = vector.load %arg1[%c0_103, %133, %c0_104, %c0_105] : memref<1x6x6x32xbf16, #tpu.memory_space<vmem>>, vector<1x1x3x32xbf16>
      %135 = vector.shape_cast %134 : vector<1x1x3x32xbf16> to vector<3x32xbf16>
      %c12 = arith.constant 12 : index
      %c0_106 = arith.constant 0 : index
      %c0_107 = arith.constant 0 : index
      %136 = vector.load %arg2[%c12, %c0_106, %c0_107] : memref<16x32x128xbf16, #tpu.memory_space<vmem>>, vector<1x32x128xbf16>
      %137 = vector.shape_cast %136 : vector<1x32x128xbf16> to vector<32x128xbf16>
      %cst_108 = arith.constant dense<0.000000e+00> : vector<3x128xf32>
      %138 = tpu.matmul %135, %137, %cst_108 {dimension_numbers = #tpu.dot_dimension_numbers<[1], [0], [0], [1], [0, 0, 1, 1], [], []>} : vector<3x32xbf16>, vector<32x128xbf16>, vector<3x128xf32> -> vector<3x128xf32>
      %139 = arith.addf %131, %138 : vector<3x128xf32>
      %c3_i32_109 = arith.constant 3 : i32
      %140 = arith.addi %c3_i32_109, %arg6 : i32
      %c0_110 = arith.constant 0 : index
      %141 = arith.index_cast %140 : i32 to index
      %c1_111 = arith.constant 1 : index
      %c0_112 = arith.constant 0 : index
      %142 = vector.load %arg1[%c0_110, %141, %c1_111, %c0_112] : memref<1x6x6x32xbf16, #tpu.memory_space<vmem>>, vector<1x1x3x32xbf16>
      %143 = vector.shape_cast %142 : vector<1x1x3x32xbf16> to vector<3x32xbf16>
      %c13 = arith.constant 13 : index
      %c0_113 = arith.constant 0 : index
      %c0_114 = arith.constant 0 : index
      %144 = vector.load %arg2[%c13, %c0_113, %c0_114] : memref<16x32x128xbf16, #tpu.memory_space<vmem>>, vector<1x32x128xbf16>
      %145 = vector.shape_cast %144 : vector<1x32x128xbf16> to vector<32x128xbf16>
      %cst_115 = arith.constant dense<0.000000e+00> : vector<3x128xf32>
      %146 = tpu.matmul %143, %145, %cst_115 {dimension_numbers = #tpu.dot_dimension_numbers<[1], [0], [0], [1], [0, 0, 1, 1], [], []>} : vector<3x32xbf16>, vector<32x128xbf16>, vector<3x128xf32> -> vector<3x128xf32>
      %147 = arith.addf %139, %146 : vector<3x128xf32>
      %c3_i32_116 = arith.constant 3 : i32
      %148 = arith.addi %c3_i32_116, %arg6 : i32
      %c0_117 = arith.constant 0 : index
      %149 = arith.index_cast %148 : i32 to index
      %c2_118 = arith.constant 2 : index
      %c0_119 = arith.constant 0 : index
      %150 = vector.load %arg1[%c0_117, %149, %c2_118, %c0_119] : memref<1x6x6x32xbf16, #tpu.memory_space<vmem>>, vector<1x1x3x32xbf16>
      %151 = vector.shape_cast %150 : vector<1x1x3x32xbf16> to vector<3x32xbf16>
      %c14 = arith.constant 14 : index
      %c0_120 = arith.constant 0 : index
      %c0_121 = arith.constant 0 : index
      %152 = vector.load %arg2[%c14, %c0_120, %c0_121] : memref<16x32x128xbf16, #tpu.memory_space<vmem>>, vector<1x32x128xbf16>
      %153 = vector.shape_cast %152 : vector<1x32x128xbf16> to vector<32x128xbf16>
      %cst_122 = arith.constant dense<0.000000e+00> : vector<3x128xf32>
      %154 = tpu.matmul %151, %153, %cst_122 {dimension_numbers = #tpu.dot_dimension_numbers<[1], [0], [0], [1], [0, 0, 1, 1], [], []>} : vector<3x32xbf16>, vector<32x128xbf16>, vector<3x128xf32> -> vector<3x128xf32>
      %155 = arith.addf %147, %154 : vector<3x128xf32>
      %c3_i32_123 = arith.constant 3 : i32
      %156 = arith.addi %c3_i32_123, %arg6 : i32
      %c0_124 = arith.constant 0 : index
      %157 = arith.index_cast %156 : i32 to index
      %c3_125 = arith.constant 3 : index
      %c0_126 = arith.constant 0 : index
      %158 = vector.load %arg1[%c0_124, %157, %c3_125, %c0_126] : memref<1x6x6x32xbf16, #tpu.memory_space<vmem>>, vector<1x1x3x32xbf16>
      %159 = vector.shape_cast %158 : vector<1x1x3x32xbf16> to vector<3x32xbf16>
      %c15 = arith.constant 15 : index
      %c0_127 = arith.constant 0 : index
      %c0_128 = arith.constant 0 : index
      %160 = vector.load %arg2[%c15, %c0_127, %c0_128] : memref<16x32x128xbf16, #tpu.memory_space<vmem>>, vector<1x32x128xbf16>
      %161 = vector.shape_cast %160 : vector<1x32x128xbf16> to vector<32x128xbf16>
      %cst_129 = arith.constant dense<0.000000e+00> : vector<3x128xf32>
      %162 = tpu.matmul %159, %161, %cst_129 {dimension_numbers = #tpu.dot_dimension_numbers<[1], [0], [0], [1], [0, 0, 1, 1], [], []>} : vector<3x32xbf16>, vector<32x128xbf16>, vector<3x128xf32> -> vector<3x128xf32>
      %163 = arith.addf %155, %162 : vector<3x128xf32>
      %164 = arith.index_cast %arg6 : i32 to index
      %c0_130 = arith.constant 0 : index
      %c0_131 = arith.constant 0 : index
      %165 = vector.load %arg5[%164, %c0_130, %c0_131] : memref<3x3x128xf32, #tpu.memory_space<vmem>>, vector<1x3x128xf32>
      %166 = vector.shape_cast %165 : vector<1x3x128xf32> to vector<3x128xf32>
      %167 = vector.shape_cast %163 : vector<3x128xf32> to vector<1x3x128xf32>
      tpu.vector_store %arg5[%164, %c0_130, %c0_131], %167 {strides = array<i32>} : memref<3x3x128xf32, #tpu.memory_space<vmem>>, vector<1x3x128xf32>,
    }
    %c3_i32_0 = arith.constant 3 : i32
    %c0 = arith.constant 0 : index
    %c0_1 = arith.constant 0 : index
    %c0_2 = arith.constant 0 : index
    %1 = vector.load %arg5[%c0, %c0_1, %c0_2] : memref<3x3x128xf32, #tpu.memory_space<vmem>>, vector<3x3x128xf32>
    %c0_3 = arith.constant 0 : index
    %c0_4 = arith.constant 0 : index
    %2 = vector.load %arg3[%c0_3, %c0_4] : memref<1x128xf32, #tpu.memory_space<vmem>>, vector<1x128xf32>
    %3 = vector.shape_cast %2 : vector<1x128xf32> to vector<1x1x128xf32>
    %4 = vector.broadcast %3 : vector<1x1x128xf32> to vector<3x3x128xf32>
    %5 = arith.addf %1, %4 : vector<3x3x128xf32>
    %cst = arith.constant dense<0.000000e+00> : vector<3x128xf32>
    %6 = vector.multi_reduction <add>, %5, %cst [1] : vector<3x3x128xf32> to vector<3x128xf32>
    %7 = vector.shape_cast %6 : vector<3x128xf32> to vector<3x1x128xf32>
    %cst_5 = arith.constant dense<0.000000e+00> : vector<1x128xf32>
    %8 = vector.multi_reduction <add>, %7, %cst_5 [0] : vector<3x1x128xf32> to vector<1x128xf32>
    %9 = vector.shape_cast %8 : vector<1x128xf32> to vector<1x1x128xf32>
    %cst_6 = arith.constant 0.111111112 : f32
    %10 = vector.broadcast %cst_6 : f32 to vector<1x1x128xf32>
    %11 = arith.mulf %9, %10 : vector<1x1x128xf32>
    %12 = vector.broadcast %11 : vector<1x1x128xf32> to vector<3x3x128xf32>
    %13 = arith.subf %5, %12 : vector<3x3x128xf32>
    %14 = arith.mulf %13, %13 : vector<3x3x128xf32>
    %cst_7 = arith.constant dense<0.000000e+00> : vector<3x128xf32>
    %15 = vector.multi_reduction <add>, %14, %cst_7 [1] : vector<3x3x128xf32> to vector<3x128xf32>
    %16 = vector.shape_cast %15 : vector<3x128xf32> to vector<3x1x128xf32>
    %cst_8 = arith.constant dense<0.000000e+00> : vector<1x128xf32>
    %17 = vector.multi_reduction <add>, %16, %cst_8 [0] : vector<3x1x128xf32> to vector<1x128xf32>
    %18 = vector.shape_cast %17 : vector<1x128xf32> to vector<1x1x128xf32>
    %cst_9 = arith.constant 0.111111112 : f32
    %19 = vector.broadcast %cst_9 : f32 to vector<1x1x128xf32>
    %20 = arith.mulf %18, %19 : vector<1x1x128xf32>
    %cst_10 = arith.constant 9.99999974E-6 : f32
    %21 = vector.broadcast %cst_10 : f32 to vector<1x1x128xf32>
    %22 = arith.addf %20, %21 : vector<1x1x128xf32>
    %23 = math.rsqrt %22 : vector<1x1x128xf32>
    %24 = vector.broadcast %23 : vector<1x1x128xf32> to vector<3x3x128xf32>
    %25 = arith.mulf %13, %24 : vector<3x3x128xf32>
    %cst_11 = arith.constant 0.000000e+00 : f32
    %26 = vector.broadcast %cst_11 : f32 to vector<3x3x128xf32>
    %27 = arith.cmpf oge, %25, %26 : vector<3x3x128xf32>
    %cst_12 = arith.constant 2.000000e-01 : f32
    %28 = vector.broadcast %cst_12 : f32 to vector<3x3x128xf32>
    %29 = arith.mulf %28, %25 : vector<3x3x128xf32>
    %30 = arith.select %27, %25, %29 : vector<3x3x128xi1>, vector<3x3x128xf32>
    %31 = arith.truncf %30 : vector<3x3x128xf32> to vector<3x3x128xbf16>
    %c0_13 = arith.constant 0 : index
    %c0_14 = arith.constant 0 : index
    %c0_15 = arith.constant 0 : index
    %c0_16 = arith.constant 0 : index
    %32 = vector.load %arg4[%c0_13, %c0_14, %c0_15, %c0_16] : memref<1x3x3x128xbf16, #tpu.memory_space<vmem>>, vector<1x3x3x128xbf16>
    %33 = vector.shape_cast %32 : vector<1x3x3x128xbf16> to vector<3x3x128xbf16>
    %34 = vector.shape_cast %31 : vector<3x3x128xbf16> to vector<1x3x3x128xbf16>
    tpu.vector_store %arg4[%c0_13, %c0_14, %c0_15, %c0_16], %34 {strides = array<i32>} : memref<1x3x3x128xbf16, #tpu.memory_space<vmem>>, vector<1x3x3x128xbf16>,
    return
  }
  func.func @transform_0(%arg0: i32) -> (i32, i32, i32, i32) {
    %c0_i32 = arith.constant 0 : i32
    %c0_i32_0 = arith.constant 0 : i32
    %c0_i32_1 = arith.constant 0 : i32
    %c0_i32_2 = arith.constant 0 : i32
    return %arg0, %c0_i32, %c0_i32_0, %c0_i32_1 : i32, i32, i32, i32
  }
  func.func @transform_1(%arg0: i32) -> (i32, i32, i32) {
    %c0_i32 = arith.constant 0 : i32
    %c0_i32_0 = arith.constant 0 : i32
    %c0_i32_1 = arith.constant 0 : i32
    %c0_i32_2 = arith.constant 0 : i32
    return %c0_i32, %c0_i32_0, %c0_i32_1 : i32, i32, i32
  }
  func.func @transform_2(%arg0: i32) -> (i32, i32) {
    %c0_i32 = arith.constant 0 : i32
    %c0_i32_0 = arith.constant 0 : i32
    %c0_i32_1 = arith.constant 0 : i32
    return %c0_i32, %c0_i32_0 : i32, i32
  }
  func.func @transform_3(%arg0: i32) -> (i32, i32, i32, i32) {
    %c0_i32 = arith.constant 0 : i32
    %c0_i32_0 = arith.constant 0 : i32
    %c0_i32_1 = arith.constant 0 : i32
    %c0_i32_2 = arith.constant 0 : i32
    return %arg0, %c0_i32, %c0_i32_0, %c0_i32_1 : i32, i32, i32, i32
  }
}

module attributes {stable_mosaic.version = 11 : i64} {
  func.func @_conv_block_kernel(%arg0: i32, %arg1: memref<1x5x5x64xbf16, #tpu.memory_space<vmem>>, %arg2: memref<16x64x128xbf16, #tpu.memory_space<vmem>>, %arg3: memref<1x128xf32, #tpu.memory_space<vmem>>, %arg4: memref<1x2x2x128xf32, #tpu.memory_space<vmem>>, %arg5: memref<2x2x128xf32, #tpu.memory_space<vmem>>) attributes {dimension_semantics = [#tpu.dimension_semantics<parallel>], iteration_bounds = array<i64: 2>, scalar_prefetch = 0 : i64, scratch_operands = 1 : i64, tpu.core_type = #tpu.core_type<tc>, window_params = [{transform_indices = @transform_0, window_bounds = array<i64: 1, 5, 5, 64>}, {pipeline_mode = #tpu.pipeline_mode<synchronous>, transform_indices = @transform_1, window_bounds = array<i64: 16, 64, 128>}, {pipeline_mode = #tpu.pipeline_mode<synchronous>, transform_indices = @transform_2, window_bounds = array<i64: 1, 128>}, {transform_indices = @transform_3, window_bounds = array<i64: 1, 2, 2, 128>}]} {
    %c0_i32 = arith.constant 0 : i32
    %c2_i32 = arith.constant 2 : i32
    %0 = arith.addi %c0_i32, %c2_i32 : i32
    %c1_i32 = arith.constant 1 : i32
    scf.for %arg6 = %c0_i32 to %0 step %c1_i32  : i32 {
      %cst = arith.constant 0.000000e+00 : f32
      %9 = vector.broadcast %cst : f32 to vector<2x128xf32>
      %c0_i32_9 = arith.constant 0 : i32
      %10 = arith.addi %c0_i32_9, %arg6 : i32
      %c0_10 = arith.constant 0 : index
      %11 = arith.index_cast %10 : i32 to index
      %c0_11 = arith.constant 0 : index
      %c0_12 = arith.constant 0 : index
      %12 = vector.load %arg1[%c0_10, %11, %c0_11, %c0_12] : memref<1x5x5x64xbf16, #tpu.memory_space<vmem>>, vector<1x1x2x64xbf16>
      %13 = vector.shape_cast %12 : vector<1x1x2x64xbf16> to vector<2x64xbf16>
      %c0_13 = arith.constant 0 : index
      %c0_14 = arith.constant 0 : index
      %c0_15 = arith.constant 0 : index
      %14 = vector.load %arg2[%c0_13, %c0_14, %c0_15] : memref<16x64x128xbf16, #tpu.memory_space<vmem>>, vector<1x64x128xbf16>
      %15 = vector.shape_cast %14 : vector<1x64x128xbf16> to vector<64x128xbf16>
      %cst_16 = arith.constant dense<0.000000e+00> : vector<2x128xf32>
      %16 = tpu.matmul %13, %15, %cst_16 {dimension_numbers = #tpu.dot_dimension_numbers<[1], [0], [0], [1], [0, 0, 1, 1], [], []>} : vector<2x64xbf16>, vector<64x128xbf16>, vector<2x128xf32> -> vector<2x128xf32>
      %17 = arith.addf %9, %16 : vector<2x128xf32>
      %c0_i32_17 = arith.constant 0 : i32
      %18 = arith.addi %c0_i32_17, %arg6 : i32
      %c0_18 = arith.constant 0 : index
      %19 = arith.index_cast %18 : i32 to index
      %c1 = arith.constant 1 : index
      %c0_19 = arith.constant 0 : index
      %20 = vector.load %arg1[%c0_18, %19, %c1, %c0_19] : memref<1x5x5x64xbf16, #tpu.memory_space<vmem>>, vector<1x1x2x64xbf16>
      %21 = vector.shape_cast %20 : vector<1x1x2x64xbf16> to vector<2x64xbf16>
      %c1_20 = arith.constant 1 : index
      %c0_21 = arith.constant 0 : index
      %c0_22 = arith.constant 0 : index
      %22 = vector.load %arg2[%c1_20, %c0_21, %c0_22] : memref<16x64x128xbf16, #tpu.memory_space<vmem>>, vector<1x64x128xbf16>
      %23 = vector.shape_cast %22 : vector<1x64x128xbf16> to vector<64x128xbf16>
      %cst_23 = arith.constant dense<0.000000e+00> : vector<2x128xf32>
      %24 = tpu.matmul %21, %23, %cst_23 {dimension_numbers = #tpu.dot_dimension_numbers<[1], [0], [0], [1], [0, 0, 1, 1], [], []>} : vector<2x64xbf16>, vector<64x128xbf16>, vector<2x128xf32> -> vector<2x128xf32>
      %25 = arith.addf %17, %24 : vector<2x128xf32>
      %c0_i32_24 = arith.constant 0 : i32
      %26 = arith.addi %c0_i32_24, %arg6 : i32
      %c0_25 = arith.constant 0 : index
      %27 = arith.index_cast %26 : i32 to index
      %c2 = arith.constant 2 : index
      %c0_26 = arith.constant 0 : index
      %28 = vector.load %arg1[%c0_25, %27, %c2, %c0_26] : memref<1x5x5x64xbf16, #tpu.memory_space<vmem>>, vector<1x1x2x64xbf16>
      %29 = vector.shape_cast %28 : vector<1x1x2x64xbf16> to vector<2x64xbf16>
      %c2_27 = arith.constant 2 : index
      %c0_28 = arith.constant 0 : index
      %c0_29 = arith.constant 0 : index
      %30 = vector.load %arg2[%c2_27, %c0_28, %c0_29] : memref<16x64x128xbf16, #tpu.memory_space<vmem>>, vector<1x64x128xbf16>
      %31 = vector.shape_cast %30 : vector<1x64x128xbf16> to vector<64x128xbf16>
      %cst_30 = arith.constant dense<0.000000e+00> : vector<2x128xf32>
      %32 = tpu.matmul %29, %31, %cst_30 {dimension_numbers = #tpu.dot_dimension_numbers<[1], [0], [0], [1], [0, 0, 1, 1], [], []>} : vector<2x64xbf16>, vector<64x128xbf16>, vector<2x128xf32> -> vector<2x128xf32>
      %33 = arith.addf %25, %32 : vector<2x128xf32>
      %c0_i32_31 = arith.constant 0 : i32
      %34 = arith.addi %c0_i32_31, %arg6 : i32
      %c0_32 = arith.constant 0 : index
      %35 = arith.index_cast %34 : i32 to index
      %c3 = arith.constant 3 : index
      %c0_33 = arith.constant 0 : index
      %36 = vector.load %arg1[%c0_32, %35, %c3, %c0_33] : memref<1x5x5x64xbf16, #tpu.memory_space<vmem>>, vector<1x1x2x64xbf16>
      %37 = vector.shape_cast %36 : vector<1x1x2x64xbf16> to vector<2x64xbf16>
      %c3_34 = arith.constant 3 : index
      %c0_35 = arith.constant 0 : index
      %c0_36 = arith.constant 0 : index
      %38 = vector.load %arg2[%c3_34, %c0_35, %c0_36] : memref<16x64x128xbf16, #tpu.memory_space<vmem>>, vector<1x64x128xbf16>
      %39 = vector.shape_cast %38 : vector<1x64x128xbf16> to vector<64x128xbf16>
      %cst_37 = arith.constant dense<0.000000e+00> : vector<2x128xf32>
      %40 = tpu.matmul %37, %39, %cst_37 {dimension_numbers = #tpu.dot_dimension_numbers<[1], [0], [0], [1], [0, 0, 1, 1], [], []>} : vector<2x64xbf16>, vector<64x128xbf16>, vector<2x128xf32> -> vector<2x128xf32>
      %41 = arith.addf %33, %40 : vector<2x128xf32>
      %c1_i32_38 = arith.constant 1 : i32
      %42 = arith.addi %c1_i32_38, %arg6 : i32
      %c0_39 = arith.constant 0 : index
      %43 = arith.index_cast %42 : i32 to index
      %c0_40 = arith.constant 0 : index
      %c0_41 = arith.constant 0 : index
      %44 = vector.load %arg1[%c0_39, %43, %c0_40, %c0_41] : memref<1x5x5x64xbf16, #tpu.memory_space<vmem>>, vector<1x1x2x64xbf16>
      %45 = vector.shape_cast %44 : vector<1x1x2x64xbf16> to vector<2x64xbf16>
      %c4 = arith.constant 4 : index
      %c0_42 = arith.constant 0 : index
      %c0_43 = arith.constant 0 : index
      %46 = vector.load %arg2[%c4, %c0_42, %c0_43] : memref<16x64x128xbf16, #tpu.memory_space<vmem>>, vector<1x64x128xbf16>
      %47 = vector.shape_cast %46 : vector<1x64x128xbf16> to vector<64x128xbf16>
      %cst_44 = arith.constant dense<0.000000e+00> : vector<2x128xf32>
      %48 = tpu.matmul %45, %47, %cst_44 {dimension_numbers = #tpu.dot_dimension_numbers<[1], [0], [0], [1], [0, 0, 1, 1], [], []>} : vector<2x64xbf16>, vector<64x128xbf16>, vector<2x128xf32> -> vector<2x128xf32>
      %49 = arith.addf %41, %48 : vector<2x128xf32>
      %c1_i32_45 = arith.constant 1 : i32
      %50 = arith.addi %c1_i32_45, %arg6 : i32
      %c0_46 = arith.constant 0 : index
      %51 = arith.index_cast %50 : i32 to index
      %c1_47 = arith.constant 1 : index
      %c0_48 = arith.constant 0 : index
      %52 = vector.load %arg1[%c0_46, %51, %c1_47, %c0_48] : memref<1x5x5x64xbf16, #tpu.memory_space<vmem>>, vector<1x1x2x64xbf16>
      %53 = vector.shape_cast %52 : vector<1x1x2x64xbf16> to vector<2x64xbf16>
      %c5 = arith.constant 5 : index
      %c0_49 = arith.constant 0 : index
      %c0_50 = arith.constant 0 : index
      %54 = vector.load %arg2[%c5, %c0_49, %c0_50] : memref<16x64x128xbf16, #tpu.memory_space<vmem>>, vector<1x64x128xbf16>
      %55 = vector.shape_cast %54 : vector<1x64x128xbf16> to vector<64x128xbf16>
      %cst_51 = arith.constant dense<0.000000e+00> : vector<2x128xf32>
      %56 = tpu.matmul %53, %55, %cst_51 {dimension_numbers = #tpu.dot_dimension_numbers<[1], [0], [0], [1], [0, 0, 1, 1], [], []>} : vector<2x64xbf16>, vector<64x128xbf16>, vector<2x128xf32> -> vector<2x128xf32>
      %57 = arith.addf %49, %56 : vector<2x128xf32>
      %c1_i32_52 = arith.constant 1 : i32
      %58 = arith.addi %c1_i32_52, %arg6 : i32
      %c0_53 = arith.constant 0 : index
      %59 = arith.index_cast %58 : i32 to index
      %c2_54 = arith.constant 2 : index
      %c0_55 = arith.constant 0 : index
      %60 = vector.load %arg1[%c0_53, %59, %c2_54, %c0_55] : memref<1x5x5x64xbf16, #tpu.memory_space<vmem>>, vector<1x1x2x64xbf16>
      %61 = vector.shape_cast %60 : vector<1x1x2x64xbf16> to vector<2x64xbf16>
      %c6 = arith.constant 6 : index
      %c0_56 = arith.constant 0 : index
      %c0_57 = arith.constant 0 : index
      %62 = vector.load %arg2[%c6, %c0_56, %c0_57] : memref<16x64x128xbf16, #tpu.memory_space<vmem>>, vector<1x64x128xbf16>
      %63 = vector.shape_cast %62 : vector<1x64x128xbf16> to vector<64x128xbf16>
      %cst_58 = arith.constant dense<0.000000e+00> : vector<2x128xf32>
      %64 = tpu.matmul %61, %63, %cst_58 {dimension_numbers = #tpu.dot_dimension_numbers<[1], [0], [0], [1], [0, 0, 1, 1], [], []>} : vector<2x64xbf16>, vector<64x128xbf16>, vector<2x128xf32> -> vector<2x128xf32>
      %65 = arith.addf %57, %64 : vector<2x128xf32>
      %c1_i32_59 = arith.constant 1 : i32
      %66 = arith.addi %c1_i32_59, %arg6 : i32
      %c0_60 = arith.constant 0 : index
      %67 = arith.index_cast %66 : i32 to index
      %c3_61 = arith.constant 3 : index
      %c0_62 = arith.constant 0 : index
      %68 = vector.load %arg1[%c0_60, %67, %c3_61, %c0_62] : memref<1x5x5x64xbf16, #tpu.memory_space<vmem>>, vector<1x1x2x64xbf16>
      %69 = vector.shape_cast %68 : vector<1x1x2x64xbf16> to vector<2x64xbf16>
      %c7 = arith.constant 7 : index
      %c0_63 = arith.constant 0 : index
      %c0_64 = arith.constant 0 : index
      %70 = vector.load %arg2[%c7, %c0_63, %c0_64] : memref<16x64x128xbf16, #tpu.memory_space<vmem>>, vector<1x64x128xbf16>
      %71 = vector.shape_cast %70 : vector<1x64x128xbf16> to vector<64x128xbf16>
      %cst_65 = arith.constant dense<0.000000e+00> : vector<2x128xf32>
      %72 = tpu.matmul %69, %71, %cst_65 {dimension_numbers = #tpu.dot_dimension_numbers<[1], [0], [0], [1], [0, 0, 1, 1], [], []>} : vector<2x64xbf16>, vector<64x128xbf16>, vector<2x128xf32> -> vector<2x128xf32>
      %73 = arith.addf %65, %72 : vector<2x128xf32>
      %c2_i32_66 = arith.constant 2 : i32
      %74 = arith.addi %c2_i32_66, %arg6 : i32
      %c0_67 = arith.constant 0 : index
      %75 = arith.index_cast %74 : i32 to index
      %c0_68 = arith.constant 0 : index
      %c0_69 = arith.constant 0 : index
      %76 = vector.load %arg1[%c0_67, %75, %c0_68, %c0_69] : memref<1x5x5x64xbf16, #tpu.memory_space<vmem>>, vector<1x1x2x64xbf16>
      %77 = vector.shape_cast %76 : vector<1x1x2x64xbf16> to vector<2x64xbf16>
      %c8 = arith.constant 8 : index
      %c0_70 = arith.constant 0 : index
      %c0_71 = arith.constant 0 : index
      %78 = vector.load %arg2[%c8, %c0_70, %c0_71] : memref<16x64x128xbf16, #tpu.memory_space<vmem>>, vector<1x64x128xbf16>
      %79 = vector.shape_cast %78 : vector<1x64x128xbf16> to vector<64x128xbf16>
      %cst_72 = arith.constant dense<0.000000e+00> : vector<2x128xf32>
      %80 = tpu.matmul %77, %79, %cst_72 {dimension_numbers = #tpu.dot_dimension_numbers<[1], [0], [0], [1], [0, 0, 1, 1], [], []>} : vector<2x64xbf16>, vector<64x128xbf16>, vector<2x128xf32> -> vector<2x128xf32>
      %81 = arith.addf %73, %80 : vector<2x128xf32>
      %c2_i32_73 = arith.constant 2 : i32
      %82 = arith.addi %c2_i32_73, %arg6 : i32
      %c0_74 = arith.constant 0 : index
      %83 = arith.index_cast %82 : i32 to index
      %c1_75 = arith.constant 1 : index
      %c0_76 = arith.constant 0 : index
      %84 = vector.load %arg1[%c0_74, %83, %c1_75, %c0_76] : memref<1x5x5x64xbf16, #tpu.memory_space<vmem>>, vector<1x1x2x64xbf16>
      %85 = vector.shape_cast %84 : vector<1x1x2x64xbf16> to vector<2x64xbf16>
      %c9 = arith.constant 9 : index
      %c0_77 = arith.constant 0 : index
      %c0_78 = arith.constant 0 : index
      %86 = vector.load %arg2[%c9, %c0_77, %c0_78] : memref<16x64x128xbf16, #tpu.memory_space<vmem>>, vector<1x64x128xbf16>
      %87 = vector.shape_cast %86 : vector<1x64x128xbf16> to vector<64x128xbf16>
      %cst_79 = arith.constant dense<0.000000e+00> : vector<2x128xf32>
      %88 = tpu.matmul %85, %87, %cst_79 {dimension_numbers = #tpu.dot_dimension_numbers<[1], [0], [0], [1], [0, 0, 1, 1], [], []>} : vector<2x64xbf16>, vector<64x128xbf16>, vector<2x128xf32> -> vector<2x128xf32>
      %89 = arith.addf %81, %88 : vector<2x128xf32>
      %c2_i32_80 = arith.constant 2 : i32
      %90 = arith.addi %c2_i32_80, %arg6 : i32
      %c0_81 = arith.constant 0 : index
      %91 = arith.index_cast %90 : i32 to index
      %c2_82 = arith.constant 2 : index
      %c0_83 = arith.constant 0 : index
      %92 = vector.load %arg1[%c0_81, %91, %c2_82, %c0_83] : memref<1x5x5x64xbf16, #tpu.memory_space<vmem>>, vector<1x1x2x64xbf16>
      %93 = vector.shape_cast %92 : vector<1x1x2x64xbf16> to vector<2x64xbf16>
      %c10 = arith.constant 10 : index
      %c0_84 = arith.constant 0 : index
      %c0_85 = arith.constant 0 : index
      %94 = vector.load %arg2[%c10, %c0_84, %c0_85] : memref<16x64x128xbf16, #tpu.memory_space<vmem>>, vector<1x64x128xbf16>
      %95 = vector.shape_cast %94 : vector<1x64x128xbf16> to vector<64x128xbf16>
      %cst_86 = arith.constant dense<0.000000e+00> : vector<2x128xf32>
      %96 = tpu.matmul %93, %95, %cst_86 {dimension_numbers = #tpu.dot_dimension_numbers<[1], [0], [0], [1], [0, 0, 1, 1], [], []>} : vector<2x64xbf16>, vector<64x128xbf16>, vector<2x128xf32> -> vector<2x128xf32>
      %97 = arith.addf %89, %96 : vector<2x128xf32>
      %c2_i32_87 = arith.constant 2 : i32
      %98 = arith.addi %c2_i32_87, %arg6 : i32
      %c0_88 = arith.constant 0 : index
      %99 = arith.index_cast %98 : i32 to index
      %c3_89 = arith.constant 3 : index
      %c0_90 = arith.constant 0 : index
      %100 = vector.load %arg1[%c0_88, %99, %c3_89, %c0_90] : memref<1x5x5x64xbf16, #tpu.memory_space<vmem>>, vector<1x1x2x64xbf16>
      %101 = vector.shape_cast %100 : vector<1x1x2x64xbf16> to vector<2x64xbf16>
      %c11 = arith.constant 11 : index
      %c0_91 = arith.constant 0 : index
      %c0_92 = arith.constant 0 : index
      %102 = vector.load %arg2[%c11, %c0_91, %c0_92] : memref<16x64x128xbf16, #tpu.memory_space<vmem>>, vector<1x64x128xbf16>
      %103 = vector.shape_cast %102 : vector<1x64x128xbf16> to vector<64x128xbf16>
      %cst_93 = arith.constant dense<0.000000e+00> : vector<2x128xf32>
      %104 = tpu.matmul %101, %103, %cst_93 {dimension_numbers = #tpu.dot_dimension_numbers<[1], [0], [0], [1], [0, 0, 1, 1], [], []>} : vector<2x64xbf16>, vector<64x128xbf16>, vector<2x128xf32> -> vector<2x128xf32>
      %105 = arith.addf %97, %104 : vector<2x128xf32>
      %c3_i32 = arith.constant 3 : i32
      %106 = arith.addi %c3_i32, %arg6 : i32
      %c0_94 = arith.constant 0 : index
      %107 = arith.index_cast %106 : i32 to index
      %c0_95 = arith.constant 0 : index
      %c0_96 = arith.constant 0 : index
      %108 = vector.load %arg1[%c0_94, %107, %c0_95, %c0_96] : memref<1x5x5x64xbf16, #tpu.memory_space<vmem>>, vector<1x1x2x64xbf16>
      %109 = vector.shape_cast %108 : vector<1x1x2x64xbf16> to vector<2x64xbf16>
      %c12 = arith.constant 12 : index
      %c0_97 = arith.constant 0 : index
      %c0_98 = arith.constant 0 : index
      %110 = vector.load %arg2[%c12, %c0_97, %c0_98] : memref<16x64x128xbf16, #tpu.memory_space<vmem>>, vector<1x64x128xbf16>
      %111 = vector.shape_cast %110 : vector<1x64x128xbf16> to vector<64x128xbf16>
      %cst_99 = arith.constant dense<0.000000e+00> : vector<2x128xf32>
      %112 = tpu.matmul %109, %111, %cst_99 {dimension_numbers = #tpu.dot_dimension_numbers<[1], [0], [0], [1], [0, 0, 1, 1], [], []>} : vector<2x64xbf16>, vector<64x128xbf16>, vector<2x128xf32> -> vector<2x128xf32>
      %113 = arith.addf %105, %112 : vector<2x128xf32>
      %c3_i32_100 = arith.constant 3 : i32
      %114 = arith.addi %c3_i32_100, %arg6 : i32
      %c0_101 = arith.constant 0 : index
      %115 = arith.index_cast %114 : i32 to index
      %c1_102 = arith.constant 1 : index
      %c0_103 = arith.constant 0 : index
      %116 = vector.load %arg1[%c0_101, %115, %c1_102, %c0_103] : memref<1x5x5x64xbf16, #tpu.memory_space<vmem>>, vector<1x1x2x64xbf16>
      %117 = vector.shape_cast %116 : vector<1x1x2x64xbf16> to vector<2x64xbf16>
      %c13 = arith.constant 13 : index
      %c0_104 = arith.constant 0 : index
      %c0_105 = arith.constant 0 : index
      %118 = vector.load %arg2[%c13, %c0_104, %c0_105] : memref<16x64x128xbf16, #tpu.memory_space<vmem>>, vector<1x64x128xbf16>
      %119 = vector.shape_cast %118 : vector<1x64x128xbf16> to vector<64x128xbf16>
      %cst_106 = arith.constant dense<0.000000e+00> : vector<2x128xf32>
      %120 = tpu.matmul %117, %119, %cst_106 {dimension_numbers = #tpu.dot_dimension_numbers<[1], [0], [0], [1], [0, 0, 1, 1], [], []>} : vector<2x64xbf16>, vector<64x128xbf16>, vector<2x128xf32> -> vector<2x128xf32>
      %121 = arith.addf %113, %120 : vector<2x128xf32>
      %c3_i32_107 = arith.constant 3 : i32
      %122 = arith.addi %c3_i32_107, %arg6 : i32
      %c0_108 = arith.constant 0 : index
      %123 = arith.index_cast %122 : i32 to index
      %c2_109 = arith.constant 2 : index
      %c0_110 = arith.constant 0 : index
      %124 = vector.load %arg1[%c0_108, %123, %c2_109, %c0_110] : memref<1x5x5x64xbf16, #tpu.memory_space<vmem>>, vector<1x1x2x64xbf16>
      %125 = vector.shape_cast %124 : vector<1x1x2x64xbf16> to vector<2x64xbf16>
      %c14 = arith.constant 14 : index
      %c0_111 = arith.constant 0 : index
      %c0_112 = arith.constant 0 : index
      %126 = vector.load %arg2[%c14, %c0_111, %c0_112] : memref<16x64x128xbf16, #tpu.memory_space<vmem>>, vector<1x64x128xbf16>
      %127 = vector.shape_cast %126 : vector<1x64x128xbf16> to vector<64x128xbf16>
      %cst_113 = arith.constant dense<0.000000e+00> : vector<2x128xf32>
      %128 = tpu.matmul %125, %127, %cst_113 {dimension_numbers = #tpu.dot_dimension_numbers<[1], [0], [0], [1], [0, 0, 1, 1], [], []>} : vector<2x64xbf16>, vector<64x128xbf16>, vector<2x128xf32> -> vector<2x128xf32>
      %129 = arith.addf %121, %128 : vector<2x128xf32>
      %c3_i32_114 = arith.constant 3 : i32
      %130 = arith.addi %c3_i32_114, %arg6 : i32
      %c0_115 = arith.constant 0 : index
      %131 = arith.index_cast %130 : i32 to index
      %c3_116 = arith.constant 3 : index
      %c0_117 = arith.constant 0 : index
      %132 = vector.load %arg1[%c0_115, %131, %c3_116, %c0_117] : memref<1x5x5x64xbf16, #tpu.memory_space<vmem>>, vector<1x1x2x64xbf16>
      %133 = vector.shape_cast %132 : vector<1x1x2x64xbf16> to vector<2x64xbf16>
      %c15 = arith.constant 15 : index
      %c0_118 = arith.constant 0 : index
      %c0_119 = arith.constant 0 : index
      %134 = vector.load %arg2[%c15, %c0_118, %c0_119] : memref<16x64x128xbf16, #tpu.memory_space<vmem>>, vector<1x64x128xbf16>
      %135 = vector.shape_cast %134 : vector<1x64x128xbf16> to vector<64x128xbf16>
      %cst_120 = arith.constant dense<0.000000e+00> : vector<2x128xf32>
      %136 = tpu.matmul %133, %135, %cst_120 {dimension_numbers = #tpu.dot_dimension_numbers<[1], [0], [0], [1], [0, 0, 1, 1], [], []>} : vector<2x64xbf16>, vector<64x128xbf16>, vector<2x128xf32> -> vector<2x128xf32>
      %137 = arith.addf %129, %136 : vector<2x128xf32>
      %138 = arith.index_cast %arg6 : i32 to index
      %c0_121 = arith.constant 0 : index
      %c0_122 = arith.constant 0 : index
      %139 = vector.load %arg5[%138, %c0_121, %c0_122] : memref<2x2x128xf32, #tpu.memory_space<vmem>>, vector<1x2x128xf32>
      %140 = vector.shape_cast %139 : vector<1x2x128xf32> to vector<2x128xf32>
      %141 = vector.shape_cast %137 : vector<2x128xf32> to vector<1x2x128xf32>
      tpu.vector_store %arg5[%138, %c0_121, %c0_122], %141 {strides = array<i32>} : memref<2x2x128xf32, #tpu.memory_space<vmem>>, vector<1x2x128xf32>,
    }
    %c2_i32_0 = arith.constant 2 : i32
    %c0 = arith.constant 0 : index
    %c0_1 = arith.constant 0 : index
    %c0_2 = arith.constant 0 : index
    %1 = vector.load %arg5[%c0, %c0_1, %c0_2] : memref<2x2x128xf32, #tpu.memory_space<vmem>>, vector<2x2x128xf32>
    %c0_3 = arith.constant 0 : index
    %c0_4 = arith.constant 0 : index
    %2 = vector.load %arg3[%c0_3, %c0_4] : memref<1x128xf32, #tpu.memory_space<vmem>>, vector<1x128xf32>
    %3 = vector.shape_cast %2 : vector<1x128xf32> to vector<1x1x128xf32>
    %4 = vector.broadcast %3 : vector<1x1x128xf32> to vector<2x2x128xf32>
    %5 = arith.addf %1, %4 : vector<2x2x128xf32>
    %c0_5 = arith.constant 0 : index
    %c0_6 = arith.constant 0 : index
    %c0_7 = arith.constant 0 : index
    %c0_8 = arith.constant 0 : index
    %6 = vector.load %arg4[%c0_5, %c0_6, %c0_7, %c0_8] : memref<1x2x2x128xf32, #tpu.memory_space<vmem>>, vector<1x2x2x128xf32>
    %7 = vector.shape_cast %6 : vector<1x2x2x128xf32> to vector<2x2x128xf32>
    %8 = vector.shape_cast %5 : vector<2x2x128xf32> to vector<1x2x2x128xf32>
    tpu.vector_store %arg4[%c0_5, %c0_6, %c0_7, %c0_8], %8 {strides = array<i32>} : memref<1x2x2x128xf32, #tpu.memory_space<vmem>>, vector<1x2x2x128xf32>,
    return
  }
  func.func @transform_0(%arg0: i32) -> (i32, i32, i32, i32) {
    %c0_i32 = arith.constant 0 : i32
    %c0_i32_0 = arith.constant 0 : i32
    %c0_i32_1 = arith.constant 0 : i32
    %c0_i32_2 = arith.constant 0 : i32
    return %arg0, %c0_i32, %c0_i32_0, %c0_i32_1 : i32, i32, i32, i32
  }
  func.func @transform_1(%arg0: i32) -> (i32, i32, i32) {
    %c0_i32 = arith.constant 0 : i32
    %c0_i32_0 = arith.constant 0 : i32
    %c0_i32_1 = arith.constant 0 : i32
    %c0_i32_2 = arith.constant 0 : i32
    return %c0_i32, %c0_i32_0, %c0_i32_1 : i32, i32, i32
  }
  func.func @transform_2(%arg0: i32) -> (i32, i32) {
    %c0_i32 = arith.constant 0 : i32
    %c0_i32_0 = arith.constant 0 : i32
    %c0_i32_1 = arith.constant 0 : i32
    return %c0_i32, %c0_i32_0 : i32, i32
  }
  func.func @transform_3(%arg0: i32) -> (i32, i32, i32, i32) {
    %c0_i32 = arith.constant 0 : i32
    %c0_i32_0 = arith.constant 0 : i32
    %c0_i32_1 = arith.constant 0 : i32
    %c0_i32_2 = arith.constant 0 : i32
    return %arg0, %c0_i32, %c0_i32_0, %c0_i32_1 : i32, i32, i32, i32
  }
}

</mosaic_0001>

<bundles_post_ra>
// kernel: forward.5
= control target key start
LH: loop header
LB: loop body
LE: loop exit
PB: predicated region body
PF: predicated region fallthrough
CT: control target
= control target key end

     0   :  { %s1462_s12 = smov 0   ;;  %s1667_s0 = inlined_call_operand.vmem [shape: bf16[2,68,17,3], index: 0, kind: input, shape index: {}]   ;;  %s1668_s1 = inlined_call_operand.vmem [shape: bf16[16,3,128], index: 1, kind: input, shape index: {}]   ;;  %s1669_s2 = inlined_call_operand.vmem [shape: f32[1,128], index: 2, kind: input, shape index: {}]   ;;  %s1670_s3 = inlined_call_operand.vmem [shape: bf16[2,16,16,128], index: 3, kind: output, shape index: {}]  }
   0x1 LB: > { %s1151_s13 = sadd.s32 4294967295, %s1435_s12   ;;  %p1155_p0 = scmp.ge.s32.totalorder %s1435_s12, 1  ;;  %s1435_s12 = sphi %s1462_s12, %s13_s12  }
   0x2   : > { %p137_p1 = scmp.lt.s32.totalorder %s1435_s12, 3 }
   0x4   : > { %p138_p2 = pnand %p1155_p0, %p137_p1 }
   0x5   : > { %p161_p3 = scmp.lt.s32.totalorder (!%p138_p2), %s1151_s13, 1  ;;  %s1480_s22 = smov (!%p138_p2), 0  }
   0x6   : > { %141 = sbr.rel (%p138_p2) target bundleno = 271 (0x10f), region = 32 }
   0xb   : > { %s1672_s13 = smov (!%p161_p3, %s1151_s13), 1 }
   0xc   : > { %s1406_s14 = smul.u32 816, %s1672_s13  ;;  %s1293_s15 = sshll.u32 %s1672_s13, 7 }
   0xd   : > { %s1473_s18 = scalar_lea.vmem %s1670_s3, %s1293_s15 }
   0xe   : > { %s1478_s21 = scalar_lea.vmem %s1667_s0, %s1406_s14 }
   0xf LB: >> { %v1162_v0 = vld [vmem:[%s1668_s1 + $0x2] sm:$0x3]  ;;  %vm201_vm0 = vcmask 1040384   ;;  %vm202_vm1 = vcmask 1041408   ;;  %v1441_v1 = vmov 65535   ;;  %s1294_s29 = smul.u32 12, %s1439_s22  ;;  %s1439_s22 = sphi %s1480_s22, %s177_s22  }
  0x10   : >> { %v203_v2 = vsel %vm201_vm0, 4294967295, %v1441_v1  ;;  %v183_v3 = vld [vmem:[%s1668_s1] sm:$0x3]  ;;  %v1173_v4 = vld [vmem:[%s1668_s1 + $0x4] sm:$0x3]  ;;  %vm197_vm2 = vcmask 23552  }
  0x11   : >> { %v1494_v5 = vsel %vm202_vm1, %v203_v2, 0  ;;  %v1182_v6 = vld [vmem:[%s1668_s1 + $0x6] sm:$0x3]  ;;  %v1207_v11 = vld [vmem:[%s1668_s1 + $0xc] sm:$0x3]  ;;  %s1514_s11 = scalar_lea.vmem %s1478_s21, %s1294_s29  ;;  %s1290_s7 = sshll.u32 %s1439_s22, 4 }
  0x12   : >> { %v206_v7 = vand.u32 %v1162_v0, %v1494_v5  ;;  %v231_v8 = vand.u32 %v1494_v5, %v183_v3  ;;  %v277_v9 = vand.u32 %v1173_v4, %v1494_v5  ;;  %v324_v10 = vand.u32 %v1182_v6, %v1494_v5  ;;  %v1190_v12 = vld [vmem:[%s1668_s1 + $0x8] sm:$0x3]  ;;  %v1216_v13 = vld [vmem:[%s1668_s1 + $0xe] sm:$0x3]  ;;  %v1198_v16 = vld [vmem:[%s1668_s1 + $0xa] sm:$0x3] }
  0x13   : >> { %v441_v14 = vand.u32 %v1207_v11, %v1494_v5  ;;  %v359_v15 = vand.u32 %v1190_v12, %v1494_v5  ;;  %v1224_v17 = vld [vmem:[%s1668_s1 + $0x10] sm:$0x3]  ;;  %v1295_v19 = vld [vmem:[%s1514_s11] sm:$0xff]  ;;  %v488_v21 = vand.u32 %v1216_v13, %v1494_v5  ;;  %v394_v22 = vand.u32 %v1198_v16, %v1494_v5  ;;  %v249_v23 = vld [vmem:[%s1514_s11 + $0x8] sm:$0x1]  ;;  %s835_s8 = scalar_lea.vmem [#allocation2], %s1290_s7 }
  0x14   : >> { %215 = vmatpush.bf16.msra.mxu0 %v206_v7  ;;  %240 = vmatpush.bf16.msra.mxu1 %v231_v8  ;;  %v1296_v18 = vld [vmem:[%s1514_s11 + $0xcc] sm:$0xff]  ;;  %v1297_v20 = vld [vmem:[%s1514_s11] sm:$0xff]  ;;  %v1181_v25 = vld [vmem:[%s1514_s11 + $0xd4] sm:$0x1]  ;;  %v523_v26 = vand.u32 %v1224_v17, %v1494_v5  ;;  %v257_v27 = vunpack.c.l.b16 %v249_v23  ;;  %vm260_vm3 = vsmask.f32 7424 }
  0x15   : >> { %286 = vmatpush.bf16.msra.mxu2 %v277_v9  ;;  %333 = vmatpush.bf16.msra.mxu3 %v324_v10  ;;  %v1298_v24 = vld [vmem:[%s1514_s11 + $0xcc] sm:$0xff]  ;;  %v262_v28 = vshrl.u32 %v1297_v20, 16  ;;  %v264_v29 = vshll.u32 %v1297_v20, 16  ;;  %v305_v30 = vunpack.c.l.b16 %v1181_v25  ;;  %v1206_v36 = vld [vmem:[%s1514_s11 + $0x1a0] sm:$0x1]  ;;  %v1301_v46 = vld [vmem:[%s1514_s11 + $0x198] sm:$0xff] }
  0x16   : >> { %v309_v31 = vshrl.u32 %v1298_v24, 16  ;;  %v311_v32 = vshll.u32 %v1298_v24, 16  ;;  %v259_v33 = vpack.c.b16 %v257_v27, %v257_v27  ;;  %v1215_v38 = vld [vmem:[%s1514_s11 + $0x26c] sm:$0x1]  ;;  %v1241_v39 = vld [vmem:[%s1668_s1 + $0x14] sm:$0x3]  ;;  %v422_v47 = vunpack.c.l.b16 %v1206_v36 }
  0x17   : >> { %1167 = vmatmul.msk.bf16.vlgmr.msra.gmra.mxu0 %vm197_vm2, %v1296_v18  ;;  %1172 = vmatmul.msk.bf16.vlgmr.msra.gmra.mxu1 %vm197_vm2, %v1295_v19  ;;  %v266_v34 = vrot.slane %v264_v29, 1  ;;  %v307_v35 = vpack.c.b16 %v305_v30, %v305_v30  ;;  %v1250_v43 = vld [vmem:[%s1668_s1 + $0x16] sm:$0x3]  ;;  %v1232_v44 = vld [vmem:[%s1668_s1 + $0x12] sm:$0x3]  ;;  %v1302_v50 = vld [vmem:[%s1514_s11 + $0x264] sm:$0xff]  ;;  %v469_v51 = vunpack.c.l.b16 %v1215_v38  ;;  %v605_v52 = vand.u32 %v1241_v39, %v1494_v5 }
  0x18   : >> { %368 = vmatpush.bf16.msrb.mxu0 %v359_v15  ;;  %403 = vmatpush.bf16.msrb.mxu1 %v394_v22  ;;  %v313_v37 = vrot.slane %v311_v32, 1  ;;  %v269_v41 = vshll.u32 %v259_v33, 16  ;;  %v652_v53 = vand.u32 %v1250_v43, %v1494_v5  ;;  %v558_v54 = vand.u32 %v1232_v44, %v1494_v5  ;;  %v1258_v61 = vld [vmem:[%s1668_s1 + $0x18] sm:$0x3]  ;;  %v1266_v62 = vld [vmem:[%s1668_s1 + $0x1a] sm:$0x3] }
  0x19   : >> { %450 = vmatpush.bf16.msrb.mxu2 %v441_v14  ;;  %497 = vmatpush.bf16.msrb.mxu3 %v488_v21  ;;  %v267_v40 = vor.u32 %v266_v34, %v262_v28  ;;  %v316_v42 = vshll.u32 %v307_v35, 16  ;;  %v424_v57 = vpack.c.b16 %v422_v47, %v422_v47  ;;  %v428_v58 = vshll.u32 %v1301_v46, 16  ;;  %v1299_v63 = vld [vmem:[%s1514_s11 + $0x198] sm:$0xff]  ;;  %v1300_v0 = vld [vmem:[%s1514_s11 + $0x264] sm:$0xff]  ;;  %v1240_v14 = vld [vmem:[%s1514_s11 + $0x14] sm:$0x1] }
  0x1a   : >> { %v314_v45 = vor.u32 %v313_v37, %v309_v31  ;;  %v271_v48 = vrot.slane %v269_v41, 1  ;;  %v471_v59 = vpack.c.b16 %v469_v51, %v469_v51  ;;  %v475_v60 = vshll.u32 %v1302_v50, 16  ;;  %v1249_v15 = vld [vmem:[%s1514_s11 + $0xe0] sm:$0x1]  ;;  %v1275_v16 = vld [vmem:[%s1668_s1 + $0x1c] sm:$0x3] }
  0x1b   : >> { %v318_v49 = vrot.slane %v316_v42, 1  ;;  %v426_v1 = vshrl.u32 %v1301_v46, 16  ;;  %v430_v2 = vrot.slane %v428_v58, 1  ;;  %v433_v3 = vshll.u32 %v424_v57, 16  ;;  %v1284_v17 = vld [vmem:[%s1668_s1 + $0x1e] sm:$0x3] }
  0x1c   : >> { %532 = vmatpush.bf16.msra.mxu0 %v523_v26  ;;  %v272_v55 = vsel %vm260_vm3, %v267_v40, %v271_v48  ;;  %567 = vmatpush.bf16.msra.mxu1 %v558_v54  ;;  %v473_v4 = vshrl.u32 %v1302_v50, 16  ;;  %v477_v6 = vrot.slane %v475_v60, 1  ;;  %v480_v7 = vshll.u32 %v471_v59, 16  ;;  %v1305_v21 = vld [vmem:[%s1514_s11 + $0xc] sm:$0xff]  ;;  %v1306_v22 = vld [vmem:[%s1514_s11 + $0xd8] sm:$0xff]  ;;  %v1309_v43 = vld [vmem:[%s1514_s11 + $0x1a4] sm:$0xff] }
  0x1d   : >> { %v319_v56 = vsel %vm260_vm3, %v314_v45, %v318_v49  ;;  %1178 = vmatmul.msk.bf16.vlgmr.msra.gmra.mxu2 %vm197_vm2, %v272_v55  ;;  %v687_v8 = vand.u32 %v1258_v61, %v1494_v5  ;;  %v722_v9 = vand.u32 %v1266_v62, %v1494_v5  ;;  %v431_v10 = vor.u32 %v430_v2, %v426_v1  ;;  %v1303_v30 = vld [vmem:[%s1514_s11 + $0xc] sm:$0xff]  ;;  %v1304_v31 = vld [vmem:[%s1514_s11 + $0xd8] sm:$0xff]  ;;  %s177_s22 = sadd.s32 1, %s1439_s22  }
  0x1e   : >> { %1187 = vmatmul.msk.bf16.vlgmr.msra.gmra.mxu3 %vm197_vm2, %v319_v56  ;;  %614 = vmatpush.bf16.msra.mxu2 %v605_v52  ;;  %v435_v11 = vrot.slane %v433_v3, 1  ;;  %v478_v12 = vor.u32 %v477_v6, %v473_v4  ;;  %v482_v13 = vrot.slane %v480_v7, 1  ;;  %v586_v19 = vunpack.c.l.b16 %v1240_v14  ;;  %v1274_v41 = vld [vmem:[%s1514_s11 + $0x1ac] sm:$0x1]  ;;  %v1283_v42 = vld [vmem:[%s1514_s11 + $0x278] sm:$0x1] }
  0x1f   : >> { %661 = vmatpush.bf16.msra.mxu3 %v652_v53  ;;  %v633_v23 = vunpack.c.l.b16 %v1249_v15  ;;  %v769_v24 = vand.u32 %v1275_v16, %v1494_v5  ;;  %v816_v25 = vand.u32 %v1284_v17, %v1494_v5  ;;  %v592_v27 = vshll.u32 %v1305_v21, 16  ;;  %v1310_v47 = vld [vmem:[%s1514_s11 + $0x270] sm:$0xff]  ;;  %v1307_v53 = vld [vmem:[%s1514_s11 + $0x1a4] sm:$0xff]  ;;  %p174_p4 = scmp.ge.s32.totalorder %s177_s22, 16  }
  0x20   : >> { %v436_v18 = vsel %vm260_vm3, %v431_v10, %v435_v11  ;;  %v483_v20 = vsel %vm260_vm3, %v478_v12, %v482_v13  ;;  %v588_v26 = vpack.c.b16 %v586_v19, %v586_v19  ;;  %v639_v29 = vshll.u32 %v1306_v22, 16  ;;  %v1308_v54 = vld [vmem:[%s1514_s11 + $0x270] sm:$0xff] }
  0x21   : >> { %v635_v28 = vpack.c.b16 %v633_v23, %v633_v23  ;;  %v590_v32 = vshrl.u32 %v1305_v21, 16  ;;  %v637_v33 = vshrl.u32 %v1306_v22, 16  ;;  %v594_v34 = vrot.slane %v592_v27, 1 }
  0x22   : >> { %v597_v5 = vshll.u32 %v588_v26, 16  ;;  %v641_v35 = vrot.slane %v639_v29, 1  ;;  %v750_v46 = vunpack.c.l.b16 %v1274_v41  ;;  %v797_v48 = vunpack.c.l.b16 %v1283_v42 }
  0x23   : >> { %v644_v36 = vshll.u32 %v635_v28, 16  ;;  %v595_v37 = vor.u32 %v594_v34, %v590_v32  ;;  %v756_v49 = vshll.u32 %v1309_v43, 16  ;;  %v803_v52 = vshll.u32 %v1310_v47, 16 }
  0x24   : >> { %v599_v38 = vrot.slane %v597_v5, 1  ;;  %v642_v39 = vor.u32 %v641_v35, %v637_v33  ;;  %v752_v50 = vpack.c.b16 %v750_v46, %v750_v46  ;;  %v799_v51 = vpack.c.b16 %v797_v48, %v797_v48 }
  0x25   : >> { %v646_v40 = vrot.slane %v644_v36, 1  ;;  %v754_v55 = vshrl.u32 %v1309_v43, 16  ;;  %v758_v56 = vrot.slane %v756_v49, 1  ;;  %v801_v58 = vshrl.u32 %v1310_v47, 16 }
  0x26   : >> { %v600_v44 = vsel %vm260_vm3, %v595_v37, %v599_v38  ;;  %v761_v57 = vshll.u32 %v752_v50, 16  ;;  %v805_v59 = vrot.slane %v803_v52, 1  ;;  %v808_v60 = vshll.u32 %v799_v51, 16 }
  0x27   : >> { %1195 = vmatmul.msk.bf16.vlgmr.msrb.gmra.mxu0 %vm197_vm2, %v1299_v63  ;;  %1203 = vmatmul.msk.bf16.vlgmr.msrb.gmra.mxu1 %vm197_vm2, %v1300_v0  ;;  %v647_v45 = vsel %vm260_vm3, %v642_v39, %v646_v40  ;;  %v759_v61 = vor.u32 %v758_v56, %v754_v55 }
  0x28   : >> { %696 = vmatpush.bf16.msrb.mxu0 %v687_v8  ;;  %731 = vmatpush.bf16.msrb.mxu1 %v722_v9  ;;  %v763_v62 = vrot.slane %v761_v57, 1  ;;  %v806_v63 = vor.u32 %v805_v59, %v801_v58  ;;  %v810_v0 = vrot.slane %v808_v60, 1 }
  0x2a   : >> { %v764_v1 = vsel %vm260_vm3, %v759_v61, %v763_v62  ;;  %v811_v2 = vsel %vm260_vm3, %v806_v63, %v810_v0 }
  0x2d   : >> { %1212 = vmatmul.msk.bf16.vlgmr.msrb.gmra.mxu2 %vm197_vm2, %v436_v18 }
  0x2e   : >> { %1221 = vmatmul.msk.bf16.vlgmr.msrb.gmra.mxu3 %vm197_vm2, %v483_v20  ;;  %778 = vmatpush.bf16.msrb.mxu2 %v769_v24 }
  0x2f   : >> { %825 = vmatpush.bf16.msrb.mxu3 %v816_v25 }
  0x37   : >> { %1229 = vmatmul.msk.bf16.vlgmr.msra.gmra.mxu0 %vm197_vm2, %v1303_v30  ;;  %1237 = vmatmul.msk.bf16.vlgmr.msra.gmra.mxu1 %vm197_vm2, %v1304_v31 }
  0x3d   : >> { %1246 = vmatmul.msk.bf16.vlgmr.msra.gmra.mxu2 %vm197_vm2, %v600_v44 }
  0x3e   : >> { %1255 = vmatmul.msk.bf16.vlgmr.msra.gmra.mxu3 %vm197_vm2, %v647_v45 }
  0x47   : >> { %1263 = vmatmul.msk.bf16.vlgmr.msrb.gmra.mxu0 %vm197_vm2, %v1307_v53  ;;  %1271 = vmatmul.msk.bf16.vlgmr.msrb.gmra.mxu1 %vm197_vm2, %v1308_v54 }
  0x4d   : >> { %1280 = vmatmul.msk.bf16.vlgmr.msrb.gmra.mxu2 %vm197_vm2, %v764_v1 }
  0x4e   : >> { %1289 = vmatmul.msk.bf16.vlgmr.msrb.gmra.mxu3 %vm197_vm2, %v811_v2 }
  0x94   : >> { %v217_v3 = vpop.f32.mrf.mxu0  ;;  %v242_v4 = vpop.f32.mrf.mxu1 }
  0x95   : >> { %v243_v12 = vadd.f32 %v242_v4, %v217_v3  ;;  %v1610_v3 = vld [vmem:[%s1669_s2] ss:$0 sm:$0xff] (%p174_p4) }
  0x9c   : >> { %v219_v6 = vpop.f32.mrf.mxu0  ;;  %v244_v7 = vpop.f32.mrf.mxu1 }
  0x9d   : >> { %v245_v19 = vadd.f32 %v244_v7, %v219_v6 }
  0xa0   : >> { %v288_v8 = vpop.f32.mrf.mxu2 }
  0xa1   : >> { %v335_v9 = vpop.f32.mrf.mxu3  ;;  %v293_v13 = vadd.f32 %v288_v8, %v243_v12 }
  0xa3   : >> { %v340_v17 = vadd.f32 %v335_v9, %v293_v13 }
  0xa4   : >> { %v370_v10 = vpop.f32.mrf.mxu0  ;;  %v405_v11 = vpop.f32.mrf.mxu1 }
  0xa5   : >> { %v375_v20 = vadd.f32 %v370_v10, %v340_v17 }
  0xa7   : >> { %v410_v25 = vadd.f32 %v405_v11, %v375_v20 }
  0xa8   : >> { %v290_v14 = vpop.f32.mrf.mxu2 }
  0xa9   : >> { %v337_v15 = vpop.f32.mrf.mxu3  ;;  %v294_v21 = vadd.f32 %v290_v14, %v245_v19 }
  0xab   : >> { %v341_v26 = vadd.f32 %v337_v15, %v294_v21 }
  0xac   : >> { %v372_v16 = vpop.f32.mrf.mxu0  ;;  %v407_v18 = vpop.f32.mrf.mxu1 }
  0xad   : >> { %v376_v29 = vadd.f32 %v372_v16, %v341_v26 }
  0xaf   : >> { %v411_v33 = vadd.f32 %v407_v18, %v376_v29 }
  0xb0   : >> { %v452_v22 = vpop.f32.mrf.mxu2 }
  0xb1   : >> { %v499_v23 = vpop.f32.mrf.mxu3  ;;  %v457_v27 = vadd.f32 %v452_v22, %v410_v25 }
  0xb3   : >> { %v504_v32 = vadd.f32 %v499_v23, %v457_v27 }
  0xb4   : >> { %v534_v24 = vpop.f32.mrf.mxu0  ;;  %v569_v28 = vpop.f32.mrf.mxu1 }
  0xb5   : >> { %v539_v5 = vadd.f32 %v534_v24, %v504_v32 }
  0xb7   : >> { %v574_v39 = vadd.f32 %v569_v28, %v539_v5 }
  0xb8   : >> { %v454_v30 = vpop.f32.mrf.mxu2 }
  0xb9   : >> { %v501_v31 = vpop.f32.mrf.mxu3  ;;  %v458_v35 = vadd.f32 %v454_v30, %v411_v33 }
  0xbb   : >> { %v505_v40 = vadd.f32 %v501_v31, %v458_v35 }
  0xbc   : >> { %v536_v34 = vpop.f32.mrf.mxu0  ;;  %v571_v36 = vpop.f32.mrf.mxu1 }
  0xbd   : >> { %v540_v42 = vadd.f32 %v536_v34, %v505_v40 }
  0xbf   : >> { %v575_v47 = vadd.f32 %v571_v36, %v540_v42 }
  0xc0   : >> { %v616_v37 = vpop.f32.mrf.mxu2 }
  0xc1   : >> { %v663_v38 = vpop.f32.mrf.mxu3  ;;  %v621_v41 = vadd.f32 %v616_v37, %v574_v39 }
  0xc3   : >> { %v668_v44 = vadd.f32 %v663_v38, %v621_v41 }
  0xc4   : >> { %v698_v43 = vpop.f32.mrf.mxu0  ;;  %v733_v48 = vpop.f32.mrf.mxu1 }
  0xc5   : >> { %v703_v49 = vadd.f32 %v698_v43, %v668_v44 }
  0xc7   : >> { %v738_v51 = vadd.f32 %v733_v48, %v703_v49 }
  0xc8   : >> { %v618_v45 = vpop.f32.mrf.mxu2 }
  0xc9   : >> { %v665_v46 = vpop.f32.mrf.mxu3  ;;  %v622_v50 = vadd.f32 %v618_v45, %v575_v47 }
  0xcb   : >> { %v669_v52 = vadd.f32 %v665_v46, %v622_v50 }
  0xcc   : >> { %v700_v53 = vpop.f32.mrf.mxu0  ;;  %v735_v59 = vpop.f32.mrf.mxu1 }
  0xcd   : >> { %v704_v57 = vadd.f32 %v700_v53, %v669_v52 }
  0xcf   : >> { %v739_v60 = vadd.f32 %v735_v59, %v704_v57 }
  0xd0   : >> { %v780_v54 = vpop.f32.mrf.mxu2 }
  0xd1   : >> { %v827_v55 = vpop.f32.mrf.mxu3  ;;  %v785_v56 = vadd.f32 %v780_v54, %v738_v51 }
  0xd3   : >> { %v832_v58 = vadd.f32 %v827_v55, %v785_v56 }
  0xd5   : >> { %836 = vst [vmem:[%s835_s8] sm:$0xff] %v832_v58 }
  0xd8   : >> { %v782_v61 = vpop.f32.mrf.mxu2 }
  0xd9   : >> { %v786_v62 = vadd.f32 %v782_v61, %v739_v60  ;;  %v829_v63 = vpop.f32.mrf.mxu3  ;;  %176 = sbr.rel (!%p174_p4) target bundleno = 15 (0xf), region = 93 }
  0xdb   : >> { %v833_v0 = vadd.f32 %v829_v63, %v786_v62 }
  0xdd   : >> { %837 = vst [vmem:[%s835_s8 + $0x8] sm:$0xff] %v833_v0 }
  0xe4   : > { %v838_v1 = vld [vmem:[#allocation2] sm:$0xff]  ;;  %v839_v2 = vld [vmem:[#allocation2 + $0x8] sm:$0xff]  ;;  %v840_v4 = vld [vmem:[#allocation2 + $0x10] sm:$0xff] }
  0xe5   : > { %v841_v6 = vld [vmem:[#allocation2 + $0x18] sm:$0xff]  ;;  %v842_v7 = vld [vmem:[#allocation2 + $0x20] sm:$0xff]  ;;  %v843_v8 = vld [vmem:[#allocation2 + $0x28] sm:$0xff]  ;;  %v874_v10 = vadd.f32 %v1610_v3, %v838_v1  ;;  %v875_v11 = vadd.f32 %v1610_v3, %v839_v2  ;;  %v876_v12 = vadd.f32 %v1610_v3, %v840_v4 }
  0xe6   : > { %v844_v9 = vld [vmem:[#allocation2 + $0x30] sm:$0xff]  ;;  %v877_v13 = vadd.f32 %v1610_v3, %v841_v6  ;;  %v845_v14 = vld [vmem:[#allocation2 + $0x38] sm:$0xff]  ;;  %v878_v15 = vadd.f32 %v1610_v3, %v842_v7  ;;  %v879_v16 = vadd.f32 %v1610_v3, %v843_v8  ;;  %v846_v25 = vld [vmem:[#allocation2 + $0x40] sm:$0xff] }
  0xe7   : > { %v880_v17 = vadd.f32 %v1610_v3, %v844_v9  ;;  %v881_v18 = vadd.f32 %v1610_v3, %v845_v14  ;;  %vm906_vm4 = vcmp.ge.f32.partialorder %v874_v10, 0.0  ;;  %vm907_vm5 = vcmp.ge.f32.partialorder %v875_v11, 0.0  ;;  %v847_v30 = vld [vmem:[#allocation2 + $0x48] sm:$0xff]  ;;  %v848_v31 = vld [vmem:[#allocation2 + $0x50] sm:$0xff]  ;;  %v849_v32 = vld [vmem:[#allocation2 + $0x58] sm:$0xff] }
  0xe8   : > { %v938_v19 = vmul.f32 0.2, %v874_v10  ;;  %v939_v20 = vmul.f32 0.2, %v875_v11  ;;  %vm908_vm6 = vcmp.ge.f32.partialorder %v876_v12, 0.0  ;;  %vm909_vm7 = vcmp.ge.f32.partialorder %v877_v13, 0.0 }
  0xe9   : > { %v940_v21 = vmul.f32 0.2, %v876_v12  ;;  %v941_v22 = vmul.f32 0.2, %v877_v13  ;;  %vm910_vm8 = vcmp.ge.f32.partialorder %v878_v15, 0.0  ;;  %vm911_vm9 = vcmp.ge.f32.partialorder %v879_v16, 0.0 }
  0xea   : > { %v970_v23 = vsel %vm906_vm4, %v874_v10, %v938_v19  ;;  %v971_v24 = vsel %vm907_vm5, %v875_v11, %v939_v20  ;;  %v942_v29 = vmul.f32 0.2, %v878_v15  ;;  %v943_v34 = vmul.f32 0.2, %v879_v16  ;;  %v850_v42 = vld [vmem:[#allocation2 + $0x60] sm:$0xff]  ;;  %v851_v46 = vld [vmem:[#allocation2 + $0x68] sm:$0xff] }
  0xeb   : > { %v1314_v26 = vpack.c.bf16 %v971_v24, %v970_v23  ;;  %v972_v27 = vsel %vm908_vm6, %v876_v12, %v940_v21  ;;  %v973_v28 = vsel %vm909_vm7, %v877_v13, %v941_v22  ;;  %vm912_vm10 = vcmp.ge.f32.partialorder %v880_v17, 0.0  ;;  %v852_v52 = vld [vmem:[#allocation2 + $0x70] sm:$0xff]  ;;  %v853_v57 = vld [vmem:[#allocation2 + $0x78] sm:$0xff]  ;;  %v854_v58 = vld [vmem:[#allocation2 + $0x80] sm:$0xff] }
  0xec   : > { %v1319_v33 = vpack.c.bf16 %v973_v28, %v972_v27  ;;  %vm913_vm11 = vcmp.ge.f32.partialorder %v881_v18, 0.0  ;;  %v974_v5 = vsel %vm910_vm8, %v878_v15, %v942_v29  ;;  %v944_v35 = vmul.f32 0.2, %v880_v17  ;;  %v855_v62 = vld [vmem:[#allocation2 + $0x88] sm:$0xff]  ;;  %v856_v11 = vld [vmem:[#allocation2 + $0x90] sm:$0xff]  ;;  %v857_v12 = vld [vmem:[#allocation2 + $0x98] sm:$0xff] }
  0xed   : > { %1315 = vst [vmem:[%s1473_s18] sm:$0xff] %v1314_v26   ;;  %v945_v36 = vmul.f32 0.2, %v881_v18  ;;  %v882_v37 = vadd.f32 %v1610_v3, %v846_v25  ;;  %v975_v38 = vsel %vm911_vm9, %v879_v16, %v943_v34  ;;  %v883_v39 = vadd.f32 %v1610_v3, %v847_v30  ;;  %v858_v13 = vld [vmem:[#allocation2 + $0xa0] sm:$0xff]  ;;  %v859_v16 = vld [vmem:[#allocation2 + $0xa8] sm:$0xff]  ;;  %v860_v24 = vld [vmem:[#allocation2 + $0xb0] sm:$0xff] }
  0xee   : > { %1391 = vst [vmem:[%s1473_s18 + $0x8] sm:$0xff] %v1319_v33   ;;  %v884_v40 = vadd.f32 %v1610_v3, %v848_v31  ;;  %v885_v41 = vadd.f32 %v1610_v3, %v849_v32  ;;  %v1324_v43 = vpack.c.bf16 %v975_v38, %v974_v5  ;;  %v976_v44 = vsel %vm912_vm10, %v880_v17, %v944_v35  ;;  %v861_v29 = vld [vmem:[#allocation2 + $0xb8] sm:$0xff]  ;;  %v862_v32 = vld [vmem:[#allocation2 + $0xc0] sm:$0xff]  ;;  %v863_v38 = vld [vmem:[#allocation2 + $0xc8] sm:$0xff] }
  0xef   : > { %v977_v45 = vsel %vm913_vm11, %v881_v18, %v945_v36  ;;  %vm914_vm12 = vcmp.ge.f32.partialorder %v882_v37, 0.0  ;;  %vm915_vm13 = vcmp.ge.f32.partialorder %v883_v39, 0.0  ;;  %v946_v48 = vmul.f32 0.2, %v882_v37 }
  0xf0   : > { %v1329_v47 = vpack.c.bf16 %v977_v45, %v976_v44  ;;  %v947_v49 = vmul.f32 0.2, %v883_v39  ;;  %1392 = vst [vmem:[%s1473_s18 + $0x10] sm:$0xff] %v1324_v43   ;;  %vm916_vm14 = vcmp.ge.f32.partialorder %v884_v40, 0.0  ;;  %vm917_vm15 = vcmp.ge.f32.partialorder %v885_v41, 0.0  ;;  %v865_v43 = vld [vmem:[#allocation2 + $0xd8] sm:$0xff] }
  0xf1   : > { %v948_v50 = vmul.f32 0.2, %v884_v40  ;;  %v886_v51 = vadd.f32 %v1610_v3, %v850_v42  ;;  %v978_v53 = vsel %vm914_vm12, %v882_v37, %v946_v48  ;;  %v949_v55 = vmul.f32 0.2, %v885_v41  ;;  %v864_v42 = vld [vmem:[#allocation2 + $0xd0] sm:$0xff] }
  0xf2   : > { %1393 = vst [vmem:[%s1473_s18 + $0x18] sm:$0xff] %v1329_v47   ;;  %v979_v54 = vsel %vm915_vm13, %v883_v39, %v947_v49  ;;  %v887_v56 = vadd.f32 %v1610_v3, %v851_v46  ;;  %v888_v1 = vadd.f32 %v1610_v3, %v852_v52  ;;  %v889_v6 = vadd.f32 %v1610_v3, %v853_v57  ;;  %v866_v47 = vld [vmem:[#allocation2 + $0xe0] sm:$0xff] }
  0xf3   : > { %v1334_v59 = vpack.c.bf16 %v979_v54, %v978_v53  ;;  %v980_v60 = vsel %vm916_vm14, %v884_v40, %v948_v50  ;;  %vm918_vm0 = vcmp.ge.f32.partialorder %v886_v51, 0.0  ;;  %v950_v61 = vmul.f32 0.2, %v886_v51 }
  0xf4   : > { %v981_v63 = vsel %vm917_vm15, %v885_v41, %v949_v55  ;;  %vm919_vm1 = vcmp.ge.f32.partialorder %v887_v56, 0.0  ;;  %v951_v0 = vmul.f32 0.2, %v887_v56  ;;  %v890_v7 = vadd.f32 %v1610_v3, %v854_v58  ;;  %v867_v55 = vld [vmem:[#allocation2 + $0xe8] sm:$0xff] }
  0xf5   : > { %1394 = vst [vmem:[%s1473_s18 + $0x20] sm:$0xff] %v1334_v59   ;;  %v1339_v2 = vpack.c.bf16 %v981_v63, %v980_v60  ;;  %v982_v4 = vsel %vm918_vm0, %v886_v51, %v950_v61  ;;  %vm920_vm2 = vcmp.ge.f32.partialorder %v888_v1, 0.0  ;;  %v952_v9 = vmul.f32 0.2, %v888_v1  ;;  %v868_v59 = vld [vmem:[#allocation2 + $0xf0] sm:$0xff] }
  0xf6   : > { %v983_v8 = vsel %vm919_vm1, %v887_v56, %v951_v0  ;;  %v891_v10 = vadd.f32 %v1610_v3, %v855_v62  ;;  %vm921_vm3 = vcmp.ge.f32.partialorder %v889_v6, 0.0  ;;  %v953_v15 = vmul.f32 0.2, %v889_v6 }
  0xf7   : > { %1395 = vst [vmem:[%s1473_s18 + $0x28] sm:$0xff] %v1339_v2   ;;  %v1344_v14 = vpack.c.bf16 %v983_v8, %v982_v4  ;;  %vm922_vm4 = vcmp.ge.f32.partialorder %v890_v7, 0.0  ;;  %v984_v17 = vsel %vm920_vm2, %v888_v1, %v952_v9  ;;  %v954_v18 = vmul.f32 0.2, %v890_v7  ;;  %v869_v2 = vld [vmem:[#allocation2 + $0xf8] sm:$0xff] }
  0xf8   : > { %vm923_vm5 = vcmp.ge.f32.partialorder %v891_v10, 0.0  ;;  %v955_v19 = vmul.f32 0.2, %v891_v10  ;;  %v985_v20 = vsel %vm921_vm3, %v889_v6, %v953_v15  ;;  %v892_v21 = vadd.f32 %v1610_v3, %v856_v11 }
  0xf9   : > { %1396 = vst [vmem:[%s1473_s18 + $0x30] sm:$0xff] %v1344_v14   ;;  %v893_v22 = vadd.f32 %v1610_v3, %v857_v12  ;;  %v894_v23 = vadd.f32 %v1610_v3, %v858_v13  ;;  %v1349_v25 = vpack.c.bf16 %v985_v20, %v984_v17  ;;  %v986_v26 = vsel %vm922_vm4, %v890_v7, %v954_v18 }
  0xfa   : > { %v987_v27 = vsel %vm923_vm5, %v891_v10, %v955_v19  ;;  %v895_v28 = vadd.f32 %v1610_v3, %v859_v16  ;;  %vm924_vm6 = vcmp.ge.f32.partialorder %v892_v21, 0.0  ;;  %v956_v31 = vmul.f32 0.2, %v892_v21 }
  0xfb   : > { %v1354_v30 = vpack.c.bf16 %v987_v27, %v986_v26  ;;  %vm925_vm7 = vcmp.ge.f32.partialorder %v893_v22, 0.0  ;;  %1397 = vst [vmem:[%s1473_s18 + $0x38] sm:$0xff] %v1349_v25   ;;  %v957_v33 = vmul.f32 0.2, %v893_v22  ;;  %vm926_vm8 = vcmp.ge.f32.partialorder %v894_v23, 0.0 }
  0xfc   : > { %vm927_vm9 = vcmp.ge.f32.partialorder %v895_v28, 0.0  ;;  %v896_v34 = vadd.f32 %v1610_v3, %v860_v24  ;;  %v988_v5 = vsel %vm924_vm6, %v892_v21, %v956_v31  ;;  %v958_v35 = vmul.f32 0.2, %v894_v23 }
  0xfd   : > { %1398 = vst [vmem:[%s1473_s18 + $0x40] sm:$0xff] %v1354_v30   ;;  %v959_v36 = vmul.f32 0.2, %v895_v28  ;;  %v897_v37 = vadd.f32 %v1610_v3, %v861_v29  ;;  %v989_v39 = vsel %vm925_vm7, %v893_v22, %v957_v33  ;;  %v898_v41 = vadd.f32 %v1610_v3, %v862_v32 }
  0xfe   : > { %vm928_vm10 = vcmp.ge.f32.partialorder %v896_v34, 0.0  ;;  %v960_v40 = vmul.f32 0.2, %v896_v34  ;;  %v1359_v44 = vpack.c.bf16 %v989_v39, %v988_v5  ;;  %v990_v45 = vsel %vm926_vm8, %v894_v23, %v958_v35 }
  0xff   : > { %v991_v46 = vsel %vm927_vm9, %v895_v28, %v959_v36  ;;  %vm929_vm11 = vcmp.ge.f32.partialorder %v897_v37, 0.0  ;;  %v961_v49 = vmul.f32 0.2, %v897_v37  ;;  %v899_v51 = vadd.f32 %v1610_v3, %v863_v38 }
 0x100   : > { %v1364_v48 = vpack.c.bf16 %v991_v46, %v990_v45  ;;  %v992_v50 = vsel %vm928_vm10, %v896_v34, %v960_v40  ;;  %1399 = vst [vmem:[%s1473_s18 + $0x48] sm:$0xff] %v1359_v44   ;;  %vm930_vm12 = vcmp.ge.f32.partialorder %v898_v41, 0.0  ;;  %v962_v52 = vmul.f32 0.2, %v898_v41 }
 0x101   : > { %v900_v53 = vadd.f32 %v1610_v3, %v864_v42  ;;  %v901_v54 = vadd.f32 %v1610_v3, %v865_v43  ;;  %v993_v56 = vsel %vm929_vm11, %v897_v37, %v961_v49  ;;  %vm931_vm13 = vcmp.ge.f32.partialorder %v899_v51, 0.0 }
 0x102   : > { %1400 = vst [vmem:[%s1473_s18 + $0x50] sm:$0xff] %v1364_v48   ;;  %v963_v57 = vmul.f32 0.2, %v899_v51  ;;  %v902_v58 = vadd.f32 %v1610_v3, %v866_v47  ;;  %v1369_v60 = vpack.c.bf16 %v993_v56, %v992_v50  ;;  %v994_v61 = vsel %vm930_vm12, %v898_v41, %v962_v52 }
 0x103   : > { %vm932_vm14 = vcmp.ge.f32.partialorder %v900_v53, 0.0  ;;  %vm933_vm15 = vcmp.ge.f32.partialorder %v901_v54, 0.0  ;;  %v964_v63 = vmul.f32 0.2, %v900_v53  ;;  %v965_v0 = vmul.f32 0.2, %v901_v54 }
 0x104   : > { %v995_v62 = vsel %vm931_vm13, %v899_v51, %v963_v57  ;;  %v903_v1 = vadd.f32 %v1610_v3, %v867_v55  ;;  %1401 = vst [vmem:[%s1473_s18 + $0x58] sm:$0xff] %v1369_v60   ;;  %vm934_vm0 = vcmp.ge.f32.partialorder %v902_v58, 0.0  ;;  %v966_v6 = vmul.f32 0.2, %v902_v58 }
 0x105   : > { %v1374_v4 = vpack.c.bf16 %v995_v62, %v994_v61  ;;  %v904_v7 = vadd.f32 %v1610_v3, %v868_v59  ;;  %v996_v8 = vsel %vm932_vm14, %v900_v53, %v964_v63  ;;  %v997_v9 = vsel %vm933_vm15, %v901_v54, %v965_v0 }
 0x106   : > { %vm935_vm1 = vcmp.ge.f32.partialorder %v903_v1, 0.0  ;;  %v967_v10 = vmul.f32 0.2, %v903_v1  ;;  %v1379_v11 = vpack.c.bf16 %v997_v9, %v996_v8  ;;  %v998_v12 = vsel %vm934_vm0, %v902_v58, %v966_v6 }
 0x107   : > { %1402 = vst [vmem:[%s1473_s18 + $0x60] sm:$0xff] %v1374_v4   ;;  %v905_v13 = vadd.f32 %v1610_v3, %v869_v2  ;;  %vm936_vm2 = vcmp.ge.f32.partialorder %v904_v7, 0.0  ;;  %v968_v15 = vmul.f32 0.2, %v904_v7 }
 0x108   : > { %v999_v14 = vsel %vm935_vm1, %v903_v1, %v967_v10  ;;  %1403 = vst [vmem:[%s1473_s18 + $0x68] sm:$0xff] %v1379_v11  }
 0x109   : > { %v1384_v16 = vpack.c.bf16 %v999_v14, %v998_v12  ;;  %vm937_vm3 = vcmp.ge.f32.partialorder %v905_v13, 0.0  ;;  %v969_v17 = vmul.f32 0.2, %v905_v13  ;;  %v1000_v18 = vsel %vm936_vm2, %v904_v7, %v968_v15 }
 0x10b   : > { %1404 = vst [vmem:[%s1473_s18 + $0x70] sm:$0xff] %v1384_v16   ;;  %v1001_v19 = vsel %vm937_vm3, %v905_v13, %v969_v17 }
 0x10c   : > { %v1389_v20 = vpack.c.bf16 %v1001_v19, %v1000_v18 }
 0x10e   : > { %1405 = vst [vmem:[%s1473_s18 + $0x78] sm:$0xff] %v1389_v20  }
 0x10f PF: > { %s13_s12 = sadd.s32 1, %s1435_s12  }
 0x110   : > { %p10_p5 = scmp.ge.s32.totalorder %s13_s12, 4  }
 0x112   :  { %12 = sbr.rel (!%p10_p5) target bundleno = 1 (0x1), region = 104 }

// kernel: forward.6
= control target key start
LH: loop header
LB: loop body
LE: loop exit
PB: predicated region body
PF: predicated region fallthrough
CT: control target
= control target key end

     0   :  { %s1168_s12 = smov 0   ;;  %s1396_s0 = inlined_call_operand.vmem [shape: bf16[2,36,9,8], index: 0, kind: input, shape index: {}]   ;;  %s1397_s1 = inlined_call_operand.vmem [shape: bf16[16,8,128], index: 1, kind: input, shape index: {}]   ;;  %s1398_s2 = inlined_call_operand.vmem [shape: f32[1,128], index: 2, kind: input, shape index: {}]   ;;  %s1399_s3 = inlined_call_operand.vmem [shape: bf16[2,8,8,128], index: 3, kind: output, shape index: {}]  }
   0x1 LB: > { %s975_s13 = sadd.s32 4294967295, %s1142_s12   ;;  %p979_p0 = scmp.ge.s32.totalorder %s1142_s12, 1  ;;  %s1142_s12 = sphi %s1168_s12, %s13_s12  }
   0x2   : > { %p137_p1 = scmp.lt.s32.totalorder %s1142_s12, 3 }
   0x4   : > { %p138_p2 = pnand %p979_p0, %p137_p1 }
   0x5   : > { %p161_p3 = scmp.lt.s32.totalorder (!%p138_p2), %s975_s13, 1  ;;  %s1186_s22 = smov (!%p138_p2), 0  }
   0x6   : > { %141 = sbr.rel (%p138_p2) target bundleno = 316 (0x13c), region = 32 }
   0xb   : > { %s1401_s13 = smov (!%p161_p3, %s975_s13), 1 }
   0xc   : > { %s1112_s14 = smul.u32 288, %s1401_s13  ;;  %s1079_s15 = sshll.u32 %s1401_s13, 5 }
   0xd   : > { %s1179_s18 = scalar_lea.vmem %s1399_s3, %s1079_s15 }
   0xe   : > { %s1184_s21 = scalar_lea.vmem %s1396_s0, %s1112_s14 }
   0xf LB: >> { %v987_v0 = vld [vmem:[%s1397_s1 + $0x4] sm:$0xf]  ;;  %vm194_vm0 = vcmask 1043456   ;;  %v182_v1 = vld [vmem:[%s1397_s1] sm:$0xf]  ;;  %s1080_s4 = sshll.u32 %s1146_s22, 3  ;;  %s1146_s22 = sphi %s1186_s22, %s177_s22  }
  0x10   : >> { %v196_v2 = vsel %vm194_vm0, %v987_v0, 0  ;;  %v215_v3 = vsel %vm194_vm0, %v182_v1, 0  ;;  %v990_v4 = vld [vmem:[%s1397_s1 + $0x8] sm:$0xf]  ;;  %v998_v5 = vld [vmem:[%s1397_s1 + $0xc] sm:$0xf]  ;;  %s1214_s7 = scalar_lea.vmem %s1184_s21, %s1080_s4 }
  0x11   : >> { %205 = vmatpush.bf16.msra.mxu0 %v196_v2  ;;  %224 = vmatpush.bf16.msra.mxu1 %v215_v3  ;;  %vm190_vm1 = vcmask 64512   ;;  %v250_v6 = vsel %vm194_vm0, %v990_v4, 0  ;;  %v286_v7 = vsel %vm194_vm0, %v998_v5, 0  ;;  %v1014_v8 = vld [vmem:[%s1397_s1 + $0x18] sm:$0xf]  ;;  %s177_s22 = sadd.s32 1, %s1146_s22  }
  0x12   : >> { %259 = vmatpush.bf16.msra.mxu2 %v250_v6  ;;  %295 = vmatpush.bf16.msra.mxu3 %v286_v7  ;;  %v376_v9 = vsel %vm194_vm0, %v1014_v8, 0  ;;  %v1022_v10 = vld [vmem:[%s1397_s1 + $0x1c] sm:$0xf]  ;;  %v1006_v11 = vld [vmem:[%s1397_s1 + $0x10] sm:$0xf]  ;;  %p174_p4 = scmp.ge.s32.totalorder %s177_s22, 8  }
  0x13   : >> { %v986_v12 = vld [vmem:[%s1214_s7 + $0x48] sm:$0xf]  ;;  %v181_v13 = vld [vmem:[%s1214_s7] sm:$0xf]  ;;  %v1081_v15 = vld [vmem:[%s1214_s7] sm:$0x10] }
  0x14   : >> { %v993_v14 = vld [vmem:[%s1214_s7] sm:$0xf]  ;;  %988 = vmatmul.msk.bf16.vlgmr.msra.gmra.mxu0 %vm190_vm1, %v986_v12  ;;  %989 = vmatmul.msk.bf16.vlgmr.msra.gmra.mxu1 %vm190_vm1, %v181_v13  ;;  %v1001_v16 = vld [vmem:[%s1214_s7 + $0x48] sm:$0xf]  ;;  %v1082_v17 = vld [vmem:[%s1214_s7 + $0x48] sm:$0x10] }
  0x15   : >> { %v994_v18 = vor.u32 %v1081_v15, %v993_v14  ;;  %v1002_v19 = vor.u32 %v1082_v17, %v1001_v16  ;;  %v412_v20 = vsel %vm194_vm0, %v1022_v10, 0  ;;  %v313_v21 = vsel %vm194_vm0, %v1006_v11, 0  ;;  %v1010_v22 = vld [vmem:[%s1397_s1 + $0x14] sm:$0xf]  ;;  %v1017_v28 = vld [vmem:[%s1214_s7 + $0x90] sm:$0xf] }
  0x16   : >> { %385 = vmatpush.bf16.msrb.mxu2 %v376_v9  ;;  %421 = vmatpush.bf16.msrb.mxu3 %v412_v20  ;;  %v340_v23 = vsel %vm194_vm0, %v1010_v22, 0  ;;  %v1038_v29 = vld [vmem:[%s1397_s1 + $0x28] sm:$0xf]  ;;  %v1083_v32 = vld [vmem:[%s1214_s7 + $0x90] sm:$0x10] }
  0x17   : >> { %322 = vmatpush.bf16.msrb.mxu0 %v313_v21  ;;  %v240_v24 = vshrl.u32 %v994_v18, 16  ;;  %v242_v25 = vshll.u32 %v994_v18, 16  ;;  %v276_v26 = vshrl.u32 %v1002_v19, 16  ;;  %v278_v27 = vshll.u32 %v1002_v19, 16  ;;  %349 = vmatpush.bf16.msrb.mxu1 %v340_v23  ;;  %v1046_v33 = vld [vmem:[%s1397_s1 + $0x2c] sm:$0xf] }
  0x18   : >> { %v1025_v34 = vld [vmem:[%s1214_s7 + $0xd8] sm:$0xf]  ;;  %v1084_v35 = vld [vmem:[%s1214_s7 + $0xd8] sm:$0x10]  ;;  %v1030_v36 = vld [vmem:[%s1397_s1 + $0x20] sm:$0xf]  ;;  %v1018_v44 = vor.u32 %v1083_v32, %v1017_v28 }
  0x19   : >> { %v244_v30 = vrot.slane %v242_v25, 1  ;;  %v280_v31 = vrot.slane %v278_v27, 1  ;;  %v502_v39 = vsel %vm194_vm0, %v1038_v29, 0  ;;  %v538_v40 = vsel %vm194_vm0, %v1046_v33, 0  ;;  %v1034_v41 = vld [vmem:[%s1397_s1 + $0x24] sm:$0xf] }
  0x1a   : >> { %v439_v42 = vsel %vm194_vm0, %v1030_v36, 0  ;;  %v466_v43 = vsel %vm194_vm0, %v1034_v41, 0  ;;  %v1026_v45 = vor.u32 %v1084_v35, %v1025_v34  ;;  %v1054_v46 = vld [vmem:[%s1397_s1 + $0x30] sm:$0xf]  ;;  %v1058_v47 = vld [vmem:[%s1397_s1 + $0x34] sm:$0xf] }
  0x1b   : >> { %v245_v37 = vor.u32 %v244_v30, %v240_v24  ;;  %v281_v38 = vor.u32 %v280_v31, %v276_v26  ;;  %448 = vmatpush.bf16.msra.mxu0 %v439_v42  ;;  %475 = vmatpush.bf16.msra.mxu1 %v466_v43  ;;  %v1005_v48 = vld [vmem:[%s1214_s7 + $0x90] sm:$0xf]  ;;  %v1009_v49 = vld [vmem:[%s1214_s7 + $0xd8] sm:$0xf]  ;;  %v368_v50 = vshll.u32 %v1018_v44, 16  ;;  %v565_v52 = vsel %vm194_vm0, %v1054_v46, 0 }
  0x1c   : >> { %v404_v51 = vshll.u32 %v1026_v45, 16  ;;  %v592_v53 = vsel %vm194_vm0, %v1058_v47, 0  ;;  %v366_v54 = vshrl.u32 %v1018_v44, 16  ;;  %v402_v56 = vshrl.u32 %v1026_v45, 16  ;;  %v1062_v58 = vld [vmem:[%s1397_s1 + $0x38] sm:$0xf] }
  0x1d   : >> { %995 = vmatmul.msk.bf16.vlgmr.msra.gmra.mxu2 %vm190_vm1, %v245_v37  ;;  %1003 = vmatmul.msk.bf16.vlgmr.msra.gmra.mxu3 %vm190_vm1, %v281_v38  ;;  %v370_v55 = vrot.slane %v368_v50, 1  ;;  %v1070_v59 = vld [vmem:[%s1397_s1 + $0x3c] sm:$0xf]  ;;  %v1041_v62 = vld [vmem:[%s1214_s7 + $0x8] sm:$0xf]  ;;  %v628_v2 = vsel %vm194_vm0, %v1062_v58, 0 }
  0x1e   : >> { %511 = vmatpush.bf16.msra.mxu2 %v502_v39  ;;  %547 = vmatpush.bf16.msra.mxu3 %v538_v40  ;;  %v406_v57 = vrot.slane %v404_v51, 1  ;;  %v1085_v63 = vld [vmem:[%s1214_s7 + $0x8] sm:$0x10]  ;;  %v1049_v0 = vld [vmem:[%s1214_s7 + $0x50] sm:$0xf]  ;;  %v664_v3 = vsel %vm194_vm0, %v1070_v59, 0 }
  0x1f   : >> { %v371_v60 = vor.u32 %v370_v55, %v366_v54  ;;  %v1086_v1 = vld [vmem:[%s1214_s7 + $0x50] sm:$0x10]  ;;  %v1042_v4 = vor.u32 %v1085_v63, %v1041_v62  ;;  %v1029_v6 = vld [vmem:[%s1214_s7 + $0x8] sm:$0xf]  ;;  %v1033_v7 = vld [vmem:[%s1214_s7 + $0x50] sm:$0xf] }
  0x20   : >> { %v407_v61 = vor.u32 %v406_v57, %v402_v56  ;;  %v1050_v5 = vor.u32 %v1086_v1, %v1049_v0  ;;  %v1065_v16 = vld [vmem:[%s1214_s7 + $0x98] sm:$0xf]  ;;  %v1087_v17 = vld [vmem:[%s1214_s7 + $0x98] sm:$0x10]  ;;  %v1073_v18 = vld [vmem:[%s1214_s7 + $0xe0] sm:$0xf] }
  0x21   : >> { %v494_v8 = vshll.u32 %v1042_v4, 16  ;;  %v492_v10 = vshrl.u32 %v1042_v4, 16  ;;  %v1088_v19 = vld [vmem:[%s1214_s7 + $0xe0] sm:$0x10]  ;;  %v1066_v20 = vor.u32 %v1087_v17, %v1065_v16  ;;  %v1053_v22 = vld [vmem:[%s1214_s7 + $0x98] sm:$0xf] }
  0x22   : >> { %v530_v9 = vshll.u32 %v1050_v5, 16  ;;  %v528_v12 = vshrl.u32 %v1050_v5, 16  ;;  %v1074_v21 = vor.u32 %v1088_v19, %v1073_v18  ;;  %v1057_v23 = vld [vmem:[%s1214_s7 + $0xe0] sm:$0xf]  ;;  %s681_s7 = scalar_lea.vmem [#allocation2], %s1080_s4 }
  0x23   : >> { %v496_v11 = vrot.slane %v494_v8, 1  ;;  %v620_v24 = vshll.u32 %v1066_v20, 16  ;;  %v618_v26 = vshrl.u32 %v1066_v20, 16 }
  0x24   : >> { %1007 = vmatmul.msk.bf16.vlgmr.msrb.gmra.mxu0 %vm190_vm1, %v1005_v48  ;;  %1011 = vmatmul.msk.bf16.vlgmr.msrb.gmra.mxu1 %vm190_vm1, %v1009_v49  ;;  %v532_v13 = vrot.slane %v530_v9, 1  ;;  %v656_v25 = vshll.u32 %v1074_v21, 16  ;;  %v654_v28 = vshrl.u32 %v1074_v21, 16 }
  0x25   : >> { %574 = vmatpush.bf16.msrb.mxu0 %v565_v52  ;;  %601 = vmatpush.bf16.msrb.mxu1 %v592_v53  ;;  %v497_v14 = vor.u32 %v496_v11, %v492_v10  ;;  %v622_v27 = vrot.slane %v620_v24, 1 }
  0x26   : >> { %v533_v15 = vor.u32 %v532_v13, %v528_v12  ;;  %v658_v29 = vrot.slane %v656_v25, 1 }
  0x27   : >> { %v623_v30 = vor.u32 %v622_v27, %v618_v26 }
  0x28   : >> { %v659_v31 = vor.u32 %v658_v29, %v654_v28 }
  0x2d   : >> { %1019 = vmatmul.msk.bf16.vlgmr.msrb.gmra.mxu2 %vm190_vm1, %v371_v60  ;;  %1027 = vmatmul.msk.bf16.vlgmr.msrb.gmra.mxu3 %vm190_vm1, %v407_v61 }
  0x2e   : >> { %637 = vmatpush.bf16.msrb.mxu2 %v628_v2  ;;  %673 = vmatpush.bf16.msrb.mxu3 %v664_v3 }
  0x34   : >> { %1031 = vmatmul.msk.bf16.vlgmr.msra.gmra.mxu0 %vm190_vm1, %v1029_v6  ;;  %1035 = vmatmul.msk.bf16.vlgmr.msra.gmra.mxu1 %vm190_vm1, %v1033_v7 }
  0x3d   : >> { %1043 = vmatmul.msk.bf16.vlgmr.msra.gmra.mxu2 %vm190_vm1, %v497_v14  ;;  %1051 = vmatmul.msk.bf16.vlgmr.msra.gmra.mxu3 %vm190_vm1, %v533_v15 }
  0x44   : >> { %1055 = vmatmul.msk.bf16.vlgmr.msrb.gmra.mxu0 %vm190_vm1, %v1053_v22  ;;  %1059 = vmatmul.msk.bf16.vlgmr.msrb.gmra.mxu1 %vm190_vm1, %v1057_v23  ;;  %v1129_v23 = vld [vmem:[%s1398_s2] ss:$0 sm:$0xff] (%p174_p4) }
  0x4d   : >> { %1067 = vmatmul.msk.bf16.vlgmr.msrb.gmra.mxu2 %vm190_vm1, %v623_v30  ;;  %1075 = vmatmul.msk.bf16.vlgmr.msrb.gmra.mxu3 %vm190_vm1, %v659_v31 }
  0x91   : >> { %v207_v32 = vpop.f32.mrf.mxu0  ;;  %v226_v33 = vpop.f32.mrf.mxu1 }
  0x92   : >> { %v227_v40 = vadd.f32 %v226_v33, %v207_v32 }
  0x99   : >> { %v209_v34 = vpop.f32.mrf.mxu0  ;;  %v228_v35 = vpop.f32.mrf.mxu1 }
  0xa0   : >> { %v261_v36 = vpop.f32.mrf.mxu2  ;;  %v297_v37 = vpop.f32.mrf.mxu3 }
  0xa1   : >> { %v324_v38 = vpop.f32.mrf.mxu0  ;;  %v351_v39 = vpop.f32.mrf.mxu1  ;;  %v265_v41 = vadd.f32 %v261_v36, %v227_v40 }
  0xa3   : >> { %v301_v46 = vadd.f32 %v297_v37, %v265_v41 }
  0xa5   : >> { %v328_v47 = vadd.f32 %v324_v38, %v301_v46 }
  0xa7   : >> { %v355_v52 = vadd.f32 %v351_v39, %v328_v47 }
  0xa8   : >> { %v263_v42 = vpop.f32.mrf.mxu2  ;;  %v299_v43 = vpop.f32.mrf.mxu3 }
  0xa9   : >> { %v326_v44 = vpop.f32.mrf.mxu0  ;;  %v353_v45 = vpop.f32.mrf.mxu1 }
  0xb0   : >> { %v387_v48 = vpop.f32.mrf.mxu2  ;;  %v423_v49 = vpop.f32.mrf.mxu3 }
  0xb1   : >> { %v450_v50 = vpop.f32.mrf.mxu0  ;;  %v477_v51 = vpop.f32.mrf.mxu1  ;;  %v391_v53 = vadd.f32 %v387_v48, %v355_v52 }
  0xb3   : >> { %v427_v56 = vadd.f32 %v423_v49, %v391_v53 }
  0xb5   : >> { %v454_v59 = vadd.f32 %v450_v50, %v427_v56 }
  0xb7   : >> { %v481_v62 = vadd.f32 %v477_v51, %v454_v59 }
  0xb8   : >> { %v389_v54 = vpop.f32.mrf.mxu2  ;;  %v425_v55 = vpop.f32.mrf.mxu3 }
  0xb9   : >> { %v452_v57 = vpop.f32.mrf.mxu0  ;;  %v479_v58 = vpop.f32.mrf.mxu1 }
  0xc0   : >> { %v513_v60 = vpop.f32.mrf.mxu2  ;;  %v549_v61 = vpop.f32.mrf.mxu3 }
  0xc1   : >> { %v576_v63 = vpop.f32.mrf.mxu0  ;;  %v603_v0 = vpop.f32.mrf.mxu1  ;;  %v517_v1 = vadd.f32 %v513_v60, %v481_v62 }
  0xc3   : >> { %v553_v2 = vadd.f32 %v549_v61, %v517_v1 }
  0xc5   : >> { %v580_v7 = vadd.f32 %v576_v63, %v553_v2 }
  0xc7   : >> { %v607_v8 = vadd.f32 %v603_v0, %v580_v7 }
  0xc8   : >> { %v515_v3 = vpop.f32.mrf.mxu2  ;;  %v551_v4 = vpop.f32.mrf.mxu3 }
  0xc9   : >> { %v578_v5 = vpop.f32.mrf.mxu0  ;;  %v605_v6 = vpop.f32.mrf.mxu1 }
  0xd0   : >> { %v639_v9 = vpop.f32.mrf.mxu2  ;;  %v675_v10 = vpop.f32.mrf.mxu3 }
  0xd1   : >> { %v643_v11 = vadd.f32 %v639_v9, %v607_v8 }
  0xd3   : >> { %v679_v12 = vadd.f32 %v675_v10, %v643_v11 }
  0xd4   : > { %176 = sbr.rel (!%p174_p4) target bundleno = 15 (0xf), region = 93 }
  0xd5   : >> { %682 = vst [vmem:[%s681_s7] sm:$0xff] %v679_v12 }
  0xd8   : >> { %v641_v13 = vpop.f32.mrf.mxu2  ;;  %v677_v14 = vpop.f32.mrf.mxu3 }
  0xdc   : > { %v683_v15 = vld [vmem:[#allocation2] sm:$0xff]  ;;  %v684_v16 = vld [vmem:[#allocation2 + $0x8] sm:$0xff]  ;;  %v685_v17 = vld [vmem:[#allocation2 + $0x10] sm:$0xff] }
  0xdd   : > { %v686_v18 = vld [vmem:[#allocation2 + $0x18] sm:$0xff]  ;;  %v687_v19 = vld [vmem:[#allocation2 + $0x20] sm:$0xff]  ;;  %v688_v20 = vld [vmem:[#allocation2 + $0x28] sm:$0xff]  ;;  %v1309_v24 = vadd.f32 %v1129_v23, %v683_v15  ;;  %v1311_v25 = vadd.f32 %v1129_v23, %v684_v16  ;;  %v1313_v26 = vadd.f32 %v1129_v23, %v685_v17 }
  0xde   : > { %v689_v21 = vld [vmem:[#allocation2 + $0x30] sm:$0xff]  ;;  %v690_v22 = vld [vmem:[#allocation2 + $0x38] sm:$0xff]  ;;  %v1315_v27 = vadd.f32 %v1129_v23, %v686_v18  ;;  %v1317_v28 = vadd.f32 %v1129_v23, %v687_v19  ;;  %v1319_v29 = vadd.f32 %v1129_v23, %v688_v20 }
  0xdf   : > { %v1321_v30 = vadd.f32 %v1129_v23, %v689_v21  ;;  %v1323_v31 = vadd.f32 %v1129_v23, %v690_v22  ;;  %v703_v32 = vrot.slane %v1309_v24, 4  ;;  %v709_v33 = vrot.slane %v1311_v25, 4 }
  0xe0   : > { %v715_v34 = vrot.slane %v1313_v26, 4  ;;  %v721_v35 = vrot.slane %v1315_v27, 4  ;;  %v727_v36 = vrot.slane %v1317_v28, 4  ;;  %v733_v37 = vrot.slane %v1319_v29, 4 }
  0xe1   : > { %v739_v38 = vrot.slane %v1321_v30, 4  ;;  %v745_v39 = vrot.slane %v1323_v31, 4  ;;  %v704_v40 = vadd.f32 %v703_v32, %v1309_v24  ;;  %v710_v41 = vadd.f32 %v709_v33, %v1311_v25 }
  0xe2   : > { %v716_v42 = vadd.f32 %v715_v34, %v1313_v26  ;;  %v722_v43 = vadd.f32 %v721_v35, %v1315_v27  ;;  %v728_v44 = vadd.f32 %v727_v36, %v1317_v28  ;;  %v734_v45 = vadd.f32 %v733_v37, %v1319_v29 }
  0xe3   : > { %v740_v46 = vadd.f32 %v739_v38, %v1321_v30  ;;  %v746_v47 = vadd.f32 %v745_v39, %v1323_v31  ;;  %v705_v48 = vrot.slane %v704_v40, 2  ;;  %v711_v49 = vrot.slane %v710_v41, 2 }
  0xe4   : > { %v717_v50 = vrot.slane %v716_v42, 2  ;;  %v723_v51 = vrot.slane %v722_v43, 2  ;;  %v729_v52 = vrot.slane %v728_v44, 2  ;;  %v735_v53 = vrot.slane %v734_v45, 2 }
  0xe5   : > { %v741_v54 = vrot.slane %v740_v46, 2  ;;  %v706_v55 = vadd.f32 %v705_v48, %v704_v40  ;;  %v712_v56 = vadd.f32 %v711_v49, %v710_v41  ;;  %v747_v61 = vrot.slane %v746_v47, 2 }
  0xe6   : > { %v718_v57 = vadd.f32 %v717_v50, %v716_v42  ;;  %v724_v58 = vadd.f32 %v723_v51, %v722_v43  ;;  %v730_v59 = vadd.f32 %v729_v52, %v728_v44  ;;  %v736_v60 = vadd.f32 %v735_v53, %v734_v45 }
  0xe7   : > { %v707_v62 = vrot.slane %v706_v55, 1  ;;  %v713_v63 = vrot.slane %v712_v56, 1  ;;  %v742_v2 = vadd.f32 %v741_v54, %v740_v46  ;;  %v748_v9 = vadd.f32 %v747_v61, %v746_v47 }
  0xe8   : > { %v719_v0 = vrot.slane %v718_v57, 1  ;;  %v725_v1 = vrot.slane %v724_v58, 1  ;;  %v731_v6 = vrot.slane %v730_v59, 1  ;;  %v737_v8 = vrot.slane %v736_v60, 1 }
  0xe9   : > { %v708_v3 = vadd.f32 %v707_v62, %v706_v55  ;;  %v714_v4 = vadd.f32 %v713_v63, %v712_v56  ;;  %v743_v12 = vrot.slane %v742_v2, 1  ;;  %v749_v15 = vrot.slane %v748_v9, 1 }
  0xea   : > { %v720_v5 = vadd.f32 %v719_v0, %v718_v57  ;;  %v726_v7 = vadd.f32 %v725_v1, %v724_v58  ;;  %v732_v11 = vadd.f32 %v731_v6, %v730_v59  ;;  %v738_v14 = vadd.f32 %v737_v8, %v736_v60 }
  0xeb   : > { %v751_v10 = vadd.f32 %v714_v4, %v708_v3  ;;  %v744_v17 = vadd.f32 %v743_v12, %v742_v2  ;;  %v750_v19 = vadd.f32 %v749_v15, %v748_v9 }
  0xed   : > { %v752_v13 = vadd.f32 %v751_v10, %v720_v5 }
  0xef   : > { %v753_v16 = vadd.f32 %v752_v13, %v726_v7 }
  0xf1   : > { %v754_v18 = vadd.f32 %v753_v16, %v732_v11 }
  0xf3   : > { %v755_v20 = vadd.f32 %v754_v18, %v738_v14 }
  0xf5   : > { %v756_v21 = vadd.f32 %v755_v20, %v744_v17 }
  0xf7   : > { %v757_v22 = vadd.f32 %v756_v21, %v750_v19 }
  0xf9   : > { %v758_v23 = vmul.f32 0.015625, %v757_v22 }
  0xfb   : > { %v1342_v32 = vsub.f32 %v1309_v24, %v758_v23  ;;  %v1345_v33 = vsub.f32 %v1311_v25, %v758_v23  ;;  %v1348_v34 = vsub.f32 %v1313_v26, %v758_v23  ;;  %v1351_v35 = vsub.f32 %v1315_v27, %v758_v23 }
  0xfc   : > { %v1354_v36 = vsub.f32 %v1317_v28, %v758_v23  ;;  %v1357_v37 = vsub.f32 %v1319_v29, %v758_v23  ;;  %v1360_v38 = vsub.f32 %v1321_v30, %v758_v23  ;;  %v1363_v24 = vsub.f32 %v1323_v31, %v758_v23 }
  0xfd   : > { %v767_v25 = vmul.f32 %v1342_v32, %v1342_v32  ;;  %v768_v26 = vmul.f32 %v1345_v33, %v1345_v33  ;;  %v769_v27 = vmul.f32 %v1348_v34, %v1348_v34  ;;  %v770_v28 = vmul.f32 %v1351_v35, %v1351_v35 }
  0xfe   : > { %v771_v29 = vmul.f32 %v1354_v36, %v1354_v36  ;;  %v772_v30 = vmul.f32 %v1357_v37, %v1357_v37  ;;  %v773_v31 = vmul.f32 %v1360_v38, %v1360_v38  ;;  %v774_v39 = vmul.f32 %v1363_v24, %v1363_v24 }
  0xff   : > { %v775_v40 = vrot.slane %v767_v25, 4  ;;  %v781_v41 = vrot.slane %v768_v26, 4  ;;  %v787_v42 = vrot.slane %v769_v27, 4  ;;  %v793_v43 = vrot.slane %v770_v28, 4 }
 0x100   : > { %v799_v44 = vrot.slane %v771_v29, 4  ;;  %v805_v45 = vrot.slane %v772_v30, 4  ;;  %v811_v46 = vrot.slane %v773_v31, 4  ;;  %v817_v47 = vrot.slane %v774_v39, 4 }
 0x101   : > { %v776_v48 = vadd.f32 %v775_v40, %v767_v25  ;;  %v782_v49 = vadd.f32 %v781_v41, %v768_v26  ;;  %v788_v50 = vadd.f32 %v787_v42, %v769_v27  ;;  %v794_v51 = vadd.f32 %v793_v43, %v770_v28 }
 0x102   : > { %v800_v52 = vadd.f32 %v799_v44, %v771_v29  ;;  %v806_v53 = vadd.f32 %v805_v45, %v772_v30  ;;  %v812_v54 = vadd.f32 %v811_v46, %v773_v31  ;;  %v818_v55 = vadd.f32 %v817_v47, %v774_v39 }
 0x103   : > { %v777_v56 = vrot.slane %v776_v48, 2  ;;  %v783_v57 = vrot.slane %v782_v49, 2  ;;  %v789_v58 = vrot.slane %v788_v50, 2  ;;  %v795_v59 = vrot.slane %v794_v51, 2 }
 0x104   : > { %v801_v60 = vrot.slane %v800_v52, 2  ;;  %v807_v61 = vrot.slane %v806_v53, 2  ;;  %v813_v62 = vrot.slane %v812_v54, 2  ;;  %v819_v5 = vrot.slane %v818_v55, 2 }
 0x105   : > { %v778_v63 = vadd.f32 %v777_v56, %v776_v48  ;;  %v784_v0 = vadd.f32 %v783_v57, %v782_v49  ;;  %v790_v1 = vadd.f32 %v789_v58, %v788_v50  ;;  %v796_v2 = vadd.f32 %v795_v59, %v794_v51 }
 0x106   : > { %v802_v3 = vadd.f32 %v801_v60, %v800_v52  ;;  %v808_v4 = vadd.f32 %v807_v61, %v806_v53  ;;  %v814_v10 = vadd.f32 %v813_v62, %v812_v54  ;;  %v820_v17 = vadd.f32 %v819_v5, %v818_v55 }
 0x107   : > { %v779_v6 = vrot.slane %v778_v63, 1  ;;  %v785_v7 = vrot.slane %v784_v0, 1  ;;  %v791_v8 = vrot.slane %v790_v1, 1  ;;  %v797_v9 = vrot.slane %v796_v2, 1 }
 0x108   : > { %v803_v14 = vrot.slane %v802_v3, 1  ;;  %v809_v16 = vrot.slane %v808_v4, 1  ;;  %v815_v20 = vrot.slane %v814_v10, 1  ;;  %v821_v23 = vrot.slane %v820_v17, 1 }
 0x109   : > { %v780_v11 = vadd.f32 %v779_v6, %v778_v63  ;;  %v786_v12 = vadd.f32 %v785_v7, %v784_v0  ;;  %v792_v13 = vadd.f32 %v791_v8, %v790_v1  ;;  %v798_v15 = vadd.f32 %v797_v9, %v796_v2 }
 0x10a   : > { %v804_v19 = vadd.f32 %v803_v14, %v802_v3  ;;  %v810_v22 = vadd.f32 %v809_v16, %v808_v4  ;;  %v816_v26 = vadd.f32 %v815_v20, %v814_v10  ;;  %v822_v28 = vadd.f32 %v821_v23, %v820_v17 }
 0x10b   : > { %v823_v18 = vadd.f32 %v786_v12, %v780_v11 }
 0x10d   : > { %v824_v21 = vadd.f32 %v823_v18, %v792_v13 }
 0x10f   : > { %v825_v25 = vadd.f32 %v824_v21, %v798_v15 }
 0x111   : > { %v826_v27 = vadd.f32 %v825_v25, %v804_v19 }
 0x113   : > { %v827_v29 = vadd.f32 %v826_v27, %v810_v22 }
 0x115   : > { %v828_v30 = vadd.f32 %v827_v29, %v816_v26 }
 0x117   : > { %v829_v31 = vadd.f32 %v828_v30, %v822_v28 }
 0x119   : > { %v830_v39 = vmul.f32 0.015625, %v829_v31 }
 0x11b   : > { %v831_v40 = vadd.f32 1e-05, %v830_v39 }
 0x11d   : > { %1130 = vrsqrt.f32 %v831_v40  ;;  %vm838_vm2 = vweird.f32 %v831_v40 }
 0x123   : > { %v1131_v41 = vpop.eup %1130 }
 0x124   : > { %v833_v42 = vmul.f32 %v1131_v41, %v831_v40  ;;  %vm839_vm3 = vweird.f32 %v1131_v41 }
 0x125   : > { %vm840_vm4 = vmor %vm838_vm2, %vm839_vm3 }
 0x126   : > { %v834_v43 = vmul.f32 %v1131_v41, %v833_v42 }
 0x128   : > { %v835_v44 = vmul.f32 0.5, %v834_v43 }
 0x12a   : > { %v836_v45 = vsub.f32 1.5, %v835_v44 }
 0x12c   : > { %v837_v46 = vmul.f32 %v1131_v41, %v836_v45 }
 0x12e   : > { %v841_v47 = vsel %vm840_vm4, %v1131_v41, %v837_v46 }
 0x12f   : > { %v842_v48 = vmul.f32 %v841_v47, %v1342_v32  ;;  %v843_v49 = vmul.f32 %v841_v47, %v1345_v33  ;;  %v844_v50 = vmul.f32 %v841_v47, %v1348_v34  ;;  %v845_v51 = vmul.f32 %v841_v47, %v1351_v35 }
 0x130   : > { %v846_v52 = vmul.f32 %v841_v47, %v1354_v36  ;;  %v847_v53 = vmul.f32 %v841_v47, %v1357_v37  ;;  %v848_v54 = vmul.f32 %v841_v47, %v1360_v38  ;;  %v849_v55 = vmul.f32 %v841_v47, %v1363_v24 }
 0x131   : > { %vm850_vm5 = vcmp.ge.f32.partialorder %v842_v48, 0.0  ;;  %vm851_vm6 = vcmp.ge.f32.partialorder %v843_v49, 0.0  ;;  %v858_v56 = vmul.f32 0.2, %v842_v48  ;;  %v859_v57 = vmul.f32 0.2, %v843_v49 }
 0x132   : > { %vm852_vm7 = vcmp.ge.f32.partialorder %v844_v50, 0.0  ;;  %vm853_vm8 = vcmp.ge.f32.partialorder %v845_v51, 0.0  ;;  %v860_v32 = vmul.f32 0.2, %v844_v50  ;;  %v861_v33 = vmul.f32 0.2, %v845_v51 }
 0x133   : > { %v866_v34 = vsel %vm850_vm5, %v842_v48, %v858_v56  ;;  %v867_v35 = vsel %vm851_vm6, %v843_v49, %v859_v57  ;;  %vm854_vm9 = vcmp.ge.f32.partialorder %v846_v52, 0.0  ;;  %vm855_vm10 = vcmp.ge.f32.partialorder %v847_v53, 0.0 }
 0x134   : > { %v1092_v36 = vpack.c.bf16 %v867_v35, %v866_v34  ;;  %v868_v37 = vsel %vm852_vm7, %v844_v50, %v860_v32  ;;  %v869_v58 = vsel %vm853_vm8, %v845_v51, %v861_v33  ;;  %v862_v38 = vmul.f32 0.2, %v846_v52 }
 0x135   : > { %v1097_v24 = vpack.c.bf16 %v869_v58, %v868_v37  ;;  %v863_v59 = vmul.f32 0.2, %v847_v53  ;;  %vm856_vm11 = vcmp.ge.f32.partialorder %v848_v54, 0.0  ;;  %vm857_vm12 = vcmp.ge.f32.partialorder %v849_v55, 0.0 }
 0x136   : > { %1093 = vst [vmem:[%s1179_s18] sm:$0xff] %v1092_v36   ;;  %v870_v60 = vsel %vm854_vm9, %v846_v52, %v862_v38  ;;  %v864_v61 = vmul.f32 0.2, %v848_v54  ;;  %v865_v62 = vmul.f32 0.2, %v849_v55 }
 0x137   : > { %1109 = vst [vmem:[%s1179_s18 + $0x8] sm:$0xff] %v1097_v24   ;;  %v871_v63 = vsel %vm855_vm10, %v847_v53, %v863_v59 }
 0x138   : > { %v1102_v0 = vpack.c.bf16 %v871_v63, %v870_v60  ;;  %v872_v1 = vsel %vm856_vm11, %v848_v54, %v864_v61  ;;  %v873_v2 = vsel %vm857_vm12, %v849_v55, %v865_v62 }
 0x139   : > { %v1107_v3 = vpack.c.bf16 %v873_v2, %v872_v1 }
 0x13a   : > { %1110 = vst [vmem:[%s1179_s18 + $0x10] sm:$0xff] %v1102_v0  }
 0x13b   : > { %1111 = vst [vmem:[%s1179_s18 + $0x18] sm:$0xff] %v1107_v3  }
 0x13c PF: > { %s13_s12 = sadd.s32 1, %s1142_s12  }
 0x13d   : > { %p10_p5 = scmp.ge.s32.totalorder %s13_s12, 4  }
 0x13f   :  { %12 = sbr.rel (!%p10_p5) target bundleno = 1 (0x1), region = 104 }

// kernel: forward.7
= control target key start
LH: loop header
LB: loop body
LE: loop exit
PB: predicated region body
PF: predicated region fallthrough
CT: control target
= control target key end

     0   :  { %s1135_s12 = smov 0   ;;  %s1267_s0 = inlined_call_operand.vmem [shape: bf16[2,20,5,16], index: 0, kind: input, shape index: {}]   ;;  %s1268_s1 = inlined_call_operand.vmem [shape: bf16[16,16,128], index: 1, kind: input, shape index: {}]   ;;  %s1269_s2 = inlined_call_operand.vmem [shape: f32[1,128], index: 2, kind: input, shape index: {}]   ;;  %s1270_s3 = inlined_call_operand.vmem [shape: bf16[2,4,4,128], index: 3, kind: output, shape index: {}]  }
   0x1 LB: > { %s919_s13 = sadd.s32 4294967295, %s1109_s12   ;;  %p923_p0 = scmp.ge.s32.totalorder %s1109_s12, 1  ;;  %s1109_s12 = sphi %s1135_s12, %s13_s12  }
   0x2   : > { %p137_p1 = scmp.lt.s32.totalorder %s1109_s12, 3 }
   0x4   : > { %p138_p2 = pnand %p923_p0, %p137_p1 }
   0x5   : > { %p161_p3 = scmp.lt.s32.totalorder (!%p138_p2), %s919_s13, 1  ;;  %s1153_s22 = smov (!%p138_p2), 0  }
   0x6   : > { %141 = sbr.rel (%p138_p2) target bundleno = 301 (0x12d), region = 32 }
   0xb   : > { %s1272_s13 = smov (!%p161_p3, %s919_s13), 1 }
   0xc   : > { %s1079_s14 = smul.u32 80, %s1272_s13  ;;  %s1062_s15 = sshll.u32 %s1272_s13, 3 }
   0xd   : > { %s1146_s18 = scalar_lea.vmem %s1270_s3, %s1062_s15 }
   0xe   : > { %s1151_s21 = scalar_lea.vmem %s1267_s0, %s1079_s14 }
   0xf LB: >> { %v1064_v0 = vld [vmem:[%s1268_s1 + $0x8] sm:$0xff]  ;;  %v1063_v1 = vld [vmem:[%s1268_s1] sm:$0xff]  ;;  %v1065_v2 = vld [vmem:[%s1268_s1 + $0x10] sm:$0xff]  ;;  %s927_s8 = sshll.u32 %s1113_s22, 2  ;;  %vm196_vm0 = vcmask 130048   ;;  %s177_s22 = sadd.s32 1, %s1113_s22   ;;  %s1113_s22 = sphi %s1153_s22, %s177_s22  }
  0x10   : >> { %v1066_v3 = vld [vmem:[%s1268_s1 + $0x18] sm:$0xff]  ;;  %v1069_v4 = vld [vmem:[%s1268_s1 + $0x30] sm:$0xff]  ;;  %207 = vmatpush.bf16.msra.mxu0 %v1064_v0  ;;  %229 = vmatpush.bf16.msra.mxu1 %v1063_v1  ;;  %v1067_v6 = vld [vmem:[%s1268_s1 + $0x20] sm:$0xff]  ;;  %s1186_s14 = scalar_lea.vmem %s1151_s21, %s927_s8  ;;  %s712_s7 = scalar_lea.vmem [#allocation2], %s927_s8 }
  0x11   : >> { %v1070_v5 = vld [vmem:[%s1268_s1 + $0x38] sm:$0xff]  ;;  %v1068_v7 = vld [vmem:[%s1268_s1 + $0x28] sm:$0xff]  ;;  %265 = vmatpush.bf16.msra.mxu2 %v1065_v2  ;;  %302 = vmatpush.bf16.msra.mxu3 %v1066_v3  ;;  %v1071_v8 = vld [vmem:[%s1268_s1 + $0x40] sm:$0xff]  ;;  %p174_p4 = scmp.ge.s32.totalorder %s177_s22, 4  }
  0x12   : >> { %v1072_v9 = vld [vmem:[%s1268_s1 + $0x48] sm:$0xff]  ;;  %v929_v10 = vld [vmem:[%s1186_s14 + $0x14] sm:$0x3]  ;;  %v180_v11 = vld [vmem:[%s1186_s14] sm:$0x3]  ;;  %vm726_vm1 = vcmask (%p174_p4), 1043456  }
  0x13   : >> { %v235_v12 = vld [vmem:[%s1186_s14] sm:$0x7]  ;;  %936 = vmatmul.msk.bf16.vlgmr.msra.gmra.mxu0 %vm196_vm0, %v929_v10  ;;  %941 = vmatmul.msk.bf16.vlgmr.msra.gmra.mxu1 %vm196_vm0, %v180_v11  ;;  %v949_v14 = vld [vmem:[%s1186_s14 + $0x14] sm:$0x7]  ;;  %v975_v18 = vld [vmem:[%s1186_s14 + $0x28] sm:$0x7] }
  0x14   : >> { %v240_v13 = vunpack.c.l.b16 %v235_v12  ;;  %v277_v15 = vunpack.c.l.b16 %v949_v14  ;;  %332 = vmatpush.bf16.msrb.mxu0 %v1067_v6  ;;  %362 = vmatpush.bf16.msrb.mxu1 %v1068_v7  ;;  %v983_v21 = vld [vmem:[%s1186_s14 + $0x3c] sm:$0x7]  ;;  %v374_v25 = vunpack.c.l.b16 %v975_v18  ;;  %v1073_v28 = vld [vmem:[%s1268_s1 + $0x50] sm:$0xff]  ;;  %v958_v34 = vld [vmem:[%s1186_s14 + $0x28] sm:$0x3] }
  0x15   : >> { %399 = vmatpush.bf16.msrb.mxu2 %v1069_v4  ;;  %436 = vmatpush.bf16.msrb.mxu3 %v1070_v5  ;;  %v411_v27 = vunpack.c.l.b16 %v983_v21  ;;  %v1074_v30 = vld [vmem:[%s1268_s1 + $0x58] sm:$0xff]  ;;  %v1075_v36 = vld [vmem:[%s1268_s1 + $0x60] sm:$0xff]  ;;  %v1076_v37 = vld [vmem:[%s1268_s1 + $0x68] sm:$0xff] }
  0x16   : >> { %v241_v16 = vpack.c.b16 %v240_v13, %v240_v13  ;;  %v278_v17 = vpack.c.b16 %v277_v15, %v277_v15  ;;  %v375_v32 = vpack.c.b16 %v374_v25, %v374_v25  ;;  %v967_v35 = vld [vmem:[%s1186_s14 + $0x3c] sm:$0x3]  ;;  %v1009_v44 = vld [vmem:[%s1186_s14 + $0x4] sm:$0x7]  ;;  %v1017_v45 = vld [vmem:[%s1186_s14 + $0x18] sm:$0x7] }
  0x17   : >> { %v412_v33 = vpack.c.b16 %v411_v27, %v411_v27  ;;  %v508_v47 = vunpack.c.l.b16 %v1009_v44  ;;  %v545_v49 = vunpack.c.l.b16 %v1017_v45  ;;  %v1077_v50 = vld [vmem:[%s1268_s1 + $0x70] sm:$0xff]  ;;  %v1078_v51 = vld [vmem:[%s1268_s1 + $0x78] sm:$0xff]  ;;  %v992_v54 = vld [vmem:[%s1186_s14 + $0x4] sm:$0x3] }
  0x18   : >> { %466 = vmatpush.bf16.msra.mxu0 %v1071_v8  ;;  %496 = vmatpush.bf16.msra.mxu1 %v1072_v9  ;;  %v243_v19 = vshrl.u32 %v241_v16, 16  ;;  %v245_v20 = vshll.u32 %v241_v16, 16  ;;  %v280_v22 = vshrl.u32 %v278_v17, 16  ;;  %v282_v23 = vshll.u32 %v278_v17, 16  ;;  %v1001_v55 = vld [vmem:[%s1186_s14 + $0x18] sm:$0x3] }
  0x19   : >> { %v379_v38 = vshll.u32 %v375_v32, 16  ;;  %v416_v39 = vshll.u32 %v412_v33, 16  ;;  %v377_v40 = vshrl.u32 %v375_v32, 16  ;;  %v414_v42 = vshrl.u32 %v412_v33, 16  ;;  %v1043_v62 = vld [vmem:[%s1186_s14 + $0x2c] sm:$0x7] }
  0x1a   : >> { %v247_v24 = vrot.slane %v245_v20, 1  ;;  %v284_v26 = vrot.slane %v282_v23, 1  ;;  %v509_v52 = vpack.c.b16 %v508_v47, %v508_v47  ;;  %v546_v53 = vpack.c.b16 %v545_v49, %v545_v49  ;;  %v1051_v63 = vld [vmem:[%s1186_s14 + $0x40] sm:$0x7]  ;;  %v1026_v6 = vld [vmem:[%s1186_s14 + $0x2c] sm:$0x3] }
  0x1b   : >> { %v381_v41 = vrot.slane %v379_v38, 1  ;;  %v418_v43 = vrot.slane %v416_v39, 1  ;;  %v642_v1 = vunpack.c.l.b16 %v1043_v62  ;;  %v679_v3 = vunpack.c.l.b16 %v1051_v63  ;;  %v1035_v7 = vld [vmem:[%s1186_s14 + $0x40] sm:$0x3] }
  0x1c   : >> { %v248_v29 = vor.u32 %v247_v24, %v243_v19  ;;  %v285_v31 = vor.u32 %v284_v26, %v280_v22  ;;  %v513_v56 = vshll.u32 %v509_v52, 16  ;;  %v550_v57 = vshll.u32 %v546_v53, 16 }
  0x1d   : >> { %v382_v46 = vor.u32 %v381_v41, %v377_v40  ;;  %v419_v48 = vor.u32 %v418_v43, %v414_v42  ;;  %v511_v58 = vshrl.u32 %v509_v52, 16  ;;  %v548_v60 = vshrl.u32 %v546_v53, 16 }
  0x1e   : >> { %948 = vmatmul.msk.bf16.vlgmr.msra.gmra.mxu2 %vm196_vm0, %v248_v29  ;;  %956 = vmatmul.msk.bf16.vlgmr.msra.gmra.mxu3 %vm196_vm0, %v285_v31  ;;  %v515_v59 = vrot.slane %v513_v56, 1  ;;  %v552_v61 = vrot.slane %v550_v57, 1  ;;  %v643_v4 = vpack.c.b16 %v642_v1, %v642_v1  ;;  %v680_v5 = vpack.c.b16 %v679_v3, %v679_v3  ;;  %v1096_v3 = vld [vmem:[%s1269_s2] ss:$0 sm:$0xff] (%p174_p4) }
  0x1f   : >> { %533 = vmatpush.bf16.msra.mxu2 %v1073_v28  ;;  %570 = vmatpush.bf16.msra.mxu3 %v1074_v30 }
  0x20   : >> { %v516_v0 = vor.u32 %v515_v59, %v511_v58  ;;  %v553_v2 = vor.u32 %v552_v61, %v548_v60  ;;  %v647_v8 = vshll.u32 %v643_v4, 16  ;;  %v684_v9 = vshll.u32 %v680_v5, 16 }
  0x21   : >> { %v645_v10 = vshrl.u32 %v643_v4, 16  ;;  %v682_v12 = vshrl.u32 %v680_v5, 16 }
  0x22   : >> { %v649_v11 = vrot.slane %v647_v8, 1  ;;  %v686_v13 = vrot.slane %v684_v9, 1 }
  0x23   : >> { %965 = vmatmul.msk.bf16.vlgmr.msrb.gmra.mxu0 %vm196_vm0, %v958_v34  ;;  %974 = vmatmul.msk.bf16.vlgmr.msrb.gmra.mxu1 %vm196_vm0, %v967_v35 }
  0x24   : >> { %600 = vmatpush.bf16.msrb.mxu0 %v1075_v36  ;;  %630 = vmatpush.bf16.msrb.mxu1 %v1076_v37  ;;  %v650_v14 = vor.u32 %v649_v11, %v645_v10  ;;  %v687_v15 = vor.u32 %v686_v13, %v682_v12 }
  0x2e   : >> { %982 = vmatmul.msk.bf16.vlgmr.msrb.gmra.mxu2 %vm196_vm0, %v382_v46  ;;  %990 = vmatmul.msk.bf16.vlgmr.msrb.gmra.mxu3 %vm196_vm0, %v419_v48 }
  0x2f   : >> { %667 = vmatpush.bf16.msrb.mxu2 %v1077_v50  ;;  %704 = vmatpush.bf16.msrb.mxu3 %v1078_v51 }
  0x33   : >> { %999 = vmatmul.msk.bf16.vlgmr.msra.gmra.mxu0 %vm196_vm0, %v992_v54  ;;  %1008 = vmatmul.msk.bf16.vlgmr.msra.gmra.mxu1 %vm196_vm0, %v1001_v55 }
  0x3e   : >> { %1016 = vmatmul.msk.bf16.vlgmr.msra.gmra.mxu2 %vm196_vm0, %v516_v0  ;;  %1024 = vmatmul.msk.bf16.vlgmr.msra.gmra.mxu3 %vm196_vm0, %v553_v2 }
  0x43   : >> { %1033 = vmatmul.msk.bf16.vlgmr.msrb.gmra.mxu0 %vm196_vm0, %v1026_v6  ;;  %1042 = vmatmul.msk.bf16.vlgmr.msrb.gmra.mxu1 %vm196_vm0, %v1035_v7 }
  0x4e   : >> { %1050 = vmatmul.msk.bf16.vlgmr.msrb.gmra.mxu2 %vm196_vm0, %v650_v14  ;;  %1058 = vmatmul.msk.bf16.vlgmr.msrb.gmra.mxu3 %vm196_vm0, %v687_v15 }
  0x90   : >> { %v209_v16 = vpop.f32.mrf.mxu0  ;;  %v231_v17 = vpop.f32.mrf.mxu1 }
  0x91   : >> { %v232_v24 = vadd.f32 %v231_v17, %v209_v16 }
  0x98   : >> { %v211_v18 = vpop.f32.mrf.mxu0  ;;  %v233_v19 = vpop.f32.mrf.mxu1 }
  0xa0   : >> { %v334_v21 = vpop.f32.mrf.mxu0  ;;  %v364_v23 = vpop.f32.mrf.mxu1 }
  0xa1   : >> { %v267_v20 = vpop.f32.mrf.mxu2  ;;  %v304_v22 = vpop.f32.mrf.mxu3 }
  0xa2   : >> { %v271_v25 = vadd.f32 %v267_v20, %v232_v24 }
  0xa4   : >> { %v308_v30 = vadd.f32 %v304_v22, %v271_v25 }
  0xa6   : >> { %v338_v31 = vadd.f32 %v334_v21, %v308_v30 }
  0xa8   : >> { %v336_v27 = vpop.f32.mrf.mxu0  ;;  %v366_v29 = vpop.f32.mrf.mxu1  ;;  %v368_v36 = vadd.f32 %v364_v23, %v338_v31 }
  0xa9   : >> { %v269_v26 = vpop.f32.mrf.mxu2  ;;  %v306_v28 = vpop.f32.mrf.mxu3 }
  0xb0   : >> { %v468_v33 = vpop.f32.mrf.mxu0  ;;  %v498_v35 = vpop.f32.mrf.mxu1 }
  0xb1   : >> { %v401_v32 = vpop.f32.mrf.mxu2  ;;  %v438_v34 = vpop.f32.mrf.mxu3 }
  0xb2   : >> { %v405_v37 = vadd.f32 %v401_v32, %v368_v36 }
  0xb4   : >> { %v442_v40 = vadd.f32 %v438_v34, %v405_v37 }
  0xb6   : >> { %v472_v43 = vadd.f32 %v468_v33, %v442_v40 }
  0xb8   : >> { %v470_v39 = vpop.f32.mrf.mxu0  ;;  %v500_v42 = vpop.f32.mrf.mxu1  ;;  %v502_v46 = vadd.f32 %v498_v35, %v472_v43 }
  0xb9   : >> { %v403_v38 = vpop.f32.mrf.mxu2  ;;  %v440_v41 = vpop.f32.mrf.mxu3 }
  0xc0   : >> { %v602_v45 = vpop.f32.mrf.mxu0  ;;  %v632_v48 = vpop.f32.mrf.mxu1 }
  0xc1   : >> { %v535_v44 = vpop.f32.mrf.mxu2  ;;  %v572_v47 = vpop.f32.mrf.mxu3 }
  0xc2   : >> { %v539_v49 = vadd.f32 %v535_v44, %v502_v46 }
  0xc4   : >> { %v576_v50 = vadd.f32 %v572_v47, %v539_v49 }
  0xc6   : >> { %v606_v55 = vadd.f32 %v602_v45, %v576_v50 }
  0xc8   : >> { %v604_v52 = vpop.f32.mrf.mxu0  ;;  %v634_v54 = vpop.f32.mrf.mxu1  ;;  %v636_v56 = vadd.f32 %v632_v48, %v606_v55 }
  0xc9   : >> { %v537_v51 = vpop.f32.mrf.mxu2  ;;  %v574_v53 = vpop.f32.mrf.mxu3 }
  0xd1   : >> { %v669_v57 = vpop.f32.mrf.mxu2  ;;  %v706_v59 = vpop.f32.mrf.mxu3 }
  0xd2   : >> { %v673_v58 = vadd.f32 %v669_v57, %v636_v56 }
  0xd4   : >> { %v710_v60 = vadd.f32 %v706_v59, %v673_v58 }
  0xd5   : > { %176 = sbr.rel (!%p174_p4) target bundleno = 15 (0xf), region = 93 }
  0xd6   : >> { %713 = vst [vmem:[%s712_s7] sm:$0xf] %v710_v60 }
  0xd9   : >> { %v671_v61 = vpop.f32.mrf.mxu2  ;;  %v708_v62 = vpop.f32.mrf.mxu3 }
  0xdd   : > { %v714_v63 = vld [vmem:[#allocation2] sm:$0xf]  ;;  %v715_v0 = vld [vmem:[#allocation2 + $0x4] sm:$0xf]  ;;  %v716_v1 = vld [vmem:[#allocation2 + $0x8] sm:$0xf] }
  0xde   : > { %v717_v2 = vld [vmem:[#allocation2 + $0xc] sm:$0xf]  ;;  %v722_v4 = vadd.f32 %v1096_v3, %v714_v63  ;;  %v723_v5 = vadd.f32 %v1096_v3, %v715_v0  ;;  %v724_v6 = vadd.f32 %v1096_v3, %v716_v1 }
  0xdf   : > { %v725_v7 = vadd.f32 %v1096_v3, %v717_v2 }
  0xe0   : > { %v727_v8 = vsel %vm726_vm1, %v722_v4, 0.0  ;;  %v734_v9 = vsel %vm726_vm1, %v723_v5, 0.0  ;;  %v741_v10 = vsel %vm726_vm1, %v724_v6, 0.0 }
  0xe1   : > { %v748_v11 = vsel %vm726_vm1, %v725_v7, 0.0  ;;  %v728_v12 = vrot.slane %v727_v8, 4  ;;  %v735_v13 = vrot.slane %v734_v9, 4  ;;  %v742_v14 = vrot.slane %v741_v10, 4 }
  0xe2   : > { %v749_v15 = vrot.slane %v748_v11, 4 }
  0xe3   : > { %v729_v16 = vadd.f32 %v728_v12, %v727_v8  ;;  %v736_v17 = vadd.f32 %v735_v13, %v734_v9  ;;  %v743_v18 = vadd.f32 %v742_v14, %v741_v10 }
  0xe4   : > { %v750_v19 = vadd.f32 %v749_v15, %v748_v11 }
  0xe5   : > { %v730_v20 = vrot.slane %v729_v16, 2  ;;  %v737_v21 = vrot.slane %v736_v17, 2  ;;  %v744_v22 = vrot.slane %v743_v18, 2 }
  0xe6   : > { %v751_v23 = vrot.slane %v750_v19, 2 }
  0xe7   : > { %v731_v24 = vadd.f32 %v730_v20, %v729_v16  ;;  %v738_v25 = vadd.f32 %v737_v21, %v736_v17  ;;  %v745_v26 = vadd.f32 %v744_v22, %v743_v18 }
  0xe8   : > { %v752_v27 = vadd.f32 %v751_v23, %v750_v19 }
  0xe9   : > { %v732_v28 = vrot.slane %v731_v24, 1  ;;  %v739_v29 = vrot.slane %v738_v25, 1  ;;  %v746_v30 = vrot.slane %v745_v26, 1 }
  0xea   : > { %v753_v31 = vrot.slane %v752_v27, 1 }
  0xeb   : > { %v733_v32 = vadd.f32 %v732_v28, %v731_v24  ;;  %v740_v33 = vadd.f32 %v739_v29, %v738_v25  ;;  %v747_v34 = vadd.f32 %v746_v30, %v745_v26 }
  0xec   : > { %v754_v35 = vadd.f32 %v753_v31, %v752_v27 }
  0xed   : > { %v755_v36 = vadd.f32 %v740_v33, %v733_v32 }
  0xef   : > { %v756_v37 = vadd.f32 %v755_v36, %v747_v34 }
  0xf1   : > { %v757_v38 = vadd.f32 %v756_v37, %v754_v35 }
  0xf3   : > { %v758_v39 = vmul.f32 0.0625, %v757_v38 }
  0xf5   : > { %v759_v40 = vsub.f32 %v722_v4, %v758_v39  ;;  %v760_v41 = vsub.f32 %v723_v5, %v758_v39  ;;  %v761_v42 = vsub.f32 %v724_v6, %v758_v39  ;;  %v762_v43 = vsub.f32 %v725_v7, %v758_v39 }
  0xf7   : > { %v763_v44 = vmul.f32 %v759_v40, %v759_v40  ;;  %v764_v45 = vmul.f32 %v760_v41, %v760_v41  ;;  %v765_v46 = vmul.f32 %v761_v42, %v761_v42  ;;  %v766_v47 = vmul.f32 %v762_v43, %v762_v43 }
  0xf9   : > { %v767_v48 = vsel %vm726_vm1, %v763_v44, 0.0  ;;  %v774_v49 = vsel %vm726_vm1, %v764_v45, 0.0  ;;  %v781_v50 = vsel %vm726_vm1, %v765_v46, 0.0  ;;  %v788_v51 = vsel %vm726_vm1, %v766_v47, 0.0 }
  0xfa   : > { %v768_v52 = vrot.slane %v767_v48, 4  ;;  %v775_v53 = vrot.slane %v774_v49, 4  ;;  %v782_v54 = vrot.slane %v781_v50, 4  ;;  %v789_v55 = vrot.slane %v788_v51, 4 }
  0xfc   : > { %v769_v56 = vadd.f32 %v768_v52, %v767_v48  ;;  %v776_v57 = vadd.f32 %v775_v53, %v774_v49  ;;  %v783_v58 = vadd.f32 %v782_v54, %v781_v50  ;;  %v790_v59 = vadd.f32 %v789_v55, %v788_v51 }
  0xfe   : > { %v770_v60 = vrot.slane %v769_v56, 2  ;;  %v777_v61 = vrot.slane %v776_v57, 2  ;;  %v784_v62 = vrot.slane %v783_v58, 2  ;;  %v791_v63 = vrot.slane %v790_v59, 2 }
 0x100   : > { %v771_v0 = vadd.f32 %v770_v60, %v769_v56  ;;  %v778_v1 = vadd.f32 %v777_v61, %v776_v57  ;;  %v785_v2 = vadd.f32 %v784_v62, %v783_v58  ;;  %v792_v3 = vadd.f32 %v791_v63, %v790_v59 }
 0x102   : > { %v772_v4 = vrot.slane %v771_v0, 1  ;;  %v779_v5 = vrot.slane %v778_v1, 1  ;;  %v786_v6 = vrot.slane %v785_v2, 1  ;;  %v793_v7 = vrot.slane %v792_v3, 1 }
 0x104   : > { %v773_v8 = vadd.f32 %v772_v4, %v771_v0  ;;  %v780_v9 = vadd.f32 %v779_v5, %v778_v1  ;;  %v787_v10 = vadd.f32 %v786_v6, %v785_v2  ;;  %v794_v11 = vadd.f32 %v793_v7, %v792_v3 }
 0x106   : > { %v795_v12 = vadd.f32 %v780_v9, %v773_v8 }
 0x108   : > { %v796_v13 = vadd.f32 %v795_v12, %v787_v10 }
 0x10a   : > { %v797_v14 = vadd.f32 %v796_v13, %v794_v11 }
 0x10c   : > { %v798_v15 = vmul.f32 0.0625, %v797_v14 }
 0x10e   : > { %v799_v16 = vadd.f32 1e-05, %v798_v15 }
 0x110   : > { %1097 = vrsqrt.f32 %v799_v16  ;;  %vm806_vm2 = vweird.f32 %v799_v16 }
 0x116   : > { %v1098_v17 = vpop.eup %1097 }
 0x117   : > { %v801_v18 = vmul.f32 %v1098_v17, %v799_v16  ;;  %vm807_vm3 = vweird.f32 %v1098_v17 }
 0x118   : > { %vm808_vm4 = vmor %vm806_vm2, %vm807_vm3 }
 0x119   : > { %v802_v19 = vmul.f32 %v1098_v17, %v801_v18 }
 0x11b   : > { %v803_v20 = vmul.f32 0.5, %v802_v19 }
 0x11d   : > { %v804_v21 = vsub.f32 1.5, %v803_v20 }
 0x11f   : > { %v805_v22 = vmul.f32 %v1098_v17, %v804_v21 }
 0x121   : > { %v809_v23 = vsel %vm808_vm4, %v1098_v17, %v805_v22 }
 0x122   : > { %v810_v24 = vmul.f32 %v809_v23, %v759_v40  ;;  %v811_v25 = vmul.f32 %v809_v23, %v760_v41  ;;  %v812_v26 = vmul.f32 %v809_v23, %v761_v42  ;;  %v813_v27 = vmul.f32 %v809_v23, %v762_v43 }
 0x124   : > { %vm814_vm5 = vcmp.ge.f32.partialorder %v810_v24, 0.0  ;;  %v818_v28 = vmul.f32 0.2, %v810_v24  ;;  %vm815_vm6 = vcmp.ge.f32.partialorder %v811_v25, 0.0  ;;  %v819_v29 = vmul.f32 0.2, %v811_v25 }
 0x125   : > { %vm816_vm7 = vcmp.ge.f32.partialorder %v812_v26, 0.0  ;;  %v820_v30 = vmul.f32 0.2, %v812_v26  ;;  %vm817_vm8 = vcmp.ge.f32.partialorder %v813_v27, 0.0  ;;  %v821_v31 = vmul.f32 0.2, %v813_v27 }
 0x126   : > { %v822_v32 = vsel %vm814_vm5, %v810_v24, %v818_v28  ;;  %v823_v33 = vsel %vm815_vm6, %v811_v25, %v819_v29 }
 0x127   : > { %v826_v34 = vpack.c.bf16 %v822_v32, %v822_v32  ;;  %v827_v35 = vpack.c.bf16 %v823_v33, %v823_v33  ;;  %v824_v36 = vsel %vm816_vm7, %v812_v26, %v820_v30  ;;  %v825_v37 = vsel %vm817_vm8, %v813_v27, %v821_v31 }
 0x128   : > { %v828_v38 = vpack.c.bf16 %v824_v36, %v824_v36  ;;  %v829_v39 = vpack.c.bf16 %v825_v37, %v825_v37 }
 0x129   : > { %830 = vst [vmem:[%s1146_s18] sm:$0x3] %v826_v34 }
 0x12a   : > { %831 = vst [vmem:[%s1146_s18 + $0x2] sm:$0x3] %v827_v35 }
 0x12b   : > { %832 = vst [vmem:[%s1146_s18 + $0x4] sm:$0x3] %v828_v38 }
 0x12c   : > { %833 = vst [vmem:[%s1146_s18 + $0x6] sm:$0x3] %v829_v39 }
 0x12d PF: > { %s13_s12 = sadd.s32 1, %s1109_s12  }
 0x12e   : > { %p10_p5 = scmp.ge.s32.totalorder %s13_s12, 4  }
 0x130   :  { %12 = sbr.rel (!%p10_p5) target bundleno = 1 (0x1), region = 104 }

// kernel: forward.8
= control target key start
LH: loop header
LB: loop body
LE: loop exit
PB: predicated region body
PF: predicated region fallthrough
CT: control target
= control target key end

     0   :  { %s1319_s12 = smov 0   ;;  %s1495_s0 = inlined_call_operand.vmem [shape: bf16[2,6,6,32], index: 0, kind: input, shape index: {}]   ;;  %s1496_s1 = inlined_call_operand.vmem [shape: bf16[16,32,128], index: 1, kind: input, shape index: {}]   ;;  %s1497_s2 = inlined_call_operand.vmem [shape: f32[1,128], index: 2, kind: input, shape index: {}]   ;;  %s1498_s3 = inlined_call_operand.vmem [shape: bf16[2,3,3,128], index: 3, kind: output, shape index: {}]  }
   0x1 LB: > { %s1006_s13 = sadd.s32 4294967295, %s1293_s12   ;;  %p1010_p0 = scmp.ge.s32.totalorder %s1293_s12, 1  ;;  %s1293_s12 = sphi %s1319_s12, %s13_s12  }
   0x2   : > { %p137_p1 = scmp.lt.s32.totalorder %s1293_s12, 3 }
   0x4   : > { %p138_p2 = pnand %p1010_p0, %p137_p1 }
   0x5   : > { %p161_p3 = scmp.lt.s32.totalorder (!%p138_p2), %s1006_s13, 1  ;;  %s1337_s22 = smov (!%p138_p2), 0  }
   0x6   : > { %141 = sbr.rel (%p138_p2) target bundleno = 296 (0x128), region = 32 }
   0xb   : > { %s1500_s13 = smov (!%p161_p3, %s1006_s13), 1 }
   0xc   : > { %s1262_s14 = smul.u32 24, %s1500_s13 }
   0xd   : > { %s1263_s15 = smul.u32 6, %s1500_s13 }
   0xe   : > { %s1330_s18 = scalar_lea.vmem %s1495_s0, %s1262_s14 }
   0xf   : > { %s1335_s21 = scalar_lea.vmem %s1498_s3, %s1263_s15 }
  0x10 LB: >> { %v1235_v0 = vld [vmem:[%s1496_s1 + $0x28] sm:$0xff]  ;;  %v1233_v2 = vld [vmem:[%s1496_s1 + $0x18] sm:$0xff]  ;;  %v1234_v4 = vld [vmem:[%s1496_s1 + $0x20] sm:$0xff]  ;;  %s1013_s8 = sshll.u32 %s1297_s22, 2  ;;  %vm212_vm0 = vcmask 261120   ;;  %s177_s22 = sadd.s32 1, %s1297_s22   ;;  %s1297_s22 = sphi %s1337_s22, %s177_s22  }
  0x11   : >> { %v1231_v1 = vld [vmem:[%s1496_s1 + $0x8] sm:$0xff]  ;;  %v1237_v3 = vld [vmem:[%s1496_s1 + $0x38] sm:$0xff]  ;;  %288 = vmatpush.bf16.msra.mxu2 %v1235_v0  ;;  %v1230_v5 = vld [vmem:[%s1496_s1] sm:$0xff]  ;;  %222 = vmatpush.bf16.msra.mxu0 %v1233_v2  ;;  %s1364_s9 = scalar_lea.vmem %s1330_s18, %s1013_s8  ;;  %p174_p4 = scmp.ge.s32.totalorder %s177_s22, 3  }
  0x12   : >> { %250 = vmatpush.bf16.msra.mxu1 %v1231_v1  ;;  %330 = vmatpush.bf16.msra.mxu3 %v1237_v3  ;;  %v1232_v6 = vld [vmem:[%s1496_s1 + $0x10] sm:$0xff]  ;;  %v1243_v8 = vld [vmem:[%s1496_s1 + $0x68] sm:$0xff]  ;;  %v257_v9 = vld [vmem:[%s1364_s9] sm:$0x6]  ;;  %vm840_vm1 = vcmask (%p174_p4), 1042432   ;;  %vm921_vm5 = vcmask (%p174_p4), 1041408  }
  0x13   : >> { %v1236_v7 = vld [vmem:[%s1496_s1 + $0x30] sm:$0xff]  ;;  %v180_v10 = vld [vmem:[%s1364_s9] sm:$0x3]  ;;  %v1245_v11 = vld [vmem:[%s1496_s1 + $0x78] sm:$0xff]  ;;  %v264_v12 = vunpack.c.l.b16 %v257_v9  ;;  %vm922_vm6 = vsmask.f32 (%p174_p4), 1280 }
  0x14   : >> { %v191_v13 = vunpack.c.l.b16 %v180_v10  ;;  %v1239_v14 = vld [vmem:[%s1496_s1 + $0x48] sm:$0xff]  ;;  %v1241_v15 = vld [vmem:[%s1496_s1 + $0x58] sm:$0xff]  ;;  %v1387_v16 = vld [vmem:[%s1364_s9 + $0x4] sm:$0x3] }
  0x15   : >> { %289 = vmatpush.bf16.msra.mxu2 %v1234_v4  ;;  %v265_v17 = vpack.c.b16 %v264_v12, %v264_v12  ;;  %223 = vmatpush.bf16.msra.mxu0 %v1232_v6  ;;  %v382_v19 = vunpack.c.l.b16 %v1387_v16  ;;  %v1242_v20 = vld [vmem:[%s1496_s1 + $0x60] sm:$0xff]  ;;  %v1244_v21 = vld [vmem:[%s1496_s1 + $0x70] sm:$0xff]  ;;  %v1251_v28 = vld [vmem:[%s1496_s1 + $0xa8] sm:$0xff] }
  0x16   : >> { %251 = vmatpush.bf16.msra.mxu1 %v1230_v5  ;;  %331 = vmatpush.bf16.msra.mxu3 %v1236_v7  ;;  %v192_v18 = vpack.c.b16 %v191_v13, %v191_v13  ;;  %v1090_v22 = vld [vmem:[%s1364_s9 + $0x4] sm:$0x6]  ;;  %v1240_v30 = vld [vmem:[%s1496_s1 + $0x50] sm:$0xff]  ;;  %v1249_v34 = vld [vmem:[%s1496_s1 + $0x98] sm:$0xff] }
  0x17   : >> { %v266_v23 = vrot.slane %v265_v17, 1  ;;  %v302_v26 = vshrl.u32 %v265_v17, 16  ;;  %v1238_v27 = vld [vmem:[%s1496_s1 + $0x40] sm:$0xff]  ;;  %v305_v29 = vshll.u32 %v265_v17, 16  ;;  %v383_v31 = vpack.c.b16 %v382_v19, %v382_v19  ;;  %v1247_v37 = vld [vmem:[%s1496_s1 + $0x88] sm:$0xff]  ;;  %v1253_v40 = vld [vmem:[%s1496_s1 + $0xb8] sm:$0xff] }
  0x18   : >> { %v194_v24 = vshrl.u32 %v192_v18, 16  ;;  %v196_v25 = vshll.u32 %v192_v18, 16  ;;  %v427_v36 = vunpack.c.l.b16 %v1090_v22  ;;  %v1250_v41 = vld [vmem:[%s1496_s1 + $0xa0] sm:$0xff]  ;;  %v1248_v43 = vld [vmem:[%s1496_s1 + $0x90] sm:$0xff]  ;;  %v1118_v49 = vld [vmem:[%s1364_s9 + $0x8] sm:$0x3] }
  0x19   : >> { %451 = vmatpush.bf16.msrb.mxu2 %v1243_v8  ;;  %1035 = vmatmul.msk.bf16.vlgmr.msra.gmra.mxu1 %vm212_vm0, %v180_v10  ;;  %v304_v33 = vrot.slane %v302_v26, 1  ;;  %v307_v35 = vrot.slane %v305_v29, 2  ;;  %v387_v39 = vshll.u32 %v383_v31, 16  ;;  %v1246_v45 = vld [vmem:[%s1496_s1 + $0x80] sm:$0xff]  ;;  %v385_v46 = vshrl.u32 %v383_v31, 16  ;;  %v1252_v48 = vld [vmem:[%s1496_s1 + $0xb0] sm:$0xff]  ;;  %vm923_vm10 = vmand (%p174_p4), %vm921_vm5, %vm922_vm6 }
  0x1a   : >> { %493 = vmatpush.bf16.msrb.mxu3 %v1245_v11  ;;  %368 = vmatpush.bf16.msrb.mxu0 %v1239_v14  ;;  %v198_v32 = vrot.slane %v196_v25, 1  ;;  %v428_v44 = vpack.c.b16 %v427_v36, %v427_v36  ;;  %v545_v53 = vunpack.c.l.b16 %v1118_v49  ;;  %v1257_v54 = vld [vmem:[%s1496_s1 + $0xd8] sm:$0xff]  ;;  %v1259_v58 = vld [vmem:[%s1496_s1 + $0xe8] sm:$0xff]  ;;  %v1256_v61 = vld [vmem:[%s1496_s1 + $0xd0] sm:$0xff] }
  0x1b   : >> { %412 = vmatpush.bf16.msrb.mxu1 %v1241_v15  ;;  %1048 = vmatmul.msk.bf16.vlgmr.msra.gmra.mxu2 %vm212_vm0, %v266_v23  ;;  %v308_v42 = vor.u32 %v307_v35, %v304_v33  ;;  %v389_v47 = vrot.slane %v387_v39, 1  ;;  %v1145_v59 = vld [vmem:[%s1364_s9 + $0x8] sm:$0x6]  ;;  %v1261_v2 = vld [vmem:[%s1496_s1 + $0xf8] sm:$0xff]  ;;  %v1258_v3 = vld [vmem:[%s1496_s1 + $0xe0] sm:$0xff] }
  0x1c   : >> { %v199_v38 = vor.u32 %v198_v32, %v194_v24  ;;  %v465_v50 = vshrl.u32 %v428_v44, 16  ;;  %v468_v51 = vshll.u32 %v428_v44, 16  ;;  %v429_v55 = vrot.slane %v428_v44, 1  ;;  %v1255_v0 = vld [vmem:[%s1496_s1 + $0xc8] sm:$0xff]  ;;  %v1254_v5 = vld [vmem:[%s1496_s1 + $0xc0] sm:$0xff]  ;;  %v1260_v8 = vld [vmem:[%s1496_s1 + $0xf0] sm:$0xff] }
  0x1d   : >> { %452 = vmatpush.bf16.msrb.mxu2 %v1242_v20  ;;  %1061 = vmatmul.msk.bf16.vlgmr.msra.gmra.mxu3 %vm212_vm0, %v308_v42  ;;  %v390_v52 = vor.u32 %v389_v47, %v385_v46  ;;  %v546_v60 = vpack.c.b16 %v545_v53, %v545_v53  ;;  %v590_v63 = vunpack.c.l.b16 %v1145_v59  ;;  %v1173_v9 = vld [vmem:[%s1364_s9 + $0xc] sm:$0x3] }
  0x1e   : >> { %494 = vmatpush.bf16.msrb.mxu3 %v1244_v21  ;;  %369 = vmatpush.bf16.msrb.mxu0 %v1238_v27  ;;  %v467_v56 = vrot.slane %v465_v50, 1  ;;  %v470_v57 = vrot.slane %v468_v51, 2  ;;  %v708_v13 = vunpack.c.l.b16 %v1173_v9  ;;  %v1200_v17 = vld [vmem:[%s1364_s9 + $0xc] sm:$0x6]  ;;  %s828_s9 = scalar_lea.vmem [#allocation2], %s1013_s8 }
  0x1f   : >> { %413 = vmatpush.bf16.msrb.mxu1 %v1240_v30  ;;  %1026 = vmatmul.msk.bf16.vlgmr.msra.gmra.mxu0 %vm212_vm0, %v199_v38  ;;  %v550_v1 = vshll.u32 %v546_v60, 16  ;;  %v591_v4 = vpack.c.b16 %v590_v63, %v590_v63  ;;  %v548_v6 = vshrl.u32 %v546_v60, 16  ;;  %v753_v20 = vunpack.c.l.b16 %v1200_v17 }
  0x20   : >> { %v471_v62 = vor.u32 %v470_v57, %v467_v56  ;;  %v709_v18 = vpack.c.b16 %v708_v13, %v708_v13 }
  0x21   : >> { %614 = vmatpush.bf16.msra.mxu2 %v1251_v28  ;;  %v552_v7 = vrot.slane %v550_v1, 1  ;;  %v628_v10 = vshrl.u32 %v591_v4, 16  ;;  %v631_v11 = vshll.u32 %v591_v4, 16  ;;  %v592_v14 = vrot.slane %v591_v4, 1 }
  0x22   : >> { %531 = vmatpush.bf16.msra.mxu0 %v1247_v37  ;;  %656 = vmatpush.bf16.msra.mxu3 %v1253_v40  ;;  %v713_v21 = vshll.u32 %v709_v18, 16  ;;  %v754_v22 = vpack.c.b16 %v753_v20, %v753_v20  ;;  %v711_v23 = vshrl.u32 %v709_v18, 16  ;;  %v1280_v18 = vld [vmem:[%s1497_s2] ss:$0 sm:$0xff] (%p174_p4) }
  0x23   : >> { %575 = vmatpush.bf16.msra.mxu1 %v1249_v34  ;;  %v553_v12 = vor.u32 %v552_v7, %v548_v6  ;;  %v630_v15 = vrot.slane %v628_v10, 1 }
  0x24   : >> { %v715_v24 = vrot.slane %v713_v21, 1  ;;  %v791_v25 = vshrl.u32 %v754_v22, 16  ;;  %v794_v26 = vshll.u32 %v754_v22, 16  ;;  %v755_v28 = vrot.slane %v754_v22, 1 }
  0x25   : >> { %615 = vmatpush.bf16.msra.mxu2 %v1250_v41 }
  0x26   : >> { %532 = vmatpush.bf16.msra.mxu0 %v1246_v45  ;;  %657 = vmatpush.bf16.msra.mxu3 %v1252_v48  ;;  %v716_v27 = vor.u32 %v715_v24, %v711_v23  ;;  %v793_v29 = vrot.slane %v791_v25, 1  ;;  %v796_v30 = vrot.slane %v794_v26, 2 }
  0x27   : >> { %576 = vmatpush.bf16.msra.mxu1 %v1248_v43 }
  0x28   : >> { %v797_v31 = vor.u32 %v796_v30, %v793_v29 }
  0x29   : >> { %1089 = vmatmul.msk.bf16.vlgmr.msrb.gmra.mxu1 %vm212_vm0, %v390_v52 }
  0x2b   : >> { %738 = vmatpush.bf16.msrb.mxu1 %v1257_v54  ;;  %1103 = vmatmul.msk.bf16.vlgmr.msrb.gmra.mxu2 %vm212_vm0, %v429_v55 }
  0x2c   : >> { %777 = vmatpush.bf16.msrb.mxu2 %v1259_v58 }
  0x2d   : >> { %1116 = vmatmul.msk.bf16.vlgmr.msrb.gmra.mxu3 %vm212_vm0, %v471_v62 }
  0x2e   : >> { %819 = vmatpush.bf16.msrb.mxu3 %v1261_v2 }
  0x2f   : >> { %739 = vmatpush.bf16.msrb.mxu1 %v1256_v61  ;;  %1076 = vmatmul.msk.bf16.vlgmr.msrb.gmra.mxu0 %vm212_vm0, %v1387_v16  ;;  %v633_v16 = vrot.slane %v631_v11, 2 }
  0x30   : >> { %694 = vmatpush.bf16.msrb.mxu0 %v1255_v0  ;;  %778 = vmatpush.bf16.msrb.mxu2 %v1258_v3 }
  0x31   : >> { %v634_v19 = vor.u32 %v633_v16, %v630_v15 }
  0x32   : >> { %820 = vmatpush.bf16.msrb.mxu3 %v1260_v8 }
  0x34   : >> { %695 = vmatpush.bf16.msrb.mxu0 %v1254_v5 }
  0x39   : >> { %1144 = vmatmul.msk.bf16.vlgmr.msra.gmra.mxu1 %vm212_vm0, %v553_v12 }
  0x3b   : >> { %1158 = vmatmul.msk.bf16.vlgmr.msra.gmra.mxu2 %vm212_vm0, %v592_v14 }
  0x3d   : >> { %1171 = vmatmul.msk.bf16.vlgmr.msra.gmra.mxu3 %vm212_vm0, %v634_v19 }
  0x3f   : >> { %1131 = vmatmul.msk.bf16.vlgmr.msra.gmra.mxu0 %vm212_vm0, %v1118_v49 }
  0x49   : >> { %1199 = vmatmul.msk.bf16.vlgmr.msrb.gmra.mxu1 %vm212_vm0, %v716_v27 }
  0x4b   : >> { %1213 = vmatmul.msk.bf16.vlgmr.msrb.gmra.mxu2 %vm212_vm0, %v755_v28 }
  0x4d   : >> { %1226 = vmatmul.msk.bf16.vlgmr.msrb.gmra.mxu3 %vm212_vm0, %v797_v31 }
  0x4f   : >> { %1186 = vmatmul.msk.bf16.vlgmr.msrb.gmra.mxu0 %vm212_vm0, %v1173_v9 }
  0x96   : >> { %v253_v32 = vpop.f32.mrf.mxu1 }
  0x9c   : >> { %v225_v33 = vpop.f32.mrf.mxu0 }
  0x9d   : >> { %v254_v40 = vadd.f32 %v253_v32, %v225_v33 }
  0x9e   : >> { %v291_v34 = vpop.f32.mrf.mxu2  ;;  %v255_v35 = vpop.f32.mrf.mxu1 }
  0x9f   : >> { %v295_v41 = vadd.f32 %v291_v34, %v254_v40 }
  0xa0   : >> { %v333_v36 = vpop.f32.mrf.mxu3 }
  0xa1   : >> { %v337_v46 = vadd.f32 %v333_v36, %v295_v41 }
  0xa4   : >> { %v227_v37 = vpop.f32.mrf.mxu0 }
  0xa6   : >> { %v293_v38 = vpop.f32.mrf.mxu2  ;;  %v415_v39 = vpop.f32.mrf.mxu1 }
  0xa8   : >> { %v335_v42 = vpop.f32.mrf.mxu3 }
  0xac   : >> { %v371_v43 = vpop.f32.mrf.mxu0 }
  0xad   : >> { %v375_v47 = vadd.f32 %v371_v43, %v337_v46 }
  0xae   : >> { %v454_v44 = vpop.f32.mrf.mxu2  ;;  %v417_v45 = vpop.f32.mrf.mxu1 }
  0xaf   : >> { %v419_v50 = vadd.f32 %v415_v39, %v375_v47 }
  0xb0   : >> { %v496_v48 = vpop.f32.mrf.mxu3 }
  0xb1   : >> { %v458_v53 = vadd.f32 %v454_v44, %v419_v50 }
  0xb3   : >> { %v500_v56 = vadd.f32 %v496_v48, %v458_v53 }
  0xb4   : >> { %v373_v49 = vpop.f32.mrf.mxu0 }
  0xb6   : >> { %v456_v51 = vpop.f32.mrf.mxu2  ;;  %v578_v52 = vpop.f32.mrf.mxu1 }
  0xb8   : >> { %v498_v54 = vpop.f32.mrf.mxu3 }
  0xbc   : >> { %v534_v55 = vpop.f32.mrf.mxu0 }
  0xbd   : >> { %v538_v59 = vadd.f32 %v534_v55, %v500_v56 }
  0xbe   : >> { %v617_v57 = vpop.f32.mrf.mxu2  ;;  %v580_v58 = vpop.f32.mrf.mxu1 }
  0xbf   : >> { %v582_v60 = vadd.f32 %v578_v52, %v538_v59 }
  0xc0   : >> { %v659_v61 = vpop.f32.mrf.mxu3 }
  0xc1   : >> { %v621_v1 = vadd.f32 %v617_v57, %v582_v60 }
  0xc3   : >> { %v663_v2 = vadd.f32 %v659_v61, %v621_v1 }
  0xc4   : >> { %v536_v62 = vpop.f32.mrf.mxu0 }
  0xc6   : >> { %v619_v63 = vpop.f32.mrf.mxu2  ;;  %v741_v0 = vpop.f32.mrf.mxu1 }
  0xc8   : >> { %v661_v3 = vpop.f32.mrf.mxu3 }
  0xcc   : >> { %v697_v4 = vpop.f32.mrf.mxu0 }
  0xcd   : >> { %v701_v5 = vadd.f32 %v697_v4, %v663_v2 }
  0xce   : >> { %v780_v6 = vpop.f32.mrf.mxu2  ;;  %v743_v7 = vpop.f32.mrf.mxu1 }
  0xcf   : >> { %v745_v8 = vadd.f32 %v741_v0, %v701_v5 }
  0xd0   : >> { %v822_v10 = vpop.f32.mrf.mxu3 }
  0xd1   : >> { %v784_v9 = vadd.f32 %v780_v6, %v745_v8 }
  0xd3   : >> { %v826_v11 = vadd.f32 %v822_v10, %v784_v9 }
  0xd4   : >> { %v699_v12 = vpop.f32.mrf.mxu0  ;;  %176 = sbr.rel (!%p174_p4) target bundleno = 16 (0x10), region = 89 }
  0xd5   : >> { %829 = vst [vmem:[%s828_s9] sm:$0x7] %v826_v11 }
  0xd6   : >> { %v782_v13 = vpop.f32.mrf.mxu2 }
  0xd8   : >> { %v824_v14 = vpop.f32.mrf.mxu3 }
  0xdc   : > { %v830_v15 = vld [vmem:[#allocation2] sm:$0x7]  ;;  %v831_v16 = vld [vmem:[#allocation2 + $0x4] sm:$0x7]  ;;  %v832_v17 = vld [vmem:[#allocation2 + $0x8] sm:$0x7] }
  0xdd   : > { %v837_v19 = vadd.f32 %v1280_v18, %v830_v15  ;;  %v838_v20 = vadd.f32 %v1280_v18, %v831_v16  ;;  %v839_v21 = vadd.f32 %v1280_v18, %v832_v17 }
  0xdf   : > { %v841_v22 = vsel %vm840_vm1, %v837_v19, 0.0  ;;  %v848_v23 = vsel %vm840_vm1, %v838_v20, 0.0  ;;  %v855_v24 = vsel %vm840_vm1, %v839_v21, 0.0 }
  0xe0   : > { %v842_v25 = vrot.slane %v841_v22, 4  ;;  %v849_v26 = vrot.slane %v848_v23, 4  ;;  %v856_v27 = vrot.slane %v855_v24, 4 }
  0xe2   : > { %v843_v28 = vadd.f32 %v842_v25, %v841_v22  ;;  %v850_v29 = vadd.f32 %v849_v26, %v848_v23  ;;  %v857_v30 = vadd.f32 %v856_v27, %v855_v24  ;;  %v924_v27 = vld [vmem:[%s1335_s21] sm:$0x3] }
  0xe4   : > { %v844_v31 = vrot.slane %v843_v28, 2  ;;  %v851_v32 = vrot.slane %v850_v29, 2  ;;  %v858_v33 = vrot.slane %v857_v30, 2 }
  0xe6   : > { %v845_v34 = vadd.f32 %v844_v31, %v843_v28  ;;  %v852_v35 = vadd.f32 %v851_v32, %v850_v29  ;;  %v859_v36 = vadd.f32 %v858_v33, %v857_v30  ;;  %v927_v29 = vld [vmem:[%s1335_s21 + $0x2] sm:$0x3]  ;;  %v930_v33 = vld [vmem:[%s1335_s21 + $0x4] sm:$0x3] }
  0xe8   : > { %v846_v37 = vrot.slane %v845_v34, 1  ;;  %v853_v38 = vrot.slane %v852_v35, 1  ;;  %v860_v39 = vrot.slane %v859_v36, 1 }
  0xea   : > { %v847_v40 = vadd.f32 %v846_v37, %v845_v34  ;;  %v854_v41 = vadd.f32 %v853_v38, %v852_v35  ;;  %v861_v42 = vadd.f32 %v860_v39, %v859_v36 }
  0xec   : > { %v862_v43 = vadd.f32 %v854_v41, %v847_v40 }
  0xee   : > { %v863_v44 = vadd.f32 %v862_v43, %v861_v42 }
  0xf0   : > { %v864_v45 = vmul.f32 0.11111111, %v863_v44 }
  0xf2   : > { %v865_v46 = vsub.f32 %v837_v19, %v864_v45  ;;  %v866_v47 = vsub.f32 %v838_v20, %v864_v45  ;;  %v867_v48 = vsub.f32 %v839_v21, %v864_v45 }
  0xf4   : > { %v868_v49 = vmul.f32 %v865_v46, %v865_v46  ;;  %v869_v50 = vmul.f32 %v866_v47, %v866_v47  ;;  %v870_v51 = vmul.f32 %v867_v48, %v867_v48 }
  0xf6   : > { %v871_v52 = vsel %vm840_vm1, %v868_v49, 0.0  ;;  %v878_v53 = vsel %vm840_vm1, %v869_v50, 0.0  ;;  %v885_v54 = vsel %vm840_vm1, %v870_v51, 0.0 }
  0xf7   : > { %v872_v55 = vrot.slane %v871_v52, 4  ;;  %v879_v56 = vrot.slane %v878_v53, 4  ;;  %v886_v57 = vrot.slane %v885_v54, 4 }
  0xf9   : > { %v873_v58 = vadd.f32 %v872_v55, %v871_v52  ;;  %v880_v59 = vadd.f32 %v879_v56, %v878_v53  ;;  %v887_v60 = vadd.f32 %v886_v57, %v885_v54 }
  0xfb   : > { %v874_v61 = vrot.slane %v873_v58, 2  ;;  %v881_v62 = vrot.slane %v880_v59, 2  ;;  %v888_v63 = vrot.slane %v887_v60, 2 }
  0xfd   : > { %v875_v0 = vadd.f32 %v874_v61, %v873_v58  ;;  %v882_v1 = vadd.f32 %v881_v62, %v880_v59  ;;  %v889_v2 = vadd.f32 %v888_v63, %v887_v60 }
  0xff   : > { %v876_v3 = vrot.slane %v875_v0, 1  ;;  %v883_v4 = vrot.slane %v882_v1, 1  ;;  %v890_v5 = vrot.slane %v889_v2, 1 }
 0x101   : > { %v877_v6 = vadd.f32 %v876_v3, %v875_v0  ;;  %v884_v7 = vadd.f32 %v883_v4, %v882_v1  ;;  %v891_v8 = vadd.f32 %v890_v5, %v889_v2 }
 0x103   : > { %v892_v9 = vadd.f32 %v884_v7, %v877_v6 }
 0x105   : > { %v893_v10 = vadd.f32 %v892_v9, %v891_v8 }
 0x107   : > { %v894_v11 = vmul.f32 0.11111111, %v893_v10 }
 0x109   : > { %v895_v12 = vadd.f32 1e-05, %v894_v11 }
 0x10b   : > { %1281 = vrsqrt.f32 %v895_v12  ;;  %vm902_vm2 = vweird.f32 %v895_v12 }
 0x111   : > { %v1282_v13 = vpop.eup %1281 }
 0x112   : > { %v897_v14 = vmul.f32 %v1282_v13, %v895_v12  ;;  %vm903_vm3 = vweird.f32 %v1282_v13 }
 0x113   : > { %vm904_vm4 = vmor %vm902_vm2, %vm903_vm3 }
 0x114   : > { %v898_v15 = vmul.f32 %v1282_v13, %v897_v14 }
 0x116   : > { %v899_v16 = vmul.f32 0.5, %v898_v15 }
 0x118   : > { %v900_v17 = vsub.f32 1.5, %v899_v16 }
 0x11a   : > { %v901_v18 = vmul.f32 %v1282_v13, %v900_v17 }
 0x11c   : > { %v905_v19 = vsel %vm904_vm4, %v1282_v13, %v901_v18 }
 0x11d   : > { %v906_v20 = vmul.f32 %v905_v19, %v865_v46  ;;  %v907_v21 = vmul.f32 %v905_v19, %v866_v47  ;;  %v908_v22 = vmul.f32 %v905_v19, %v867_v48 }
 0x11f   : > { %vm909_vm7 = vcmp.ge.f32.partialorder %v906_v20, 0.0  ;;  %v912_v23 = vmul.f32 0.2, %v906_v20  ;;  %vm910_vm8 = vcmp.ge.f32.partialorder %v907_v21, 0.0  ;;  %v913_v24 = vmul.f32 0.2, %v907_v21 }
 0x120   : > { %vm911_vm9 = vcmp.ge.f32.partialorder %v908_v22, 0.0  ;;  %v914_v25 = vmul.f32 0.2, %v908_v22 }
 0x121   : > { %v915_v26 = vsel %vm909_vm7, %v906_v20, %v912_v23  ;;  %v916_v28 = vsel %vm910_vm8, %v907_v21, %v913_v24 }
 0x122   : > { %v918_v30 = vpack.c.bf16 %v915_v26, %v915_v26  ;;  %v919_v31 = vpack.c.bf16 %v916_v28, %v916_v28  ;;  %v917_v32 = vsel %vm911_vm9, %v908_v22, %v914_v25 }
 0x123   : > { %v920_v34 = vpack.c.bf16 %v917_v32, %v917_v32 }
 0x124   : > { %v925_v35 = vsel %vm923_vm10, %v918_v30, %v924_v27  ;;  %v928_v36 = vsel %vm923_vm10, %v919_v31, %v927_v29 }
 0x125   : > { %926 = vst [vmem:[%s1335_s21] sm:$0x3] %v925_v35  ;;  %v931_v37 = vsel %vm923_vm10, %v920_v34, %v930_v33 }
 0x126   : > { %929 = vst [vmem:[%s1335_s21 + $0x2] sm:$0x3] %v928_v36 }
 0x127   : > { %932 = vst [vmem:[%s1335_s21 + $0x4] sm:$0x3] %v931_v37 }
 0x128 PF: > { %s13_s12 = sadd.s32 1, %s1293_s12  }
 0x129   : > { %p10_p5 = scmp.ge.s32.totalorder %s13_s12, 4  }
 0x12b   :  { %12 = sbr.rel (!%p10_p5) target bundleno = 1 (0x1), region = 100 }

// kernel: forward.9
= control target key start
LH: loop header
LB: loop body
LE: loop exit
PB: predicated region body
PF: predicated region fallthrough
CT: control target
= control target key end

     0   :  { %s1727_s12 = smov 0   ;;  %s1990_s0 = inlined_call_operand.vmem [shape: bf16[2,5,5,64], index: 0, kind: input, shape index: {}]   ;;  %s1991_s1 = inlined_call_operand.vmem [shape: bf16[16,64,128], index: 1, kind: input, shape index: {}]   ;;  %s1992_s2 = inlined_call_operand.vmem [shape: f32[1,128], index: 2, kind: input, shape index: {}]   ;;  %s1993_s3 = inlined_call_operand.vmem [shape: f32[2,2,2,128], index: 3, kind: output, shape index: {}]  }
   0x1 LB: > { %s1189_s13 = sadd.s32 4294967295, %s1701_s12   ;;  %p1193_p0 = scmp.ge.s32.totalorder %s1701_s12, 1  ;;  %s1701_s12 = sphi %s1727_s12, %s13_s12  }
   0x2   : > { %p137_p1 = scmp.lt.s32.totalorder %s1701_s12, 3 }
   0x4   : > { %p138_p2 = pnand %p1193_p0, %p137_p1 }
   0x5   : > { %p161_p3 = scmp.lt.s32.totalorder (!%p138_p2), %s1189_s13, 1  ;;  %s1745_s22 = smov (!%p138_p2), 0  }
   0x6   : > { %141 = sbr.rel (%p138_p2) target bundleno = 229 (0xe5), region = 32 }
   0xb   : > { %s1995_s13 = smov (!%p161_p3, %s1189_s13), 1 }
   0xc   : > { %s1673_s14 = smul.u32 20, %s1995_s13  ;;  %s1608_s15 = sshll.u32 %s1995_s13, 2 }
   0xd   : > { %s1738_s18 = scalar_lea.vmem %s1993_s3, %s1608_s15 }
   0xe   : > { %s1743_s21 = scalar_lea.vmem %s1990_s0, %s1673_s14 }
   0xf LB: >> { %v1616_v0 = vld [vmem:[%s1991_s1 + $0x38] sm:$0xff]  ;;  %v1615_v4 = vld [vmem:[%s1991_s1 + $0x30] sm:$0xff]  ;;  %s1197_s8 = sshll.u32 %s1705_s22, 2  ;;  %v1614_v8 = vld [vmem:[%s1991_s1 + $0x28] sm:$0xff]  ;;  %vm233_vm0 = vcmask 523264   ;;  %s1705_s22 = sphi %s1745_s22, %s177_s22  }
  0x10   : >> { %v1612_v1 = vld [vmem:[%s1991_s1 + $0x18] sm:$0xff]  ;;  %241 = vmatpush.bf16.msra.mxu0 %v1616_v0  ;;  %v1611_v5 = vld [vmem:[%s1991_s1 + $0x10] sm:$0xff]  ;;  %s1776_s14 = scalar_lea.vmem %s1743_s21, %s1197_s8  ;;  %v1610_v10 = vld [vmem:[%s1991_s1 + $0x8] sm:$0xff] }
  0x11   : >> { %v1620_v2 = vld [vmem:[%s1991_s1 + $0x58] sm:$0xff]  ;;  %281 = vmatpush.bf16.msra.mxu1 %v1612_v1  ;;  %v1619_v6 = vld [vmem:[%s1991_s1 + $0x50] sm:$0xff]  ;;  %v189_v9 = vld [vmem:[%s1776_s14] sm:$0x3] }
  0x12   : >> { %v1624_v3 = vld [vmem:[%s1991_s1 + $0x78] sm:$0xff]  ;;  %335 = vmatpush.bf16.msra.mxu2 %v1620_v2  ;;  %v1623_v7 = vld [vmem:[%s1991_s1 + $0x70] sm:$0xff]  ;;  %v200_v11 = vunpack.c.l.b16 %v189_v9  ;;  %v290_v12 = vld [vmem:[%s1776_s14] sm:$0x2] }
  0x13   : >> { %397 = vmatpush.bf16.msra.mxu3 %v1624_v3  ;;  %v345_v13 = vld [vmem:[%s1776_s14] sm:$0x6]  ;;  %v1618_v14 = vld [vmem:[%s1991_s1 + $0x48] sm:$0xff]  ;;  %v301_v16 = vunpack.c.l.b16 %v290_v12  ;;  %v1636_v30 = vld [vmem:[%s1991_s1 + $0xd8] sm:$0xff] }
  0x14   : >> { %242 = vmatpush.bf16.msra.mxu0 %v1615_v4  ;;  %v1622_v15 = vld [vmem:[%s1991_s1 + $0x68] sm:$0xff]  ;;  %v356_v17 = vunpack.c.l.b16 %v345_v13  ;;  %v201_v18 = vpack.c.b16 %v200_v11, %v200_v11  ;;  %v1613_v20 = vld [vmem:[%s1991_s1 + $0x20] sm:$0xff]  ;;  %v1640_v31 = vld [vmem:[%s1991_s1 + $0xf8] sm:$0xff] }
  0x15   : >> { %282 = vmatpush.bf16.msra.mxu1 %v1611_v5  ;;  %v1609_v21 = vld [vmem:[%s1991_s1] sm:$0xff]  ;;  %v302_v24 = vpack.c.b16 %v301_v16, %v301_v16  ;;  %v1628_v41 = vld [vmem:[%s1991_s1 + $0x98] sm:$0xff]  ;;  %v1635_v44 = vld [vmem:[%s1991_s1 + $0xd0] sm:$0xff] }
  0x16   : >> { %336 = vmatpush.bf16.msra.mxu2 %v1619_v6  ;;  %v357_v19 = vpack.c.b16 %v356_v17, %v356_v17  ;;  %v203_v22 = vshrl.u32 %v201_v18, 16  ;;  %v205_v23 = vshll.u32 %v201_v18, 16  ;;  %v1617_v25 = vld [vmem:[%s1991_s1 + $0x40] sm:$0xff]  ;;  %v1632_v42 = vld [vmem:[%s1991_s1 + $0xb8] sm:$0xff]  ;;  %v1639_v45 = vld [vmem:[%s1991_s1 + $0xf0] sm:$0xff] }
  0x17   : >> { %398 = vmatpush.bf16.msra.mxu3 %v1623_v7  ;;  %v1621_v26 = vld [vmem:[%s1991_s1 + $0x60] sm:$0xff]  ;;  %v303_v38 = vrot.slane %v302_v24, 1  ;;  %v1627_v47 = vld [vmem:[%s1991_s1 + $0x90] sm:$0xff]  ;;  %v1634_v50 = vld [vmem:[%s1991_s1 + $0xc8] sm:$0xff] }
  0x18   : >> { %243 = vmatpush.bf16.msra.mxu0 %v1614_v8  ;;  %v359_v27 = vshrl.u32 %v357_v19, 16  ;;  %v362_v28 = vshll.u32 %v357_v19, 16  ;;  %v207_v29 = vrot.slane %v205_v23, 1  ;;  %v1317_v32 = vld [vmem:[%s1776_s14 + $0x4] sm:$0x3]  ;;  %v1631_v48 = vld [vmem:[%s1991_s1 + $0xb0] sm:$0xff] }
  0x19   : >> { %283 = vmatpush.bf16.msra.mxu1 %v1610_v10  ;;  %v1369_v35 = vld [vmem:[%s1776_s14 + $0x4] sm:$0x6]  ;;  %v180_v37 = vld [vmem:[%s1776_s14] sm:$0x1]  ;;  %v472_v39 = vunpack.c.l.b16 %v1317_v32  ;;  %v1638_v51 = vld [vmem:[%s1991_s1 + $0xe8] sm:$0xff] }
  0x1a   : >> { %337 = vmatpush.bf16.msra.mxu2 %v1618_v14  ;;  %v361_v33 = vrot.slane %v359_v27, 1  ;;  %v364_v34 = vrot.slane %v362_v28, 2  ;;  %v208_v36 = vor.u32 %v207_v29, %v203_v22  ;;  %v588_v43 = vunpack.c.l.b16 %v1369_v35  ;;  %v1343_v52 = vld [vmem:[%s1776_s14 + $0x4] sm:$0x2]  ;;  %v1626_v54 = vld [vmem:[%s1991_s1 + $0x88] sm:$0xff]  ;;  %v1652_v61 = vld [vmem:[%s1991_s1 + $0x158] sm:$0xff] }
  0x1b   : >> { %399 = vmatpush.bf16.msra.mxu3 %v1622_v15  ;;  %v473_v46 = vpack.c.b16 %v472_v39, %v472_v39  ;;  %v1630_v55 = vld [vmem:[%s1991_s1 + $0xa8] sm:$0xff]  ;;  %v533_v56 = vunpack.c.l.b16 %v1343_v52  ;;  %v1633_v59 = vld [vmem:[%s1991_s1 + $0xc0] sm:$0xff]  ;;  %v1656_v62 = vld [vmem:[%s1991_s1 + $0x178] sm:$0xff] }
  0x1c   : >> { %244 = vmatpush.bf16.msra.mxu0 %v1613_v20  ;;  %v365_v40 = vor.u32 %v364_v34, %v361_v33  ;;  %v589_v49 = vpack.c.b16 %v588_v43, %v588_v43  ;;  %v1637_v60 = vld [vmem:[%s1991_s1 + $0xe0] sm:$0xff]  ;;  %v1422_v6 = vld [vmem:[%s1776_s14 + $0x8] sm:$0x3]  ;;  %v1644_v7 = vld [vmem:[%s1991_s1 + $0x118] sm:$0xff] }
  0x1d   : >> { %284 = vmatpush.bf16.msra.mxu1 %v1609_v21  ;;  %v477_v53 = vshll.u32 %v473_v46, 16  ;;  %v475_v63 = vshrl.u32 %v473_v46, 16  ;;  %v1625_v1 = vld [vmem:[%s1991_s1 + $0x80] sm:$0xff]  ;;  %v534_v3 = vpack.c.b16 %v533_v56, %v533_v56  ;;  %v1648_v8 = vld [vmem:[%s1991_s1 + $0x138] sm:$0xff]  ;;  %v1474_v9 = vld [vmem:[%s1776_s14 + $0x8] sm:$0x6]  ;;  %v704_v13 = vunpack.c.l.b16 %v1422_v6 }
  0x1e   : >> { %338 = vmatpush.bf16.msra.mxu2 %v1617_v25  ;;  %v591_v57 = vshrl.u32 %v589_v49, 16  ;;  %v594_v58 = vshll.u32 %v589_v49, 16  ;;  %v1629_v2 = vld [vmem:[%s1991_s1 + $0xa0] sm:$0xff]  ;;  %v1651_v10 = vld [vmem:[%s1991_s1 + $0x150] sm:$0xff]  ;;  %v820_v17 = vunpack.c.l.b16 %v1474_v9  ;;  %v1650_v20 = vld [vmem:[%s1991_s1 + $0x148] sm:$0xff] }
  0x1f   : >> { %400 = vmatpush.bf16.msra.mxu3 %v1621_v26  ;;  %1222 = vmatmul.msk.bf16.vlgmr.msra.gmra.mxu0 %vm233_vm0, %v208_v36  ;;  %v479_v0 = vrot.slane %v477_v53, 1  ;;  %v1655_v11 = vld [vmem:[%s1991_s1 + $0x170] sm:$0xff]  ;;  %v1291_v14 = vld [vmem:[%s1776_s14 + $0x4] sm:$0x1]  ;;  %v535_v15 = vrot.slane %v534_v3, 1  ;;  %v1654_v21 = vld [vmem:[%s1991_s1 + $0x168] sm:$0xff]  ;;  %v705_v22 = vpack.c.b16 %v704_v13, %v704_v13 }
  0x20   : >> { %1239 = vmatmul.msk.bf16.vlgmr.msra.gmra.mxu1 %vm233_vm0, %v180_v37  ;;  %451 = vmatpush.bf16.msrb.mxu0 %v1628_v41  ;;  %v593_v4 = vrot.slane %v591_v57, 1  ;;  %v596_v5 = vrot.slane %v594_v58, 2  ;;  %v1643_v18 = vld [vmem:[%s1991_s1 + $0x110] sm:$0xff]  ;;  %v821_v23 = vpack.c.b16 %v820_v17, %v820_v17  ;;  %v1642_v24 = vld [vmem:[%s1991_s1 + $0x108] sm:$0xff]  ;;  %v1649_v27 = vld [vmem:[%s1991_s1 + $0x140] sm:$0xff] }
  0x21   : >> { %1264 = vmatmul.msk.bf16.vlgmr.msra.gmra.mxu2 %vm233_vm0, %v303_v38  ;;  %512 = vmatpush.bf16.msrb.mxu1 %v1632_v42  ;;  %v480_v12 = vor.u32 %v479_v0, %v475_v63  ;;  %v1647_v19 = vld [vmem:[%s1991_s1 + $0x130] sm:$0xff]  ;;  %v1646_v25 = vld [vmem:[%s1991_s1 + $0x128] sm:$0xff]  ;;  %v1653_v28 = vld [vmem:[%s1991_s1 + $0x160] sm:$0xff]  ;;  %v709_v29 = vshll.u32 %v705_v22, 16  ;;  %v707_v39 = vshrl.u32 %v705_v22, 16 }
  0x22   : >> { %567 = vmatpush.bf16.msrb.mxu2 %v1636_v30  ;;  %1289 = vmatmul.msk.bf16.vlgmr.msra.gmra.mxu3 %vm233_vm0, %v365_v40  ;;  %v597_v16 = vor.u32 %v596_v5, %v593_v4  ;;  %v1448_v26 = vld [vmem:[%s1776_s14 + $0x8] sm:$0x2]  ;;  %v1668_v30 = vld [vmem:[%s1991_s1 + $0x1d8] sm:$0xff]  ;;  %v823_v33 = vshrl.u32 %v821_v23, 16  ;;  %v826_v34 = vshll.u32 %v821_v23, 16  ;;  %v1641_v35 = vld [vmem:[%s1991_s1 + $0x100] sm:$0xff] }
  0x23   : >> { %629 = vmatpush.bf16.msrb.mxu3 %v1640_v31  ;;  %v1672_v31 = vld [vmem:[%s1991_s1 + $0x1f8] sm:$0xff]  ;;  %v765_v32 = vunpack.c.l.b16 %v1448_v26  ;;  %v1645_v36 = vld [vmem:[%s1991_s1 + $0x120] sm:$0xff]  ;;  %v711_v40 = vrot.slane %v709_v29, 1  ;;  %v1667_v41 = vld [vmem:[%s1991_s1 + $0x1d0] sm:$0xff] }
  0x24   : >> { %452 = vmatpush.bf16.msrb.mxu0 %v1627_v47  ;;  %v1660_v37 = vld [vmem:[%s1991_s1 + $0x198] sm:$0xff]  ;;  %v1671_v42 = vld [vmem:[%s1991_s1 + $0x1f0] sm:$0xff]  ;;  %v1527_v46 = vld [vmem:[%s1776_s14 + $0xc] sm:$0x3] }
  0x25   : >> { %513 = vmatpush.bf16.msrb.mxu1 %v1631_v48  ;;  %v1664_v38 = vld [vmem:[%s1991_s1 + $0x1b8] sm:$0xff]  ;;  %v766_v43 = vpack.c.b16 %v765_v32, %v765_v32  ;;  %v1579_v47 = vld [vmem:[%s1776_s14 + $0xc] sm:$0x6]  ;;  %v1659_v48 = vld [vmem:[%s1991_s1 + $0x190] sm:$0xff] }
  0x26   : >> { %568 = vmatpush.bf16.msrb.mxu2 %v1635_v44  ;;  %v825_v44 = vrot.slane %v823_v33, 1  ;;  %v1663_v49 = vld [vmem:[%s1991_s1 + $0x1b0] sm:$0xff]  ;;  %v1396_v52 = vld [vmem:[%s1776_s14 + $0x8] sm:$0x1]  ;;  %v1669_v63 = vld [vmem:[%s1991_s1 + $0x1e0] sm:$0xff] }
  0x27   : >> { %630 = vmatpush.bf16.msrb.mxu3 %v1639_v45  ;;  %v828_v45 = vrot.slane %v826_v34, 2  ;;  %v767_v53 = vrot.slane %v766_v43, 1  ;;  %v1666_v56 = vld [vmem:[%s1991_s1 + $0x1c8] sm:$0xff] }
  0x28   : >> { %453 = vmatpush.bf16.msrb.mxu0 %v1626_v54  ;;  %v1670_v57 = vld [vmem:[%s1991_s1 + $0x1e8] sm:$0xff] }
  0x29   : >> { %514 = vmatpush.bf16.msrb.mxu1 %v1630_v55  ;;  %v829_v54 = vor.u32 %v828_v45, %v825_v44  ;;  %v1052_v55 = vunpack.c.l.b16 %v1579_v47  ;;  %v1658_v58 = vld [vmem:[%s1991_s1 + $0x188] sm:$0xff] }
  0x2a   : >> { %569 = vmatpush.bf16.msrb.mxu2 %v1634_v50  ;;  %v712_v50 = vor.u32 %v711_v40, %v707_v39  ;;  %v1553_v0 = vld [vmem:[%s1776_s14 + $0xc] sm:$0x2]  ;;  %v1501_v13 = vld [vmem:[%s1776_s14 + $0xc] sm:$0x1]  ;;  %s1605_s14 = sshll.u32 %s1705_s22, 1  ;;  %s177_s22 = sadd.s32 1, %s1705_s22  }
  0x2b   : >> { %631 = vmatpush.bf16.msrb.mxu3 %v1638_v51  ;;  %v936_v51 = vunpack.c.l.b16 %v1527_v46  ;;  %v997_v4 = vunpack.c.l.b16 %v1553_v0  ;;  %s1104_s17 = scalar_lea.vmem [#allocation2], %s1605_s14  ;;  %p174_p4 = scmp.ge.s32.totalorder %s177_s22, 2  }
  0x2c   : >> { %454 = vmatpush.bf16.msrb.mxu0 %v1625_v1  ;;  %v1657_v1 = vld [vmem:[%s1991_s1 + $0x180] sm:$0xff] }
  0x2d   : >> { %515 = vmatpush.bf16.msrb.mxu1 %v1629_v2  ;;  %v1661_v2 = vld [vmem:[%s1991_s1 + $0x1a0] sm:$0xff]  ;;  %v998_v9 = vpack.c.b16 %v997_v4, %v997_v4 }
  0x2e   : >> { %570 = vmatpush.bf16.msrb.mxu2 %v1633_v59  ;;  %v1662_v59 = vld [vmem:[%s1991_s1 + $0x1a8] sm:$0xff]  ;;  %v1690_v0 = vld [vmem:[%s1992_s2] ss:$0 sm:$0xff] (%p174_p4) }
  0x2f   : >> { %632 = vmatpush.bf16.msrb.mxu3 %v1637_v60  ;;  %1316 = vmatmul.msk.bf16.vlgmr.msrb.gmra.mxu0 %vm233_vm0, %v1291_v14  ;;  %v937_v60 = vpack.c.b16 %v936_v51, %v936_v51  ;;  %v999_v14 = vrot.slane %v998_v9, 1 }
  0x30   : >> { %683 = vmatpush.bf16.msra.mxu0 %v1644_v7  ;;  %1342 = vmatmul.msk.bf16.vlgmr.msrb.gmra.mxu1 %vm233_vm0, %v480_v12 }
  0x31   : >> { %744 = vmatpush.bf16.msra.mxu1 %v1648_v8  ;;  %1368 = vmatmul.msk.bf16.vlgmr.msrb.gmra.mxu2 %vm233_vm0, %v535_v15  ;;  %v941_v3 = vshll.u32 %v937_v60, 16  ;;  %v939_v7 = vshrl.u32 %v937_v60, 16 }
  0x32   : >> { %799 = vmatpush.bf16.msra.mxu2 %v1652_v61  ;;  %1394 = vmatmul.msk.bf16.vlgmr.msrb.gmra.mxu3 %vm233_vm0, %v597_v16  ;;  %v1053_v61 = vpack.c.b16 %v1052_v55, %v1052_v55 }
  0x33   : >> { %861 = vmatpush.bf16.msra.mxu3 %v1656_v62  ;;  %v1665_v62 = vld [vmem:[%s1991_s1 + $0x1c0] sm:$0xff]  ;;  %v943_v8 = vrot.slane %v941_v3, 1 }
  0x34   : >> { %684 = vmatpush.bf16.msra.mxu0 %v1643_v18  ;;  %v1055_v5 = vshrl.u32 %v1053_v61, 16  ;;  %v1058_v6 = vshll.u32 %v1053_v61, 16 }
  0x35   : >> { %745 = vmatpush.bf16.msra.mxu1 %v1647_v19  ;;  %v944_v12 = vor.u32 %v943_v8, %v939_v7 }
  0x36   : >> { %800 = vmatpush.bf16.msra.mxu2 %v1651_v10  ;;  %v1057_v10 = vrot.slane %v1055_v5, 1 }
  0x37   : >> { %862 = vmatpush.bf16.msra.mxu3 %v1655_v11  ;;  %v1060_v11 = vrot.slane %v1058_v6, 2 }
  0x38   : >> { %685 = vmatpush.bf16.msra.mxu0 %v1642_v24 }
  0x39   : >> { %746 = vmatpush.bf16.msra.mxu1 %v1646_v25  ;;  %v1061_v15 = vor.u32 %v1060_v11, %v1057_v10 }
  0x3a   : >> { %801 = vmatpush.bf16.msra.mxu2 %v1650_v20 }
  0x3b   : >> { %863 = vmatpush.bf16.msra.mxu3 %v1654_v21 }
  0x3c   : >> { %686 = vmatpush.bf16.msra.mxu0 %v1641_v35 }
  0x3d   : >> { %747 = vmatpush.bf16.msra.mxu1 %v1645_v36 }
  0x3e   : >> { %802 = vmatpush.bf16.msra.mxu2 %v1649_v27 }
  0x3f   : >> { %864 = vmatpush.bf16.msra.mxu3 %v1653_v28  ;;  %1421 = vmatmul.msk.bf16.vlgmr.msra.gmra.mxu0 %vm233_vm0, %v1396_v52 }
  0x40   : >> { %915 = vmatpush.bf16.msrb.mxu0 %v1660_v37  ;;  %1447 = vmatmul.msk.bf16.vlgmr.msra.gmra.mxu1 %vm233_vm0, %v712_v50 }
  0x41   : >> { %976 = vmatpush.bf16.msrb.mxu1 %v1664_v38  ;;  %1473 = vmatmul.msk.bf16.vlgmr.msra.gmra.mxu2 %vm233_vm0, %v767_v53 }
  0x42   : >> { %1031 = vmatpush.bf16.msrb.mxu2 %v1668_v30  ;;  %1499 = vmatmul.msk.bf16.vlgmr.msra.gmra.mxu3 %vm233_vm0, %v829_v54 }
  0x43   : >> { %1093 = vmatpush.bf16.msrb.mxu3 %v1672_v31 }
  0x44   : >> { %916 = vmatpush.bf16.msrb.mxu0 %v1659_v48 }
  0x45   : >> { %977 = vmatpush.bf16.msrb.mxu1 %v1663_v49 }
  0x46   : >> { %1032 = vmatpush.bf16.msrb.mxu2 %v1667_v41 }
  0x47   : >> { %1094 = vmatpush.bf16.msrb.mxu3 %v1671_v42 }
  0x48   : >> { %917 = vmatpush.bf16.msrb.mxu0 %v1658_v58 }
  0x49   : >> { %978 = vmatpush.bf16.msrb.mxu1 %v1662_v59 }
  0x4a   : >> { %1033 = vmatpush.bf16.msrb.mxu2 %v1666_v56 }
  0x4b   : >> { %1095 = vmatpush.bf16.msrb.mxu3 %v1670_v57 }
  0x4c   : >> { %918 = vmatpush.bf16.msrb.mxu0 %v1657_v1 }
  0x4d   : >> { %979 = vmatpush.bf16.msrb.mxu1 %v1661_v2 }
  0x4e   : >> { %1034 = vmatpush.bf16.msrb.mxu2 %v1665_v62 }
  0x4f   : >> { %1096 = vmatpush.bf16.msrb.mxu3 %v1669_v63  ;;  %1526 = vmatmul.msk.bf16.vlgmr.msrb.gmra.mxu0 %vm233_vm0, %v1501_v13 }
  0x50   : >> { %1552 = vmatmul.msk.bf16.vlgmr.msrb.gmra.mxu1 %vm233_vm0, %v944_v12 }
  0x51   : >> { %1578 = vmatmul.msk.bf16.vlgmr.msrb.gmra.mxu2 %vm233_vm0, %v999_v14 }
  0x52   : >> { %1604 = vmatmul.msk.bf16.vlgmr.msrb.gmra.mxu3 %vm233_vm0, %v1061_v15 }
  0x9c   : >> { %v246_v16 = vpop.f32.mrf.mxu0 }
  0x9d   : >> { %v286_v17 = vpop.f32.mrf.mxu1 }
  0x9e   : >> { %v287_v24 = vadd.f32 %v286_v17, %v246_v16 }
  0xa4   : >> { %v340_v18 = vpop.f32.mrf.mxu2  ;;  %v248_v20 = vpop.f32.mrf.mxu0 }
  0xa5   : >> { %v402_v19 = vpop.f32.mrf.mxu3  ;;  %v288_v21 = vpop.f32.mrf.mxu1  ;;  %v344_v27 = vadd.f32 %v340_v18, %v287_v24 }
  0xa7   : >> { %v406_v30 = vadd.f32 %v402_v19, %v344_v27 }
  0xac   : >> { %v342_v22 = vpop.f32.mrf.mxu2  ;;  %v456_v25 = vpop.f32.mrf.mxu0 }
  0xad   : >> { %v404_v23 = vpop.f32.mrf.mxu3  ;;  %v517_v26 = vpop.f32.mrf.mxu1  ;;  %v460_v33 = vadd.f32 %v456_v25, %v406_v30 }
  0xaf   : >> { %v521_v34 = vadd.f32 %v517_v26, %v460_v33 }
  0xb4   : >> { %v572_v28 = vpop.f32.mrf.mxu2  ;;  %v458_v31 = vpop.f32.mrf.mxu0 }
  0xb5   : >> { %v634_v29 = vpop.f32.mrf.mxu3  ;;  %v519_v32 = vpop.f32.mrf.mxu1  ;;  %v576_v37 = vadd.f32 %v572_v28, %v521_v34 }
  0xb7   : >> { %v638_v40 = vadd.f32 %v634_v29, %v576_v37 }
  0xbc   : >> { %v574_v35 = vpop.f32.mrf.mxu2  ;;  %v688_v38 = vpop.f32.mrf.mxu0 }
  0xbd   : >> { %v636_v36 = vpop.f32.mrf.mxu3  ;;  %v749_v39 = vpop.f32.mrf.mxu1  ;;  %v692_v41 = vadd.f32 %v688_v38, %v638_v40 }
  0xbf   : >> { %v753_v46 = vadd.f32 %v749_v39, %v692_v41 }
  0xc4   : >> { %v804_v42 = vpop.f32.mrf.mxu2  ;;  %v690_v44 = vpop.f32.mrf.mxu0 }
  0xc5   : >> { %v866_v43 = vpop.f32.mrf.mxu3  ;;  %v751_v45 = vpop.f32.mrf.mxu1  ;;  %v808_v47 = vadd.f32 %v804_v42, %v753_v46 }
  0xc7   : >> { %v870_v50 = vadd.f32 %v866_v43, %v808_v47 }
  0xcc   : >> { %v806_v48 = vpop.f32.mrf.mxu2  ;;  %v920_v51 = vpop.f32.mrf.mxu0 }
  0xcd   : >> { %v868_v49 = vpop.f32.mrf.mxu3  ;;  %v981_v52 = vpop.f32.mrf.mxu1  ;;  %v924_v53 = vadd.f32 %v920_v51, %v870_v50 }
  0xcf   : >> { %v985_v54 = vadd.f32 %v981_v52, %v924_v53 }
  0xd4   : >> { %v1036_v55 = vpop.f32.mrf.mxu2  ;;  %v922_v58 = vpop.f32.mrf.mxu0 }
  0xd5   : >> { %v1098_v56 = vpop.f32.mrf.mxu3  ;;  %v1040_v57 = vadd.f32 %v1036_v55, %v985_v54  ;;  %v983_v59 = vpop.f32.mrf.mxu1 }
  0xd7   : >> { %v1102_v60 = vadd.f32 %v1098_v56, %v1040_v57 }
  0xd9   : >> { %1105 = vst [vmem:[%s1104_s17] sm:$0x3] %v1102_v60  ;;  %176 = sbr.rel (!%p174_p4) target bundleno = 15 (0xf), region = 89 }
  0xdc   : >> { %v1038_v61 = vpop.f32.mrf.mxu2 }
  0xdd   : >> { %v1100_v62 = vpop.f32.mrf.mxu3 }
  0xe0   : > { %v1106_v63 = vld [vmem:[#allocation2] sm:$0x3]  ;;  %v1107_v1 = vld [vmem:[#allocation2 + $0x2] sm:$0x3] }
  0xe1   : > { %v1112_v2 = vadd.f32 %v1690_v0, %v1106_v63  ;;  %v1113_v3 = vadd.f32 %v1690_v0, %v1107_v1 }
  0xe3   : > { %1114 = vst [vmem:[%s1738_s18] sm:$0x3] %v1112_v2 }
  0xe4   : > { %1115 = vst [vmem:[%s1738_s18 + $0x2] sm:$0x3] %v1113_v3 }
  0xe5 PF: > { %s13_s12 = sadd.s32 1, %s1701_s12  }
  0xe6   : > { %p10_p5 = scmp.ge.s32.totalorder %s13_s12, 4  }
  0xe8   :  { %12 = sbr.rel (!%p10_p5) target bundleno = 1 (0x1), region = 100 }

</bundles_post_ra>
